<compile_context>
chip_gen: v5e
topology: v5e:2x2
jax: 0.10.0
libtpu: 0.0.40
codegen_flags: <defaults>
</compile_context>

<pallas_src>
import functools

import numpy as np
import jax
import jax.numpy as jnp
from jax.experimental import pallas as pl
from jax.experimental.pallas import tpu as pltpu

NEG_SLOPE = 0.05


# ------------------------- constant spatial operators -------------------------

def _resize_matrix(in_h, in_w, out_h, out_w):
    """Bilinear resize (align_corners=False) as a (in_h*in_w, out_h*out_w) matrix."""
    def axis(out_size, in_size):
        o = np.arange(out_size, dtype=np.float64)
        src = np.maximum((o + 0.5) * (in_size / out_size) - 0.5, 0.0)
        i0 = np.minimum(np.floor(src).astype(np.int64), in_size - 1)
        i1 = np.minimum(i0 + 1, in_size - 1)
        frac = src - i0
        r = np.zeros((out_size, in_size), np.float64)
        r[np.arange(out_size), i0] += 1.0 - frac
        r[np.arange(out_size), i1] += frac
        return r
    rh = axis(out_h, in_h)                               # (out_h, in_h)
    rw = axis(out_w, in_w)                               # (out_w, in_w)
    a = np.einsum("oi,pj->ijop", rh, rw).reshape(in_h * in_w, out_h * out_w)
    return jnp.asarray(a, jnp.float32)


def _pool_select_matrix(h, w):
    """Stride-2 top-left pixel selection: (h*w, (h//2)*(w//2)) 0/1 matrix."""
    ho, wo = h // 2, w // 2
    s = np.zeros((h * w, ho * wo), np.float32)
    for yo in range(ho):
        for xo in range(wo):
            s[(2 * yo) * w + 2 * xo, yo * wo + xo] = 1.0
    return jnp.asarray(s)


# ------------------------------ parameter init ------------------------------

def init_params(key, in_channels):
    dc = in_channels // 2          # distilled channels
    rc = in_channels               # remaining channels
    exp = 5
    f = in_channels // 4           # LapSA bottleneck
    keys = iter(jax.random.split(key, 64))

    def w1x1(cout, cin):           # (Cout, Cin)
        return 0.1 * jax.random.normal(next(keys), (cout, cin), jnp.float32)

    def w3x3(cout, cin):           # OIHW, same as nn.Conv2d.weight
        return 0.1 * jax.random.normal(next(keys), (cout, cin, 3, 3), jnp.float32)

    def bias(c):
        return 0.01 * jax.random.normal(next(keys), (c,), jnp.float32)

    def cr_branch():
        return dict(w1=w1x1(rc * exp, rc), b1=bias(rc * exp),
                    w2=w1x1(rc, rc * exp), b2=bias(rc),
                    w3=w3x3(rc, rc), b3=bias(rc))

    return dict(
        c1_d_w=w1x1(dc, rc), c2_d_w=w1x1(dc, rc), c3_d_w=w1x1(dc, rc),
        c1_r=cr_branch(), c2_r=cr_branch(), c3_r=cr_branch(),
        c4_w=w3x3(rc, rc), c4_b=bias(rc),
        c5_w=w1x1(in_channels, dc * 3 + rc), c5_b=bias(in_channels),
        sa=dict(
            sq_w=w1x1(f, in_channels), sq_b=bias(f),
            d1_w=w3x3(f, f), d1_b=bias(f),
            d2_w=w3x3(f, f), d2_b=bias(f),
            d3_w=w3x3(f, f), d3_b=bias(f),
            ex_w=w1x1(in_channels, 3 * f), ex_b=bias(in_channels),
            fu_w=w1x1(in_channels, f + in_channels), fu_b=bias(in_channels),
        ),
    )


def _w9(w_oihw):
    # OIHW -> (Cout, 9*Cin) with column order (ky, kx, ci) matching the im2col taps.
    o, i = w_oihw.shape[0], w_oihw.shape[1]
    return jnp.transpose(w_oihw, (0, 2, 3, 1)).reshape(o, 9 * i)


def _col(b):
    return b.reshape(-1, 1)        # (C,) -> (C, 1) so it broadcasts over lanes


def _pack_consts(p, h, w):
    """Flat, ordered list of all kernel-resident constants (matches kernel unpack)."""
    sa = p["sa"]
    consts = [p["c1_d_w"], p["c2_d_w"], p["c3_d_w"]]
    for name in ("c1_r", "c2_r", "c3_r"):
        r = p[name]
        consts += [r["w1"], _col(r["b1"]), r["w2"], _col(r["b2"]),
                   _w9(r["w3"]), _col(r["b3"])]
    consts += [_w9(p["c4_w"]), _col(p["c4_b"]), p["c5_w"], _col(p["c5_b"])]
    consts += [sa["sq_w"], _col(sa["sq_b"]),
               _w9(sa["d1_w"]), _col(sa["d1_b"]),
               _w9(sa["d2_w"]), _col(sa["d2_b"]),
               _w9(sa["d3_w"]), _col(sa["d3_b"]),
               sa["ex_w"], _col(sa["ex_b"]),
               sa["fu_w"], _col(sa["fu_b"])]
    consts += [_resize_matrix(h // 2, w // 2, h, w),              # U1 (also h2 -> full)
               _resize_matrix(h // 4, w // 4, h // 2, w // 2),    # U2
               _resize_matrix(h // 8, w // 8, h // 4, w // 4),    # U3
               _resize_matrix(h // 4, w // 4, h, w),              # R3 (h3 -> full)
               _pool_select_matrix(h, w),                         # S1
               _pool_select_matrix(h // 2, w // 2),               # S2
               _pool_select_matrix(h // 4, w // 4)]               # S3
    return consts


# --------------------------------- the kernel ---------------------------------

def _fdeb_kernel(x_ref, *refs, width):
    *w_refs, o_ref = refs
    (c1d, c2d, c3d,
     r1w1, r1b1, r1w2, r1b2, r1w3, r1b3,
     r2w1, r2b1, r2w2, r2b2, r2w3, r2b3,
     r3w1, r3b1, r3w2, r3b2, r3w3, r3b3,
     c4w, c4b, c5w, c5b,
     sqw, sqb, dw1, db1, dw2, db2, dw3, db3, exw, exb, fuw, fub,
     U1, U2, U3, R3, S1, S2, S3) = [r[...] for r in w_refs]

    x = x_ref[0]                                       # (C, M) -- pixels on lanes

    def mm(wmat, v, b=None):                           # 1x1 conv / generic matmul
        y = jnp.dot(wmat, v, preferred_element_type=jnp.float32)
        return y if b is None else y + b

    def lrelu(y):
        return jnp.where(y >= 0, y, NEG_SLOPE * y)

    def relu(y):
        return jnp.maximum(y, 0.0)

    def sigmoid(y):
        return 1.0 / (1.0 + jnp.exp(-y))

    def shift_rows(v, d, row_w):                       # flat shift by one image row
        c, mv = v.shape
        z = jnp.zeros((c, row_w), v.dtype)
        if d < 0:                                      # value from row y-1
            return jnp.concatenate([z, v[:, :mv - row_w]], axis=1)
        return jnp.concatenate([v[:, row_w:], z], axis=1)   # value from row y+1

    def conv3(v, w9, b, row_w):                        # 3x3 conv, stride 1, pad 1
        c, mv = v.shape
        col = jax.lax.broadcasted_iota(jnp.int32, (1, mv), 1) % row_w
        z1 = jnp.zeros((c, 1), v.dtype)
        taps = []
        for ky in (-1, 0, 1):
            xr = v if ky == 0 else shift_rows(v, ky, row_w)
            for kx in (-1, 0, 1):
                if kx < 0:
                    t = jnp.where(col != 0,
                                  jnp.concatenate([z1, xr[:, :mv - 1]], axis=1), 0.0)
                elif kx == 0:
                    t = xr
                else:
                    t = jnp.where(col != row_w - 1,
                                  jnp.concatenate([xr[:, 1:], z1], axis=1), 0.0)
                taps.append(t)
        im = jnp.concatenate(taps, axis=0)             # (9*Cin, M) im2col in VMEM
        return mm(w9, im, b)                           # single K = 9*Cin matmul

    def maxpool2(v, sel, row_w):                       # MaxPool2d(2, 2)
        c, mv = v.shape
        z1 = jnp.zeros((c, 1), v.dtype)
        a = jnp.maximum(v, jnp.concatenate([v[:, 1:], z1], axis=1))
        a = jnp.maximum(a, shift_rows(a, 1, row_w))
        return jnp.dot(a, sel, preferred_element_type=jnp.float32)

    def resize(v, mat):                                # bilinear (F.interpolate)
        return jnp.dot(v, mat, preferred_element_type=jnp.float32)

    def cr(v, w1, b1, w2, b2, w3, b3):                 # c*_r branch + residual add
        t = lrelu(mm(w1, v, b1))                       # 1x1 expand + LeakyReLU
        t = mm(w2, t, b2)                              # 1x1 project
        return conv3(t, w3, b3, width) + v             # 3x3 + residual

    # ---------------- FDEB trunk ----------------
    d1 = lrelu(mm(c1d, x))
    r1 = cr(x, r1w1, r1b1, r1w2, r1b2, r1w3, r1b3)
    d2 = lrelu(mm(c2d, r1))
    r2 = cr(r1, r2w1, r2b1, r2w2, r2b2, r2w3, r2b3)
    d3 = lrelu(mm(c3d, r2))
    r3 = cr(r2, r3w1, r3b1, r3w2, r3b2, r3w3, r3b3)
    r4 = conv3(r3, c4w, c4b, width)
    y = mm(c5w, jnp.concatenate([d1, d2, d3, r4], axis=0), c5b)

    # ---------------- LapSA ----------------
    s = relu(mm(sqw, y, sqb))
    a1 = relu(conv3(maxpool2(s, S1, width), dw1, db1, width // 2))
    h1 = s - resize(a1, U1)
    a2 = relu(conv3(maxpool2(a1, S2, width // 2), dw2, db2, width // 4))
    h2 = resize(a1 - resize(a2, U2), U1)
    a3 = relu(conv3(maxpool2(a2, S3, width // 4), dw3, db3, width // 8))
    h3 = resize(a2 - resize(a3, U3), R3)

    gate = sigmoid(mm(exw, jnp.concatenate([h1, h2, h3], axis=0), exb))
    out = mm(fuw, jnp.concatenate([y * gate, h1], axis=0), fub)

    o_ref[0] = out.astype(o_ref.dtype)


# --------------------------------- wrapper ---------------------------------

def fdeb_forward(params, x_nchw):
    n, c, h, w = x_nchw.shape
    assert h % 8 == 0 and w % 8 == 0, "LapSA pyramid needs H, W divisible by 8"
    m = h * w
    x = x_nchw.reshape(n, c, m).astype(jnp.float32)     # NCHW -> (N, C, H*W), no transpose
    consts = _pack_consts(params, h, w)

    out = pl.pallas_call(
        functools.partial(_fdeb_kernel, width=w),
        out_shape=jax.ShapeDtypeStruct((n, c, m), jnp.float32),
        grid=(n,),
        in_specs=[pl.BlockSpec((1, c, m), lambda i: (i, 0, 0))]
                 + [pl.BlockSpec(a.shape, lambda i: (0, 0)) for a in consts],
        out_specs=pl.BlockSpec((1, c, m), lambda i: (i, 0, 0)),
        compiler_params=pltpu.CompilerParams(
            dimension_semantics=("parallel",),          # 2 batch steps -> both v7x TCs
            vmem_limit_bytes=32 * 1024 * 1024),
    )(x, *consts)
    return out.reshape(n, c, h, w)


if __name__ == "__main__":
    in_channels = 16
    N, H, W = 2, 16, 16

    key = jax.random.PRNGKey(0)
    pkey, xkey = jax.random.split(key)
    params = init_params(pkey, in_channels)
    x = jax.random.normal(xkey, (N, in_channels, H, W), jnp.float32)

    out = jax.jit(fdeb_forward)(params, x)
    jax.block_until_ready(out)
    assert out.shape == (N, in_channels, H, W), out.shape
    assert bool(jnp.all(jnp.isfinite(out)))
    print("KERNEL_OK")
</pallas_src>

<mosaic_0001>
module attributes {stable_mosaic.version = 11 : i64} {
  func.func @_fdeb_kernel(%arg0: i32, %arg1: memref<1x16x256xf32, #tpu.memory_space<vmem>>, %arg2: memref<8x16xf32, #tpu.memory_space<vmem>>, %arg3: memref<8x16xf32, #tpu.memory_space<vmem>>, %arg4: memref<8x16xf32, #tpu.memory_space<vmem>>, %arg5: memref<80x16xf32, #tpu.memory_space<vmem>>, %arg6: memref<80x1xf32, #tpu.memory_space<vmem>>, %arg7: memref<16x80xf32, #tpu.memory_space<vmem>>, %arg8: memref<16x1xf32, #tpu.memory_space<vmem>>, %arg9: memref<16x144xf32, #tpu.memory_space<vmem>>, %arg10: memref<16x1xf32, #tpu.memory_space<vmem>>, %arg11: memref<80x16xf32, #tpu.memory_space<vmem>>, %arg12: memref<80x1xf32, #tpu.memory_space<vmem>>, %arg13: memref<16x80xf32, #tpu.memory_space<vmem>>, %arg14: memref<16x1xf32, #tpu.memory_space<vmem>>, %arg15: memref<16x144xf32, #tpu.memory_space<vmem>>, %arg16: memref<16x1xf32, #tpu.memory_space<vmem>>, %arg17: memref<80x16xf32, #tpu.memory_space<vmem>>, %arg18: memref<80x1xf32, #tpu.memory_space<vmem>>, %arg19: memref<16x80xf32, #tpu.memory_space<vmem>>, %arg20: memref<16x1xf32, #tpu.memory_space<vmem>>, %arg21: memref<16x144xf32, #tpu.memory_space<vmem>>, %arg22: memref<16x1xf32, #tpu.memory_space<vmem>>, %arg23: memref<16x144xf32, #tpu.memory_space<vmem>>, %arg24: memref<16x1xf32, #tpu.memory_space<vmem>>, %arg25: memref<16x40xf32, #tpu.memory_space<vmem>>, %arg26: memref<16x1xf32, #tpu.memory_space<vmem>>, %arg27: memref<4x16xf32, #tpu.memory_space<vmem>>, %arg28: memref<4x1xf32, #tpu.memory_space<vmem>>, %arg29: memref<4x36xf32, #tpu.memory_space<vmem>>, %arg30: memref<4x1xf32, #tpu.memory_space<vmem>>, %arg31: memref<4x36xf32, #tpu.memory_space<vmem>>, %arg32: memref<4x1xf32, #tpu.memory_space<vmem>>, %arg33: memref<4x36xf32, #tpu.memory_space<vmem>>, %arg34: memref<4x1xf32, #tpu.memory_space<vmem>>, %arg35: memref<16x12xf32, #tpu.memory_space<vmem>>, %arg36: memref<16x1xf32, #tpu.memory_space<vmem>>, %arg37: memref<16x20xf32, #tpu.memory_space<vmem>>, %arg38: memref<16x1xf32, #tpu.memory_space<vmem>>, %arg39: memref<64x256xf32, #tpu.memory_space<vmem>>, %arg40: memref<16x64xf32, #tpu.memory_space<vmem>>, %arg41: memref<4x16xf32, #tpu.memory_space<vmem>>, %arg42: memref<16x256xf32, #tpu.memory_space<vmem>>, %arg43: memref<256x64xf32, #tpu.memory_space<vmem>>, %arg44: memref<64x16xf32, #tpu.memory_space<vmem>>, %arg45: memref<16x4xf32, #tpu.memory_space<vmem>>, %arg46: memref<1x16x256xf32, #tpu.memory_space<vmem>>) attributes {dimension_semantics = [#tpu.dimension_semantics<parallel>], iteration_bounds = array<i64: 2>, scalar_prefetch = 0 : i64, scratch_operands = 0 : i64, tpu.core_type = #tpu.core_type<tc>, window_params = [{transform_indices = @transform_0, window_bounds = array<i64: 1, 16, 256>}, {pipeline_mode = #tpu.pipeline_mode<synchronous>, transform_indices = @transform_1, window_bounds = array<i64: 8, 16>}, {pipeline_mode = #tpu.pipeline_mode<synchronous>, transform_indices = @transform_2, window_bounds = array<i64: 8, 16>}, {pipeline_mode = #tpu.pipeline_mode<synchronous>, transform_indices = @transform_3, window_bounds = array<i64: 8, 16>}, {pipeline_mode = #tpu.pipeline_mode<synchronous>, transform_indices = @transform_4, window_bounds = array<i64: 80, 16>}, {pipeline_mode = #tpu.pipeline_mode<synchronous>, transform_indices = @transform_5, window_bounds = array<i64: 80, 1>}, {pipeline_mode = #tpu.pipeline_mode<synchronous>, transform_indices = @transform_6, window_bounds = array<i64: 16, 80>}, {pipeline_mode = #tpu.pipeline_mode<synchronous>, transform_indices = @transform_7, window_bounds = array<i64: 16, 1>}, {pipeline_mode = #tpu.pipeline_mode<synchronous>, transform_indices = @transform_8, window_bounds = array<i64: 16, 144>}, {pipeline_mode = #tpu.pipeline_mode<synchronous>, transform_indices = @transform_9, window_bounds = array<i64: 16, 1>}, {pipeline_mode = #tpu.pipeline_mode<synchronous>, transform_indices = @transform_10, window_bounds = array<i64: 80, 16>}, {pipeline_mode = #tpu.pipeline_mode<synchronous>, transform_indices = @transform_11, window_bounds = array<i64: 80, 1>}, {pipeline_mode = #tpu.pipeline_mode<synchronous>, transform_indices = @transform_12, window_bounds = array<i64: 16, 80>}, {pipeline_mode = #tpu.pipeline_mode<synchronous>, transform_indices = @transform_13, window_bounds = array<i64: 16, 1>}, {pipeline_mode = #tpu.pipeline_mode<synchronous>, transform_indices = @transform_14, window_bounds = array<i64: 16, 144>}, {pipeline_mode = #tpu.pipeline_mode<synchronous>, transform_indices = @transform_15, window_bounds = array<i64: 16, 1>}, {pipeline_mode = #tpu.pipeline_mode<synchronous>, transform_indices = @transform_16, window_bounds = array<i64: 80, 16>}, {pipeline_mode = #tpu.pipeline_mode<synchronous>, transform_indices = @transform_17, window_bounds = array<i64: 80, 1>}, {pipeline_mode = #tpu.pipeline_mode<synchronous>, transform_indices = @transform_18, window_bounds = array<i64: 16, 80>}, {pipeline_mode = #tpu.pipeline_mode<synchronous>, transform_indices = @transform_19, window_bounds = array<i64: 16, 1>}, {pipeline_mode = #tpu.pipeline_mode<synchronous>, transform_indices = @transform_20, window_bounds = array<i64: 16, 144>}, {pipeline_mode = #tpu.pipeline_mode<synchronous>, transform_indices = @transform_21, window_bounds = array<i64: 16, 1>}, {pipeline_mode = #tpu.pipeline_mode<synchronous>, transform_indices = @transform_22, window_bounds = array<i64: 16, 144>}, {pipeline_mode = #tpu.pipeline_mode<synchronous>, transform_indices = @transform_23, window_bounds = array<i64: 16, 1>}, {pipeline_mode = #tpu.pipeline_mode<synchronous>, transform_indices = @transform_24, window_bounds = array<i64: 16, 40>}, {pipeline_mode = #tpu.pipeline_mode<synchronous>, transform_indices = @transform_25, window_bounds = array<i64: 16, 1>}, {pipeline_mode = #tpu.pipeline_mode<synchronous>, transform_indices = @transform_26, window_bounds = array<i64: 4, 16>}, {pipeline_mode = #tpu.pipeline_mode<synchronous>, transform_indices = @transform_27, window_bounds = array<i64: 4, 1>}, {pipeline_mode = #tpu.pipeline_mode<synchronous>, transform_indices = @transform_28, window_bounds = array<i64: 4, 36>}, {pipeline_mode = #tpu.pipeline_mode<synchronous>, transform_indices = @transform_29, window_bounds = array<i64: 4, 1>}, {pipeline_mode = #tpu.pipeline_mode<synchronous>, transform_indices = @transform_30, window_bounds = array<i64: 4, 36>}, {pipeline_mode = #tpu.pipeline_mode<synchronous>, transform_indices = @transform_31, window_bounds = array<i64: 4, 1>}, {pipeline_mode = #tpu.pipeline_mode<synchronous>, transform_indices = @transform_32, window_bounds = array<i64: 4, 36>}, {pipeline_mode = #tpu.pipeline_mode<synchronous>, transform_indices = @transform_33, window_bounds = array<i64: 4, 1>}, {pipeline_mode = #tpu.pipeline_mode<synchronous>, transform_indices = @transform_34, window_bounds = array<i64: 16, 12>}, {pipeline_mode = #tpu.pipeline_mode<synchronous>, transform_indices = @transform_35, window_bounds = array<i64: 16, 1>}, {pipeline_mode = #tpu.pipeline_mode<synchronous>, transform_indices = @transform_36, window_bounds = array<i64: 16, 20>}, {pipeline_mode = #tpu.pipeline_mode<synchronous>, transform_indices = @transform_37, window_bounds = array<i64: 16, 1>}, {pipeline_mode = #tpu.pipeline_mode<synchronous>, transform_indices = @transform_38, window_bounds = array<i64: 64, 256>}, {pipeline_mode = #tpu.pipeline_mode<synchronous>, transform_indices = @transform_39, window_bounds = array<i64: 16, 64>}, {pipeline_mode = #tpu.pipeline_mode<synchronous>, transform_indices = @transform_40, window_bounds = array<i64: 4, 16>}, {pipeline_mode = #tpu.pipeline_mode<synchronous>, transform_indices = @transform_41, window_bounds = array<i64: 16, 256>}, {pipeline_mode = #tpu.pipeline_mode<synchronous>, transform_indices = @transform_42, window_bounds = array<i64: 256, 64>}, {pipeline_mode = #tpu.pipeline_mode<synchronous>, transform_indices = @transform_43, window_bounds = array<i64: 64, 16>}, {pipeline_mode = #tpu.pipeline_mode<synchronous>, transform_indices = @transform_44, window_bounds = array<i64: 16, 4>}, {transform_indices = @transform_45, window_bounds = array<i64: 1, 16, 256>}]} {
    %c0 = arith.constant 0 : index
    %c0_0 = arith.constant 0 : index
    %0 = vector.load %arg2[%c0, %c0_0] : memref<8x16xf32, #tpu.memory_space<vmem>>, vector<8x16xf32>
    %c0_1 = arith.constant 0 : index
    %c0_2 = arith.constant 0 : index
    %1 = vector.load %arg3[%c0_1, %c0_2] : memref<8x16xf32, #tpu.memory_space<vmem>>, vector<8x16xf32>
    %c0_3 = arith.constant 0 : index
    %c0_4 = arith.constant 0 : index
    %2 = vector.load %arg4[%c0_3, %c0_4] : memref<8x16xf32, #tpu.memory_space<vmem>>, vector<8x16xf32>
    %c0_5 = arith.constant 0 : index
    %c0_6 = arith.constant 0 : index
    %3 = vector.load %arg5[%c0_5, %c0_6] : memref<80x16xf32, #tpu.memory_space<vmem>>, vector<80x16xf32>
    %c0_7 = arith.constant 0 : index
    %c0_8 = arith.constant 0 : index
    %4 = vector.load %arg6[%c0_7, %c0_8] : memref<80x1xf32, #tpu.memory_space<vmem>>, vector<80x1xf32>
    %c0_9 = arith.constant 0 : index
    %c0_10 = arith.constant 0 : index
    %5 = vector.load %arg7[%c0_9, %c0_10] : memref<16x80xf32, #tpu.memory_space<vmem>>, vector<16x80xf32>
    %c0_11 = arith.constant 0 : index
    %c0_12 = arith.constant 0 : index
    %6 = vector.load %arg8[%c0_11, %c0_12] : memref<16x1xf32, #tpu.memory_space<vmem>>, vector<16x1xf32>
    %c0_13 = arith.constant 0 : index
    %c0_14 = arith.constant 0 : index
    %7 = vector.load %arg9[%c0_13, %c0_14] : memref<16x144xf32, #tpu.memory_space<vmem>>, vector<16x144xf32>
    %c0_15 = arith.constant 0 : index
    %c0_16 = arith.constant 0 : index
    %8 = vector.load %arg10[%c0_15, %c0_16] : memref<16x1xf32, #tpu.memory_space<vmem>>, vector<16x1xf32>
    %c0_17 = arith.constant 0 : index
    %c0_18 = arith.constant 0 : index
    %9 = vector.load %arg11[%c0_17, %c0_18] : memref<80x16xf32, #tpu.memory_space<vmem>>, vector<80x16xf32>
    %c0_19 = arith.constant 0 : index
    %c0_20 = arith.constant 0 : index
    %10 = vector.load %arg12[%c0_19, %c0_20] : memref<80x1xf32, #tpu.memory_space<vmem>>, vector<80x1xf32>
    %c0_21 = arith.constant 0 : index
    %c0_22 = arith.constant 0 : index
    %11 = vector.load %arg13[%c0_21, %c0_22] : memref<16x80xf32, #tpu.memory_space<vmem>>, vector<16x80xf32>
    %c0_23 = arith.constant 0 : index
    %c0_24 = arith.constant 0 : index
    %12 = vector.load %arg14[%c0_23, %c0_24] : memref<16x1xf32, #tpu.memory_space<vmem>>, vector<16x1xf32>
    %c0_25 = arith.constant 0 : index
    %c0_26 = arith.constant 0 : index
    %13 = vector.load %arg15[%c0_25, %c0_26] : memref<16x144xf32, #tpu.memory_space<vmem>>, vector<16x144xf32>
    %c0_27 = arith.constant 0 : index
    %c0_28 = arith.constant 0 : index
    %14 = vector.load %arg16[%c0_27, %c0_28] : memref<16x1xf32, #tpu.memory_space<vmem>>, vector<16x1xf32>
    %c0_29 = arith.constant 0 : index
    %c0_30 = arith.constant 0 : index
    %15 = vector.load %arg17[%c0_29, %c0_30] : memref<80x16xf32, #tpu.memory_space<vmem>>, vector<80x16xf32>
    %c0_31 = arith.constant 0 : index
    %c0_32 = arith.constant 0 : index
    %16 = vector.load %arg18[%c0_31, %c0_32] : memref<80x1xf32, #tpu.memory_space<vmem>>, vector<80x1xf32>
    %c0_33 = arith.constant 0 : index
    %c0_34 = arith.constant 0 : index
    %17 = vector.load %arg19[%c0_33, %c0_34] : memref<16x80xf32, #tpu.memory_space<vmem>>, vector<16x80xf32>
    %c0_35 = arith.constant 0 : index
    %c0_36 = arith.constant 0 : index
    %18 = vector.load %arg20[%c0_35, %c0_36] : memref<16x1xf32, #tpu.memory_space<vmem>>, vector<16x1xf32>
    %c0_37 = arith.constant 0 : index
    %c0_38 = arith.constant 0 : index
    %19 = vector.load %arg21[%c0_37, %c0_38] : memref<16x144xf32, #tpu.memory_space<vmem>>, vector<16x144xf32>
    %c0_39 = arith.constant 0 : index
    %c0_40 = arith.constant 0 : index
    %20 = vector.load %arg22[%c0_39, %c0_40] : memref<16x1xf32, #tpu.memory_space<vmem>>, vector<16x1xf32>
    %c0_41 = arith.constant 0 : index
    %c0_42 = arith.constant 0 : index
    %21 = vector.load %arg23[%c0_41, %c0_42] : memref<16x144xf32, #tpu.memory_space<vmem>>, vector<16x144xf32>
    %c0_43 = arith.constant 0 : index
    %c0_44 = arith.constant 0 : index
    %22 = vector.load %arg24[%c0_43, %c0_44] : memref<16x1xf32, #tpu.memory_space<vmem>>, vector<16x1xf32>
    %c0_45 = arith.constant 0 : index
    %c0_46 = arith.constant 0 : index
    %23 = vector.load %arg25[%c0_45, %c0_46] : memref<16x40xf32, #tpu.memory_space<vmem>>, vector<16x40xf32>
    %c0_47 = arith.constant 0 : index
    %c0_48 = arith.constant 0 : index
    %24 = vector.load %arg26[%c0_47, %c0_48] : memref<16x1xf32, #tpu.memory_space<vmem>>, vector<16x1xf32>
    %c0_49 = arith.constant 0 : index
    %c0_50 = arith.constant 0 : index
    %25 = vector.load %arg27[%c0_49, %c0_50] : memref<4x16xf32, #tpu.memory_space<vmem>>, vector<4x16xf32>
    %c0_51 = arith.constant 0 : index
    %c0_52 = arith.constant 0 : index
    %26 = vector.load %arg28[%c0_51, %c0_52] : memref<4x1xf32, #tpu.memory_space<vmem>>, vector<4x1xf32>
    %c0_53 = arith.constant 0 : index
    %c0_54 = arith.constant 0 : index
    %27 = vector.load %arg29[%c0_53, %c0_54] : memref<4x36xf32, #tpu.memory_space<vmem>>, vector<4x36xf32>
    %c0_55 = arith.constant 0 : index
    %c0_56 = arith.constant 0 : index
    %28 = vector.load %arg30[%c0_55, %c0_56] : memref<4x1xf32, #tpu.memory_space<vmem>>, vector<4x1xf32>
    %c0_57 = arith.constant 0 : index
    %c0_58 = arith.constant 0 : index
    %29 = vector.load %arg31[%c0_57, %c0_58] : memref<4x36xf32, #tpu.memory_space<vmem>>, vector<4x36xf32>
    %c0_59 = arith.constant 0 : index
    %c0_60 = arith.constant 0 : index
    %30 = vector.load %arg32[%c0_59, %c0_60] : memref<4x1xf32, #tpu.memory_space<vmem>>, vector<4x1xf32>
    %c0_61 = arith.constant 0 : index
    %c0_62 = arith.constant 0 : index
    %31 = vector.load %arg33[%c0_61, %c0_62] : memref<4x36xf32, #tpu.memory_space<vmem>>, vector<4x36xf32>
    %c0_63 = arith.constant 0 : index
    %c0_64 = arith.constant 0 : index
    %32 = vector.load %arg34[%c0_63, %c0_64] : memref<4x1xf32, #tpu.memory_space<vmem>>, vector<4x1xf32>
    %c0_65 = arith.constant 0 : index
    %c0_66 = arith.constant 0 : index
    %33 = vector.load %arg35[%c0_65, %c0_66] : memref<16x12xf32, #tpu.memory_space<vmem>>, vector<16x12xf32>
    %c0_67 = arith.constant 0 : index
    %c0_68 = arith.constant 0 : index
    %34 = vector.load %arg36[%c0_67, %c0_68] : memref<16x1xf32, #tpu.memory_space<vmem>>, vector<16x1xf32>
    %c0_69 = arith.constant 0 : index
    %c0_70 = arith.constant 0 : index
    %35 = vector.load %arg37[%c0_69, %c0_70] : memref<16x20xf32, #tpu.memory_space<vmem>>, vector<16x20xf32>
    %c0_71 = arith.constant 0 : index
    %c0_72 = arith.constant 0 : index
    %36 = vector.load %arg38[%c0_71, %c0_72] : memref<16x1xf32, #tpu.memory_space<vmem>>, vector<16x1xf32>
    %c0_73 = arith.constant 0 : index
    %c0_74 = arith.constant 0 : index
    %37 = vector.load %arg39[%c0_73, %c0_74] : memref<64x256xf32, #tpu.memory_space<vmem>>, vector<64x256xf32>
    %c0_75 = arith.constant 0 : index
    %c0_76 = arith.constant 0 : index
    %38 = vector.load %arg40[%c0_75, %c0_76] : memref<16x64xf32, #tpu.memory_space<vmem>>, vector<16x64xf32>
    %c0_77 = arith.constant 0 : index
    %c0_78 = arith.constant 0 : index
    %39 = vector.load %arg41[%c0_77, %c0_78] : memref<4x16xf32, #tpu.memory_space<vmem>>, vector<4x16xf32>
    %c0_79 = arith.constant 0 : index
    %c0_80 = arith.constant 0 : index
    %40 = vector.load %arg42[%c0_79, %c0_80] : memref<16x256xf32, #tpu.memory_space<vmem>>, vector<16x256xf32>
    %c0_81 = arith.constant 0 : index
    %c0_82 = arith.constant 0 : index
    %41 = vector.load %arg43[%c0_81, %c0_82] : memref<256x64xf32, #tpu.memory_space<vmem>>, vector<256x64xf32>
    %c0_83 = arith.constant 0 : index
    %c0_84 = arith.constant 0 : index
    %42 = vector.load %arg44[%c0_83, %c0_84] : memref<64x16xf32, #tpu.memory_space<vmem>>, vector<64x16xf32>
    %c0_85 = arith.constant 0 : index
    %c0_86 = arith.constant 0 : index
    %43 = vector.load %arg45[%c0_85, %c0_86] : memref<16x4xf32, #tpu.memory_space<vmem>>, vector<16x4xf32>
    %c0_87 = arith.constant 0 : index
    %c0_88 = arith.constant 0 : index
    %c0_89 = arith.constant 0 : index
    %44 = vector.load %arg1[%c0_87, %c0_88, %c0_89] : memref<1x16x256xf32, #tpu.memory_space<vmem>>, vector<1x16x256xf32>
    %45 = vector.shape_cast %44 : vector<1x16x256xf32> to vector<16x256xf32>
    %cst = arith.constant dense<0.000000e+00> : vector<8x256xf32>
    %46 = tpu.matmul %0, %45, %cst {dimension_numbers = #tpu.dot_dimension_numbers<[1], [0], [0], [1], [0, 0, 1, 1], [], []>} : vector<8x16xf32>, vector<16x256xf32>, vector<8x256xf32> -> vector<8x256xf32>
    %cst_90 = arith.constant 0.000000e+00 : f32
    %47 = vector.broadcast %cst_90 : f32 to vector<8x256xf32>
    %48 = arith.cmpf oge, %46, %47 : vector<8x256xf32>
    %cst_91 = arith.constant 5.000000e-02 : f32
    %49 = vector.broadcast %cst_91 : f32 to vector<8x256xf32>
    %50 = arith.mulf %49, %46 : vector<8x256xf32>
    %51 = arith.select %48, %46, %50 : vector<8x256xi1>, vector<8x256xf32>
    %cst_92 = arith.constant dense<0.000000e+00> : vector<80x256xf32>
    %52 = tpu.matmul %3, %45, %cst_92 {dimension_numbers = #tpu.dot_dimension_numbers<[1], [0], [0], [1], [0, 0, 1, 1], [], []>} : vector<80x16xf32>, vector<16x256xf32>, vector<80x256xf32> -> vector<80x256xf32>
    %53 = vector.broadcast %4 : vector<80x1xf32> to vector<80x256xf32>
    %54 = arith.addf %52, %53 : vector<80x256xf32>
    %cst_93 = arith.constant 0.000000e+00 : f32
    %55 = vector.broadcast %cst_93 : f32 to vector<80x256xf32>
    %56 = arith.cmpf oge, %54, %55 : vector<80x256xf32>
    %cst_94 = arith.constant 5.000000e-02 : f32
    %57 = vector.broadcast %cst_94 : f32 to vector<80x256xf32>
    %58 = arith.mulf %57, %54 : vector<80x256xf32>
    %59 = arith.select %56, %54, %58 : vector<80x256xi1>, vector<80x256xf32>
    %cst_95 = arith.constant dense<0.000000e+00> : vector<16x256xf32>
    %60 = tpu.matmul %5, %59, %cst_95 {dimension_numbers = #tpu.dot_dimension_numbers<[1], [0], [0], [1], [0, 0, 1, 1], [], []>} : vector<16x80xf32>, vector<80x256xf32>, vector<16x256xf32> -> vector<16x256xf32>
    %61 = vector.broadcast %6 : vector<16x1xf32> to vector<16x256xf32>
    %62 = arith.addf %60, %61 : vector<16x256xf32>
    %63 = tpu.iota {dimensions = array<i32: 1>} : vector<1x256xi32>
    %c16_i32 = arith.constant 16 : i32
    %c0_i32 = arith.constant 0 : i32
    %64 = arith.cmpi eq, %c16_i32, %c0_i32 : i32
    %c1_i32 = arith.constant 1 : i32
    %65 = arith.select %64, %c1_i32, %c16_i32 : i32
    %66 = vector.broadcast %65 : i32 to vector<1x256xi32>
    %67 = arith.remsi %63, %66 : vector<1x256xi32>
    %c0_i32_96 = arith.constant 0 : i32
    %68 = vector.broadcast %c0_i32_96 : i32 to vector<1x256xi32>
    %69 = arith.cmpi ne, %67, %68 : vector<1x256xi32>
    %c0_i32_97 = arith.constant 0 : i32
    %70 = vector.broadcast %c0_i32_97 : i32 to vector<1x256xi32>
    %71 = arith.cmpi slt, %67, %70 : vector<1x256xi32>
    %c0_i32_98 = arith.constant 0 : i32
    %72 = arith.cmpi slt, %65, %c0_i32_98 : i32
    %73 = vector.broadcast %72 : i1 to vector<1x256xi1>
    %74 = vector.broadcast %73 : vector<1x256xi1> to vector<1x256xi1>
    %75 = arith.xori %71, %74 : vector<1x256xi1>
    %76 = arith.andi %75, %69 : vector<1x256xi1>
    %77 = vector.broadcast %65 : i32 to vector<1x256xi32>
    %78 = arith.addi %67, %77 : vector<1x256xi32>
    %79 = arith.select %76, %78, %67 : vector<1x256xi1>, vector<1x256xi32>
    %cst_99 = arith.constant 0.000000e+00 : f32
    %80 = vector.broadcast %cst_99 : f32 to vector<16x1xf32>
    %cst_100 = arith.constant 0.000000e+00 : f32
    %81 = vector.broadcast %cst_100 : f32 to vector<16x16xf32>
    %82 = vector.extract_strided_slice %62 {offsets = [0, 0], sizes = [16, 240], strides = [1, 1]} : vector<16x256xf32> to vector<16x240xf32>
    %83 = tpu.concatenate %81, %82 in 1 : vector<16x16xf32>, vector<16x240xf32> -> vector<16x256xf32>
    %c0_i32_101 = arith.constant 0 : i32
    %84 = vector.broadcast %c0_i32_101 : i32 to vector<1x256xi32>
    %85 = arith.cmpi ne, %79, %84 : vector<1x256xi32>
    %86 = vector.extract_strided_slice %83 {offsets = [0, 0], sizes = [16, 255], strides = [1, 1]} : vector<16x256xf32> to vector<16x255xf32>
    %87 = tpu.concatenate %80, %86 in 1 : vector<16x1xf32>, vector<16x255xf32> -> vector<16x256xf32>
    %cst_102 = arith.constant 0.000000e+00 : f32
    %88 = vector.shape_cast %85 : vector<1x256xi1> to vector<1x256xi1>
    %89 = vector.broadcast %88 : vector<1x256xi1> to vector<16x256xi1>
    %90 = vector.broadcast %cst_102 : f32 to vector<16x256xf32>
    %91 = arith.select %89, %87, %90 : vector<16x256xi1>, vector<16x256xf32>
    %c15_i32 = arith.constant 15 : i32
    %92 = vector.broadcast %c15_i32 : i32 to vector<1x256xi32>
    %93 = arith.cmpi ne, %79, %92 : vector<1x256xi32>
    %94 = vector.extract_strided_slice %83 {offsets = [0, 1], sizes = [16, 255], strides = [1, 1]} : vector<16x256xf32> to vector<16x255xf32>
    %95 = tpu.concatenate %94, %80 in 1 : vector<16x255xf32>, vector<16x1xf32> -> vector<16x256xf32>
    %cst_103 = arith.constant 0.000000e+00 : f32
    %96 = vector.shape_cast %93 : vector<1x256xi1> to vector<1x256xi1>
    %97 = vector.broadcast %96 : vector<1x256xi1> to vector<16x256xi1>
    %98 = vector.broadcast %cst_103 : f32 to vector<16x256xf32>
    %99 = arith.select %97, %95, %98 : vector<16x256xi1>, vector<16x256xf32>
    %c0_i32_104 = arith.constant 0 : i32
    %100 = vector.broadcast %c0_i32_104 : i32 to vector<1x256xi32>
    %101 = arith.cmpi ne, %79, %100 : vector<1x256xi32>
    %102 = vector.extract_strided_slice %62 {offsets = [0, 0], sizes = [16, 255], strides = [1, 1]} : vector<16x256xf32> to vector<16x255xf32>
    %103 = tpu.concatenate %80, %102 in 1 : vector<16x1xf32>, vector<16x255xf32> -> vector<16x256xf32>
    %cst_105 = arith.constant 0.000000e+00 : f32
    %104 = vector.shape_cast %101 : vector<1x256xi1> to vector<1x256xi1>
    %105 = vector.broadcast %104 : vector<1x256xi1> to vector<16x256xi1>
    %106 = vector.broadcast %cst_105 : f32 to vector<16x256xf32>
    %107 = arith.select %105, %103, %106 : vector<16x256xi1>, vector<16x256xf32>
    %c15_i32_106 = arith.constant 15 : i32
    %108 = vector.broadcast %c15_i32_106 : i32 to vector<1x256xi32>
    %109 = arith.cmpi ne, %79, %108 : vector<1x256xi32>
    %110 = vector.extract_strided_slice %62 {offsets = [0, 1], sizes = [16, 255], strides = [1, 1]} : vector<16x256xf32> to vector<16x255xf32>
    %111 = tpu.concatenate %110, %80 in 1 : vector<16x255xf32>, vector<16x1xf32> -> vector<16x256xf32>
    %cst_107 = arith.constant 0.000000e+00 : f32
    %112 = vector.shape_cast %109 : vector<1x256xi1> to vector<1x256xi1>
    %113 = vector.broadcast %112 : vector<1x256xi1> to vector<16x256xi1>
    %114 = vector.broadcast %cst_107 : f32 to vector<16x256xf32>
    %115 = arith.select %113, %111, %114 : vector<16x256xi1>, vector<16x256xf32>
    %cst_108 = arith.constant 0.000000e+00 : f32
    %116 = vector.broadcast %cst_108 : f32 to vector<16x16xf32>
    %117 = vector.extract_strided_slice %62 {offsets = [0, 16], sizes = [16, 240], strides = [1, 1]} : vector<16x256xf32> to vector<16x240xf32>
    %118 = tpu.concatenate %117, %116 in 1 : vector<16x240xf32>, vector<16x16xf32> -> vector<16x256xf32>
    %c0_i32_109 = arith.constant 0 : i32
    %119 = vector.broadcast %c0_i32_109 : i32 to vector<1x256xi32>
    %120 = arith.cmpi ne, %79, %119 : vector<1x256xi32>
    %121 = vector.extract_strided_slice %118 {offsets = [0, 0], sizes = [16, 255], strides = [1, 1]} : vector<16x256xf32> to vector<16x255xf32>
    %122 = tpu.concatenate %80, %121 in 1 : vector<16x1xf32>, vector<16x255xf32> -> vector<16x256xf32>
    %cst_110 = arith.constant 0.000000e+00 : f32
    %123 = vector.shape_cast %120 : vector<1x256xi1> to vector<1x256xi1>
    %124 = vector.broadcast %123 : vector<1x256xi1> to vector<16x256xi1>
    %125 = vector.broadcast %cst_110 : f32 to vector<16x256xf32>
    %126 = arith.select %124, %122, %125 : vector<16x256xi1>, vector<16x256xf32>
    %c15_i32_111 = arith.constant 15 : i32
    %127 = vector.broadcast %c15_i32_111 : i32 to vector<1x256xi32>
    %128 = arith.cmpi ne, %79, %127 : vector<1x256xi32>
    %129 = vector.extract_strided_slice %118 {offsets = [0, 1], sizes = [16, 255], strides = [1, 1]} : vector<16x256xf32> to vector<16x255xf32>
    %130 = tpu.concatenate %129, %80 in 1 : vector<16x255xf32>, vector<16x1xf32> -> vector<16x256xf32>
    %cst_112 = arith.constant 0.000000e+00 : f32
    %131 = vector.shape_cast %128 : vector<1x256xi1> to vector<1x256xi1>
    %132 = vector.broadcast %131 : vector<1x256xi1> to vector<16x256xi1>
    %133 = vector.broadcast %cst_112 : f32 to vector<16x256xf32>
    %134 = arith.select %132, %130, %133 : vector<16x256xi1>, vector<16x256xf32>
    %135 = tpu.concatenate %91, %83, %99, %107, %62, %115, %126, %118, %134 in 0 : vector<16x256xf32>, vector<16x256xf32>, vector<16x256xf32>, vector<16x256xf32>, vector<16x256xf32>, vector<16x256xf32>, vector<16x256xf32>, vector<16x256xf32>, vector<16x256xf32> -> vector<144x256xf32>
    %cst_113 = arith.constant dense<0.000000e+00> : vector<16x256xf32>
    %136 = tpu.matmul %7, %135, %cst_113 {dimension_numbers = #tpu.dot_dimension_numbers<[1], [0], [0], [1], [0, 0, 1, 1], [], []>} : vector<16x144xf32>, vector<144x256xf32>, vector<16x256xf32> -> vector<16x256xf32>
    %137 = vector.broadcast %8 : vector<16x1xf32> to vector<16x256xf32>
    %138 = arith.addf %136, %137 : vector<16x256xf32>
    %139 = arith.addf %138, %45 : vector<16x256xf32>
    %cst_114 = arith.constant dense<0.000000e+00> : vector<8x256xf32>
    %140 = tpu.matmul %1, %139, %cst_114 {dimension_numbers = #tpu.dot_dimension_numbers<[1], [0], [0], [1], [0, 0, 1, 1], [], []>} : vector<8x16xf32>, vector<16x256xf32>, vector<8x256xf32> -> vector<8x256xf32>
    %cst_115 = arith.constant 0.000000e+00 : f32
    %141 = vector.broadcast %cst_115 : f32 to vector<8x256xf32>
    %142 = arith.cmpf oge, %140, %141 : vector<8x256xf32>
    %cst_116 = arith.constant 5.000000e-02 : f32
    %143 = vector.broadcast %cst_116 : f32 to vector<8x256xf32>
    %144 = arith.mulf %143, %140 : vector<8x256xf32>
    %145 = arith.select %142, %140, %144 : vector<8x256xi1>, vector<8x256xf32>
    %cst_117 = arith.constant dense<0.000000e+00> : vector<80x256xf32>
    %146 = tpu.matmul %9, %139, %cst_117 {dimension_numbers = #tpu.dot_dimension_numbers<[1], [0], [0], [1], [0, 0, 1, 1], [], []>} : vector<80x16xf32>, vector<16x256xf32>, vector<80x256xf32> -> vector<80x256xf32>
    %147 = vector.broadcast %10 : vector<80x1xf32> to vector<80x256xf32>
    %148 = arith.addf %146, %147 : vector<80x256xf32>
    %cst_118 = arith.constant 0.000000e+00 : f32
    %149 = vector.broadcast %cst_118 : f32 to vector<80x256xf32>
    %150 = arith.cmpf oge, %148, %149 : vector<80x256xf32>
    %cst_119 = arith.constant 5.000000e-02 : f32
    %151 = vector.broadcast %cst_119 : f32 to vector<80x256xf32>
    %152 = arith.mulf %151, %148 : vector<80x256xf32>
    %153 = arith.select %150, %148, %152 : vector<80x256xi1>, vector<80x256xf32>
    %cst_120 = arith.constant dense<0.000000e+00> : vector<16x256xf32>
    %154 = tpu.matmul %11, %153, %cst_120 {dimension_numbers = #tpu.dot_dimension_numbers<[1], [0], [0], [1], [0, 0, 1, 1], [], []>} : vector<16x80xf32>, vector<80x256xf32>, vector<16x256xf32> -> vector<16x256xf32>
    %155 = vector.broadcast %12 : vector<16x1xf32> to vector<16x256xf32>
    %156 = arith.addf %154, %155 : vector<16x256xf32>
    %157 = tpu.iota {dimensions = array<i32: 1>} : vector<1x256xi32>
    %c16_i32_121 = arith.constant 16 : i32
    %c0_i32_122 = arith.constant 0 : i32
    %158 = arith.cmpi eq, %c16_i32_121, %c0_i32_122 : i32
    %c1_i32_123 = arith.constant 1 : i32
    %159 = arith.select %158, %c1_i32_123, %c16_i32_121 : i32
    %160 = vector.broadcast %159 : i32 to vector<1x256xi32>
    %161 = arith.remsi %157, %160 : vector<1x256xi32>
    %c0_i32_124 = arith.constant 0 : i32
    %162 = vector.broadcast %c0_i32_124 : i32 to vector<1x256xi32>
    %163 = arith.cmpi ne, %161, %162 : vector<1x256xi32>
    %c0_i32_125 = arith.constant 0 : i32
    %164 = vector.broadcast %c0_i32_125 : i32 to vector<1x256xi32>
    %165 = arith.cmpi slt, %161, %164 : vector<1x256xi32>
    %c0_i32_126 = arith.constant 0 : i32
    %166 = arith.cmpi slt, %159, %c0_i32_126 : i32
    %167 = vector.broadcast %166 : i1 to vector<1x256xi1>
    %168 = vector.broadcast %167 : vector<1x256xi1> to vector<1x256xi1>
    %169 = arith.xori %165, %168 : vector<1x256xi1>
    %170 = arith.andi %169, %163 : vector<1x256xi1>
    %171 = vector.broadcast %159 : i32 to vector<1x256xi32>
    %172 = arith.addi %161, %171 : vector<1x256xi32>
    %173 = arith.select %170, %172, %161 : vector<1x256xi1>, vector<1x256xi32>
    %cst_127 = arith.constant 0.000000e+00 : f32
    %174 = vector.broadcast %cst_127 : f32 to vector<16x1xf32>
    %cst_128 = arith.constant 0.000000e+00 : f32
    %175 = vector.broadcast %cst_128 : f32 to vector<16x16xf32>
    %176 = vector.extract_strided_slice %156 {offsets = [0, 0], sizes = [16, 240], strides = [1, 1]} : vector<16x256xf32> to vector<16x240xf32>
    %177 = tpu.concatenate %175, %176 in 1 : vector<16x16xf32>, vector<16x240xf32> -> vector<16x256xf32>
    %c0_i32_129 = arith.constant 0 : i32
    %178 = vector.broadcast %c0_i32_129 : i32 to vector<1x256xi32>
    %179 = arith.cmpi ne, %173, %178 : vector<1x256xi32>
    %180 = vector.extract_strided_slice %177 {offsets = [0, 0], sizes = [16, 255], strides = [1, 1]} : vector<16x256xf32> to vector<16x255xf32>
    %181 = tpu.concatenate %174, %180 in 1 : vector<16x1xf32>, vector<16x255xf32> -> vector<16x256xf32>
    %cst_130 = arith.constant 0.000000e+00 : f32
    %182 = vector.shape_cast %179 : vector<1x256xi1> to vector<1x256xi1>
    %183 = vector.broadcast %182 : vector<1x256xi1> to vector<16x256xi1>
    %184 = vector.broadcast %cst_130 : f32 to vector<16x256xf32>
    %185 = arith.select %183, %181, %184 : vector<16x256xi1>, vector<16x256xf32>
    %c15_i32_131 = arith.constant 15 : i32
    %186 = vector.broadcast %c15_i32_131 : i32 to vector<1x256xi32>
    %187 = arith.cmpi ne, %173, %186 : vector<1x256xi32>
    %188 = vector.extract_strided_slice %177 {offsets = [0, 1], sizes = [16, 255], strides = [1, 1]} : vector<16x256xf32> to vector<16x255xf32>
    %189 = tpu.concatenate %188, %174 in 1 : vector<16x255xf32>, vector<16x1xf32> -> vector<16x256xf32>
    %cst_132 = arith.constant 0.000000e+00 : f32
    %190 = vector.shape_cast %187 : vector<1x256xi1> to vector<1x256xi1>
    %191 = vector.broadcast %190 : vector<1x256xi1> to vector<16x256xi1>
    %192 = vector.broadcast %cst_132 : f32 to vector<16x256xf32>
    %193 = arith.select %191, %189, %192 : vector<16x256xi1>, vector<16x256xf32>
    %c0_i32_133 = arith.constant 0 : i32
    %194 = vector.broadcast %c0_i32_133 : i32 to vector<1x256xi32>
    %195 = arith.cmpi ne, %173, %194 : vector<1x256xi32>
    %196 = vector.extract_strided_slice %156 {offsets = [0, 0], sizes = [16, 255], strides = [1, 1]} : vector<16x256xf32> to vector<16x255xf32>
    %197 = tpu.concatenate %174, %196 in 1 : vector<16x1xf32>, vector<16x255xf32> -> vector<16x256xf32>
    %cst_134 = arith.constant 0.000000e+00 : f32
    %198 = vector.shape_cast %195 : vector<1x256xi1> to vector<1x256xi1>
    %199 = vector.broadcast %198 : vector<1x256xi1> to vector<16x256xi1>
    %200 = vector.broadcast %cst_134 : f32 to vector<16x256xf32>
    %201 = arith.select %199, %197, %200 : vector<16x256xi1>, vector<16x256xf32>
    %c15_i32_135 = arith.constant 15 : i32
    %202 = vector.broadcast %c15_i32_135 : i32 to vector<1x256xi32>
    %203 = arith.cmpi ne, %173, %202 : vector<1x256xi32>
    %204 = vector.extract_strided_slice %156 {offsets = [0, 1], sizes = [16, 255], strides = [1, 1]} : vector<16x256xf32> to vector<16x255xf32>
    %205 = tpu.concatenate %204, %174 in 1 : vector<16x255xf32>, vector<16x1xf32> -> vector<16x256xf32>
    %cst_136 = arith.constant 0.000000e+00 : f32
    %206 = vector.shape_cast %203 : vector<1x256xi1> to vector<1x256xi1>
    %207 = vector.broadcast %206 : vector<1x256xi1> to vector<16x256xi1>
    %208 = vector.broadcast %cst_136 : f32 to vector<16x256xf32>
    %209 = arith.select %207, %205, %208 : vector<16x256xi1>, vector<16x256xf32>
    %cst_137 = arith.constant 0.000000e+00 : f32
    %210 = vector.broadcast %cst_137 : f32 to vector<16x16xf32>
    %211 = vector.extract_strided_slice %156 {offsets = [0, 16], sizes = [16, 240], strides = [1, 1]} : vector<16x256xf32> to vector<16x240xf32>
    %212 = tpu.concatenate %211, %210 in 1 : vector<16x240xf32>, vector<16x16xf32> -> vector<16x256xf32>
    %c0_i32_138 = arith.constant 0 : i32
    %213 = vector.broadcast %c0_i32_138 : i32 to vector<1x256xi32>
    %214 = arith.cmpi ne, %173, %213 : vector<1x256xi32>
    %215 = vector.extract_strided_slice %212 {offsets = [0, 0], sizes = [16, 255], strides = [1, 1]} : vector<16x256xf32> to vector<16x255xf32>
    %216 = tpu.concatenate %174, %215 in 1 : vector<16x1xf32>, vector<16x255xf32> -> vector<16x256xf32>
    %cst_139 = arith.constant 0.000000e+00 : f32
    %217 = vector.shape_cast %214 : vector<1x256xi1> to vector<1x256xi1>
    %218 = vector.broadcast %217 : vector<1x256xi1> to vector<16x256xi1>
    %219 = vector.broadcast %cst_139 : f32 to vector<16x256xf32>
    %220 = arith.select %218, %216, %219 : vector<16x256xi1>, vector<16x256xf32>
    %c15_i32_140 = arith.constant 15 : i32
    %221 = vector.broadcast %c15_i32_140 : i32 to vector<1x256xi32>
    %222 = arith.cmpi ne, %173, %221 : vector<1x256xi32>
    %223 = vector.extract_strided_slice %212 {offsets = [0, 1], sizes = [16, 255], strides = [1, 1]} : vector<16x256xf32> to vector<16x255xf32>
    %224 = tpu.concatenate %223, %174 in 1 : vector<16x255xf32>, vector<16x1xf32> -> vector<16x256xf32>
    %cst_141 = arith.constant 0.000000e+00 : f32
    %225 = vector.shape_cast %222 : vector<1x256xi1> to vector<1x256xi1>
    %226 = vector.broadcast %225 : vector<1x256xi1> to vector<16x256xi1>
    %227 = vector.broadcast %cst_141 : f32 to vector<16x256xf32>
    %228 = arith.select %226, %224, %227 : vector<16x256xi1>, vector<16x256xf32>
    %229 = tpu.concatenate %185, %177, %193, %201, %156, %209, %220, %212, %228 in 0 : vector<16x256xf32>, vector<16x256xf32>, vector<16x256xf32>, vector<16x256xf32>, vector<16x256xf32>, vector<16x256xf32>, vector<16x256xf32>, vector<16x256xf32>, vector<16x256xf32> -> vector<144x256xf32>
    %cst_142 = arith.constant dense<0.000000e+00> : vector<16x256xf32>
    %230 = tpu.matmul %13, %229, %cst_142 {dimension_numbers = #tpu.dot_dimension_numbers<[1], [0], [0], [1], [0, 0, 1, 1], [], []>} : vector<16x144xf32>, vector<144x256xf32>, vector<16x256xf32> -> vector<16x256xf32>
    %231 = vector.broadcast %14 : vector<16x1xf32> to vector<16x256xf32>
    %232 = arith.addf %230, %231 : vector<16x256xf32>
    %233 = arith.addf %232, %139 : vector<16x256xf32>
    %cst_143 = arith.constant dense<0.000000e+00> : vector<8x256xf32>
    %234 = tpu.matmul %2, %233, %cst_143 {dimension_numbers = #tpu.dot_dimension_numbers<[1], [0], [0], [1], [0, 0, 1, 1], [], []>} : vector<8x16xf32>, vector<16x256xf32>, vector<8x256xf32> -> vector<8x256xf32>
    %cst_144 = arith.constant 0.000000e+00 : f32
    %235 = vector.broadcast %cst_144 : f32 to vector<8x256xf32>
    %236 = arith.cmpf oge, %234, %235 : vector<8x256xf32>
    %cst_145 = arith.constant 5.000000e-02 : f32
    %237 = vector.broadcast %cst_145 : f32 to vector<8x256xf32>
    %238 = arith.mulf %237, %234 : vector<8x256xf32>
    %239 = arith.select %236, %234, %238 : vector<8x256xi1>, vector<8x256xf32>
    %cst_146 = arith.constant dense<0.000000e+00> : vector<80x256xf32>
    %240 = tpu.matmul %15, %233, %cst_146 {dimension_numbers = #tpu.dot_dimension_numbers<[1], [0], [0], [1], [0, 0, 1, 1], [], []>} : vector<80x16xf32>, vector<16x256xf32>, vector<80x256xf32> -> vector<80x256xf32>
    %241 = vector.broadcast %16 : vector<80x1xf32> to vector<80x256xf32>
    %242 = arith.addf %240, %241 : vector<80x256xf32>
    %cst_147 = arith.constant 0.000000e+00 : f32
    %243 = vector.broadcast %cst_147 : f32 to vector<80x256xf32>
    %244 = arith.cmpf oge, %242, %243 : vector<80x256xf32>
    %cst_148 = arith.constant 5.000000e-02 : f32
    %245 = vector.broadcast %cst_148 : f32 to vector<80x256xf32>
    %246 = arith.mulf %245, %242 : vector<80x256xf32>
    %247 = arith.select %244, %242, %246 : vector<80x256xi1>, vector<80x256xf32>
    %cst_149 = arith.constant dense<0.000000e+00> : vector<16x256xf32>
    %248 = tpu.matmul %17, %247, %cst_149 {dimension_numbers = #tpu.dot_dimension_numbers<[1], [0], [0], [1], [0, 0, 1, 1], [], []>} : vector<16x80xf32>, vector<80x256xf32>, vector<16x256xf32> -> vector<16x256xf32>
    %249 = vector.broadcast %18 : vector<16x1xf32> to vector<16x256xf32>
    %250 = arith.addf %248, %249 : vector<16x256xf32>
    %251 = tpu.iota {dimensions = array<i32: 1>} : vector<1x256xi32>
    %c16_i32_150 = arith.constant 16 : i32
    %c0_i32_151 = arith.constant 0 : i32
    %252 = arith.cmpi eq, %c16_i32_150, %c0_i32_151 : i32
    %c1_i32_152 = arith.constant 1 : i32
    %253 = arith.select %252, %c1_i32_152, %c16_i32_150 : i32
    %254 = vector.broadcast %253 : i32 to vector<1x256xi32>
    %255 = arith.remsi %251, %254 : vector<1x256xi32>
    %c0_i32_153 = arith.constant 0 : i32
    %256 = vector.broadcast %c0_i32_153 : i32 to vector<1x256xi32>
    %257 = arith.cmpi ne, %255, %256 : vector<1x256xi32>
    %c0_i32_154 = arith.constant 0 : i32
    %258 = vector.broadcast %c0_i32_154 : i32 to vector<1x256xi32>
    %259 = arith.cmpi slt, %255, %258 : vector<1x256xi32>
    %c0_i32_155 = arith.constant 0 : i32
    %260 = arith.cmpi slt, %253, %c0_i32_155 : i32
    %261 = vector.broadcast %260 : i1 to vector<1x256xi1>
    %262 = vector.broadcast %261 : vector<1x256xi1> to vector<1x256xi1>
    %263 = arith.xori %259, %262 : vector<1x256xi1>
    %264 = arith.andi %263, %257 : vector<1x256xi1>
    %265 = vector.broadcast %253 : i32 to vector<1x256xi32>
    %266 = arith.addi %255, %265 : vector<1x256xi32>
    %267 = arith.select %264, %266, %255 : vector<1x256xi1>, vector<1x256xi32>
    %cst_156 = arith.constant 0.000000e+00 : f32
    %268 = vector.broadcast %cst_156 : f32 to vector<16x1xf32>
    %cst_157 = arith.constant 0.000000e+00 : f32
    %269 = vector.broadcast %cst_157 : f32 to vector<16x16xf32>
    %270 = vector.extract_strided_slice %250 {offsets = [0, 0], sizes = [16, 240], strides = [1, 1]} : vector<16x256xf32> to vector<16x240xf32>
    %271 = tpu.concatenate %269, %270 in 1 : vector<16x16xf32>, vector<16x240xf32> -> vector<16x256xf32>
    %c0_i32_158 = arith.constant 0 : i32
    %272 = vector.broadcast %c0_i32_158 : i32 to vector<1x256xi32>
    %273 = arith.cmpi ne, %267, %272 : vector<1x256xi32>
    %274 = vector.extract_strided_slice %271 {offsets = [0, 0], sizes = [16, 255], strides = [1, 1]} : vector<16x256xf32> to vector<16x255xf32>
    %275 = tpu.concatenate %268, %274 in 1 : vector<16x1xf32>, vector<16x255xf32> -> vector<16x256xf32>
    %cst_159 = arith.constant 0.000000e+00 : f32
    %276 = vector.shape_cast %273 : vector<1x256xi1> to vector<1x256xi1>
    %277 = vector.broadcast %276 : vector<1x256xi1> to vector<16x256xi1>
    %278 = vector.broadcast %cst_159 : f32 to vector<16x256xf32>
    %279 = arith.select %277, %275, %278 : vector<16x256xi1>, vector<16x256xf32>
    %c15_i32_160 = arith.constant 15 : i32
    %280 = vector.broadcast %c15_i32_160 : i32 to vector<1x256xi32>
    %281 = arith.cmpi ne, %267, %280 : vector<1x256xi32>
    %282 = vector.extract_strided_slice %271 {offsets = [0, 1], sizes = [16, 255], strides = [1, 1]} : vector<16x256xf32> to vector<16x255xf32>
    %283 = tpu.concatenate %282, %268 in 1 : vector<16x255xf32>, vector<16x1xf32> -> vector<16x256xf32>
    %cst_161 = arith.constant 0.000000e+00 : f32
    %284 = vector.shape_cast %281 : vector<1x256xi1> to vector<1x256xi1>
    %285 = vector.broadcast %284 : vector<1x256xi1> to vector<16x256xi1>
    %286 = vector.broadcast %cst_161 : f32 to vector<16x256xf32>
    %287 = arith.select %285, %283, %286 : vector<16x256xi1>, vector<16x256xf32>
    %c0_i32_162 = arith.constant 0 : i32
    %288 = vector.broadcast %c0_i32_162 : i32 to vector<1x256xi32>
    %289 = arith.cmpi ne, %267, %288 : vector<1x256xi32>
    %290 = vector.extract_strided_slice %250 {offsets = [0, 0], sizes = [16, 255], strides = [1, 1]} : vector<16x256xf32> to vector<16x255xf32>
    %291 = tpu.concatenate %268, %290 in 1 : vector<16x1xf32>, vector<16x255xf32> -> vector<16x256xf32>
    %cst_163 = arith.constant 0.000000e+00 : f32
    %292 = vector.shape_cast %289 : vector<1x256xi1> to vector<1x256xi1>
    %293 = vector.broadcast %292 : vector<1x256xi1> to vector<16x256xi1>
    %294 = vector.broadcast %cst_163 : f32 to vector<16x256xf32>
    %295 = arith.select %293, %291, %294 : vector<16x256xi1>, vector<16x256xf32>
    %c15_i32_164 = arith.constant 15 : i32
    %296 = vector.broadcast %c15_i32_164 : i32 to vector<1x256xi32>
    %297 = arith.cmpi ne, %267, %296 : vector<1x256xi32>
    %298 = vector.extract_strided_slice %250 {offsets = [0, 1], sizes = [16, 255], strides = [1, 1]} : vector<16x256xf32> to vector<16x255xf32>
    %299 = tpu.concatenate %298, %268 in 1 : vector<16x255xf32>, vector<16x1xf32> -> vector<16x256xf32>
    %cst_165 = arith.constant 0.000000e+00 : f32
    %300 = vector.shape_cast %297 : vector<1x256xi1> to vector<1x256xi1>
    %301 = vector.broadcast %300 : vector<1x256xi1> to vector<16x256xi1>
    %302 = vector.broadcast %cst_165 : f32 to vector<16x256xf32>
    %303 = arith.select %301, %299, %302 : vector<16x256xi1>, vector<16x256xf32>
    %cst_166 = arith.constant 0.000000e+00 : f32
    %304 = vector.broadcast %cst_166 : f32 to vector<16x16xf32>
    %305 = vector.extract_strided_slice %250 {offsets = [0, 16], sizes = [16, 240], strides = [1, 1]} : vector<16x256xf32> to vector<16x240xf32>
    %306 = tpu.concatenate %305, %304 in 1 : vector<16x240xf32>, vector<16x16xf32> -> vector<16x256xf32>
    %c0_i32_167 = arith.constant 0 : i32
    %307 = vector.broadcast %c0_i32_167 : i32 to vector<1x256xi32>
    %308 = arith.cmpi ne, %267, %307 : vector<1x256xi32>
    %309 = vector.extract_strided_slice %306 {offsets = [0, 0], sizes = [16, 255], strides = [1, 1]} : vector<16x256xf32> to vector<16x255xf32>
    %310 = tpu.concatenate %268, %309 in 1 : vector<16x1xf32>, vector<16x255xf32> -> vector<16x256xf32>
    %cst_168 = arith.constant 0.000000e+00 : f32
    %311 = vector.shape_cast %308 : vector<1x256xi1> to vector<1x256xi1>
    %312 = vector.broadcast %311 : vector<1x256xi1> to vector<16x256xi1>
    %313 = vector.broadcast %cst_168 : f32 to vector<16x256xf32>
    %314 = arith.select %312, %310, %313 : vector<16x256xi1>, vector<16x256xf32>
    %c15_i32_169 = arith.constant 15 : i32
    %315 = vector.broadcast %c15_i32_169 : i32 to vector<1x256xi32>
    %316 = arith.cmpi ne, %267, %315 : vector<1x256xi32>
    %317 = vector.extract_strided_slice %306 {offsets = [0, 1], sizes = [16, 255], strides = [1, 1]} : vector<16x256xf32> to vector<16x255xf32>
    %318 = tpu.concatenate %317, %268 in 1 : vector<16x255xf32>, vector<16x1xf32> -> vector<16x256xf32>
    %cst_170 = arith.constant 0.000000e+00 : f32
    %319 = vector.shape_cast %316 : vector<1x256xi1> to vector<1x256xi1>
    %320 = vector.broadcast %319 : vector<1x256xi1> to vector<16x256xi1>
    %321 = vector.broadcast %cst_170 : f32 to vector<16x256xf32>
    %322 = arith.select %320, %318, %321 : vector<16x256xi1>, vector<16x256xf32>
    %323 = tpu.concatenate %279, %271, %287, %295, %250, %303, %314, %306, %322 in 0 : vector<16x256xf32>, vector<16x256xf32>, vector<16x256xf32>, vector<16x256xf32>, vector<16x256xf32>, vector<16x256xf32>, vector<16x256xf32>, vector<16x256xf32>, vector<16x256xf32> -> vector<144x256xf32>
    %cst_171 = arith.constant dense<0.000000e+00> : vector<16x256xf32>
    %324 = tpu.matmul %19, %323, %cst_171 {dimension_numbers = #tpu.dot_dimension_numbers<[1], [0], [0], [1], [0, 0, 1, 1], [], []>} : vector<16x144xf32>, vector<144x256xf32>, vector<16x256xf32> -> vector<16x256xf32>
    %325 = vector.broadcast %20 : vector<16x1xf32> to vector<16x256xf32>
    %326 = arith.addf %324, %325 : vector<16x256xf32>
    %327 = arith.addf %326, %233 : vector<16x256xf32>
    %328 = tpu.iota {dimensions = array<i32: 1>} : vector<1x256xi32>
    %c16_i32_172 = arith.constant 16 : i32
    %c0_i32_173 = arith.constant 0 : i32
    %329 = arith.cmpi eq, %c16_i32_172, %c0_i32_173 : i32
    %c1_i32_174 = arith.constant 1 : i32
    %330 = arith.select %329, %c1_i32_174, %c16_i32_172 : i32
    %331 = vector.broadcast %330 : i32 to vector<1x256xi32>
    %332 = arith.remsi %328, %331 : vector<1x256xi32>
    %c0_i32_175 = arith.constant 0 : i32
    %333 = vector.broadcast %c0_i32_175 : i32 to vector<1x256xi32>
    %334 = arith.cmpi ne, %332, %333 : vector<1x256xi32>
    %c0_i32_176 = arith.constant 0 : i32
    %335 = vector.broadcast %c0_i32_176 : i32 to vector<1x256xi32>
    %336 = arith.cmpi slt, %332, %335 : vector<1x256xi32>
    %c0_i32_177 = arith.constant 0 : i32
    %337 = arith.cmpi slt, %330, %c0_i32_177 : i32
    %338 = vector.broadcast %337 : i1 to vector<1x256xi1>
    %339 = vector.broadcast %338 : vector<1x256xi1> to vector<1x256xi1>
    %340 = arith.xori %336, %339 : vector<1x256xi1>
    %341 = arith.andi %340, %334 : vector<1x256xi1>
    %342 = vector.broadcast %330 : i32 to vector<1x256xi32>
    %343 = arith.addi %332, %342 : vector<1x256xi32>
    %344 = arith.select %341, %343, %332 : vector<1x256xi1>, vector<1x256xi32>
    %cst_178 = arith.constant 0.000000e+00 : f32
    %345 = vector.broadcast %cst_178 : f32 to vector<16x1xf32>
    %cst_179 = arith.constant 0.000000e+00 : f32
    %346 = vector.broadcast %cst_179 : f32 to vector<16x16xf32>
    %347 = vector.extract_strided_slice %327 {offsets = [0, 0], sizes = [16, 240], strides = [1, 1]} : vector<16x256xf32> to vector<16x240xf32>
    %348 = tpu.concatenate %346, %347 in 1 : vector<16x16xf32>, vector<16x240xf32> -> vector<16x256xf32>
    %c0_i32_180 = arith.constant 0 : i32
    %349 = vector.broadcast %c0_i32_180 : i32 to vector<1x256xi32>
    %350 = arith.cmpi ne, %344, %349 : vector<1x256xi32>
    %351 = vector.extract_strided_slice %348 {offsets = [0, 0], sizes = [16, 255], strides = [1, 1]} : vector<16x256xf32> to vector<16x255xf32>
    %352 = tpu.concatenate %345, %351 in 1 : vector<16x1xf32>, vector<16x255xf32> -> vector<16x256xf32>
    %cst_181 = arith.constant 0.000000e+00 : f32
    %353 = vector.shape_cast %350 : vector<1x256xi1> to vector<1x256xi1>
    %354 = vector.broadcast %353 : vector<1x256xi1> to vector<16x256xi1>
    %355 = vector.broadcast %cst_181 : f32 to vector<16x256xf32>
    %356 = arith.select %354, %352, %355 : vector<16x256xi1>, vector<16x256xf32>
    %c15_i32_182 = arith.constant 15 : i32
    %357 = vector.broadcast %c15_i32_182 : i32 to vector<1x256xi32>
    %358 = arith.cmpi ne, %344, %357 : vector<1x256xi32>
    %359 = vector.extract_strided_slice %348 {offsets = [0, 1], sizes = [16, 255], strides = [1, 1]} : vector<16x256xf32> to vector<16x255xf32>
    %360 = tpu.concatenate %359, %345 in 1 : vector<16x255xf32>, vector<16x1xf32> -> vector<16x256xf32>
    %cst_183 = arith.constant 0.000000e+00 : f32
    %361 = vector.shape_cast %358 : vector<1x256xi1> to vector<1x256xi1>
    %362 = vector.broadcast %361 : vector<1x256xi1> to vector<16x256xi1>
    %363 = vector.broadcast %cst_183 : f32 to vector<16x256xf32>
    %364 = arith.select %362, %360, %363 : vector<16x256xi1>, vector<16x256xf32>
    %c0_i32_184 = arith.constant 0 : i32
    %365 = vector.broadcast %c0_i32_184 : i32 to vector<1x256xi32>
    %366 = arith.cmpi ne, %344, %365 : vector<1x256xi32>
    %367 = vector.extract_strided_slice %327 {offsets = [0, 0], sizes = [16, 255], strides = [1, 1]} : vector<16x256xf32> to vector<16x255xf32>
    %368 = tpu.concatenate %345, %367 in 1 : vector<16x1xf32>, vector<16x255xf32> -> vector<16x256xf32>
    %cst_185 = arith.constant 0.000000e+00 : f32
    %369 = vector.shape_cast %366 : vector<1x256xi1> to vector<1x256xi1>
    %370 = vector.broadcast %369 : vector<1x256xi1> to vector<16x256xi1>
    %371 = vector.broadcast %cst_185 : f32 to vector<16x256xf32>
    %372 = arith.select %370, %368, %371 : vector<16x256xi1>, vector<16x256xf32>
    %c15_i32_186 = arith.constant 15 : i32
    %373 = vector.broadcast %c15_i32_186 : i32 to vector<1x256xi32>
    %374 = arith.cmpi ne, %344, %373 : vector<1x256xi32>
    %375 = vector.extract_strided_slice %327 {offsets = [0, 1], sizes = [16, 255], strides = [1, 1]} : vector<16x256xf32> to vector<16x255xf32>
    %376 = tpu.concatenate %375, %345 in 1 : vector<16x255xf32>, vector<16x1xf32> -> vector<16x256xf32>
    %cst_187 = arith.constant 0.000000e+00 : f32
    %377 = vector.shape_cast %374 : vector<1x256xi1> to vector<1x256xi1>
    %378 = vector.broadcast %377 : vector<1x256xi1> to vector<16x256xi1>
    %379 = vector.broadcast %cst_187 : f32 to vector<16x256xf32>
    %380 = arith.select %378, %376, %379 : vector<16x256xi1>, vector<16x256xf32>
    %cst_188 = arith.constant 0.000000e+00 : f32
    %381 = vector.broadcast %cst_188 : f32 to vector<16x16xf32>
    %382 = vector.extract_strided_slice %327 {offsets = [0, 16], sizes = [16, 240], strides = [1, 1]} : vector<16x256xf32> to vector<16x240xf32>
    %383 = tpu.concatenate %382, %381 in 1 : vector<16x240xf32>, vector<16x16xf32> -> vector<16x256xf32>
    %c0_i32_189 = arith.constant 0 : i32
    %384 = vector.broadcast %c0_i32_189 : i32 to vector<1x256xi32>
    %385 = arith.cmpi ne, %344, %384 : vector<1x256xi32>
    %386 = vector.extract_strided_slice %383 {offsets = [0, 0], sizes = [16, 255], strides = [1, 1]} : vector<16x256xf32> to vector<16x255xf32>
    %387 = tpu.concatenate %345, %386 in 1 : vector<16x1xf32>, vector<16x255xf32> -> vector<16x256xf32>
    %cst_190 = arith.constant 0.000000e+00 : f32
    %388 = vector.shape_cast %385 : vector<1x256xi1> to vector<1x256xi1>
    %389 = vector.broadcast %388 : vector<1x256xi1> to vector<16x256xi1>
    %390 = vector.broadcast %cst_190 : f32 to vector<16x256xf32>
    %391 = arith.select %389, %387, %390 : vector<16x256xi1>, vector<16x256xf32>
    %c15_i32_191 = arith.constant 15 : i32
    %392 = vector.broadcast %c15_i32_191 : i32 to vector<1x256xi32>
    %393 = arith.cmpi ne, %344, %392 : vector<1x256xi32>
    %394 = vector.extract_strided_slice %383 {offsets = [0, 1], sizes = [16, 255], strides = [1, 1]} : vector<16x256xf32> to vector<16x255xf32>
    %395 = tpu.concatenate %394, %345 in 1 : vector<16x255xf32>, vector<16x1xf32> -> vector<16x256xf32>
    %cst_192 = arith.constant 0.000000e+00 : f32
    %396 = vector.shape_cast %393 : vector<1x256xi1> to vector<1x256xi1>
    %397 = vector.broadcast %396 : vector<1x256xi1> to vector<16x256xi1>
    %398 = vector.broadcast %cst_192 : f32 to vector<16x256xf32>
    %399 = arith.select %397, %395, %398 : vector<16x256xi1>, vector<16x256xf32>
    %400 = tpu.concatenate %356, %348, %364, %372, %327, %380, %391, %383, %399 in 0 : vector<16x256xf32>, vector<16x256xf32>, vector<16x256xf32>, vector<16x256xf32>, vector<16x256xf32>, vector<16x256xf32>, vector<16x256xf32>, vector<16x256xf32>, vector<16x256xf32> -> vector<144x256xf32>
    %cst_193 = arith.constant dense<0.000000e+00> : vector<16x256xf32>
    %401 = tpu.matmul %21, %400, %cst_193 {dimension_numbers = #tpu.dot_dimension_numbers<[1], [0], [0], [1], [0, 0, 1, 1], [], []>} : vector<16x144xf32>, vector<144x256xf32>, vector<16x256xf32> -> vector<16x256xf32>
    %402 = vector.broadcast %22 : vector<16x1xf32> to vector<16x256xf32>
    %403 = arith.addf %401, %402 : vector<16x256xf32>
    %404 = tpu.concatenate %51, %145, %239, %403 in 0 : vector<8x256xf32>, vector<8x256xf32>, vector<8x256xf32>, vector<16x256xf32> -> vector<40x256xf32>
    %cst_194 = arith.constant dense<0.000000e+00> : vector<16x256xf32>
    %405 = tpu.matmul %23, %404, %cst_194 {dimension_numbers = #tpu.dot_dimension_numbers<[1], [0], [0], [1], [0, 0, 1, 1], [], []>} : vector<16x40xf32>, vector<40x256xf32>, vector<16x256xf32> -> vector<16x256xf32>
    %406 = vector.broadcast %24 : vector<16x1xf32> to vector<16x256xf32>
    %407 = arith.addf %405, %406 : vector<16x256xf32>
    %cst_195 = arith.constant dense<0.000000e+00> : vector<4x256xf32>
    %408 = tpu.matmul %25, %407, %cst_195 {dimension_numbers = #tpu.dot_dimension_numbers<[1], [0], [0], [1], [0, 0, 1, 1], [], []>} : vector<4x16xf32>, vector<16x256xf32>, vector<4x256xf32> -> vector<4x256xf32>
    %409 = vector.broadcast %26 : vector<4x1xf32> to vector<4x256xf32>
    %410 = arith.addf %408, %409 : vector<4x256xf32>
    %cst_196 = arith.constant 0.000000e+00 : f32
    %411 = vector.broadcast %cst_196 : f32 to vector<4x256xf32>
    %412 = arith.maximumf %410, %411 : vector<4x256xf32>
    %cst_197 = arith.constant 0.000000e+00 : f32
    %413 = vector.broadcast %cst_197 : f32 to vector<4x1xf32>
    %414 = vector.extract_strided_slice %412 {offsets = [0, 1], sizes = [4, 255], strides = [1, 1]} : vector<4x256xf32> to vector<4x255xf32>
    %415 = tpu.concatenate %414, %413 in 1 : vector<4x255xf32>, vector<4x1xf32> -> vector<4x256xf32>
    %416 = arith.maximumf %412, %415 : vector<4x256xf32>
    %cst_198 = arith.constant 0.000000e+00 : f32
    %417 = vector.broadcast %cst_198 : f32 to vector<4x16xf32>
    %418 = vector.extract_strided_slice %416 {offsets = [0, 16], sizes = [4, 240], strides = [1, 1]} : vector<4x256xf32> to vector<4x240xf32>
    %419 = tpu.concatenate %418, %417 in 1 : vector<4x240xf32>, vector<4x16xf32> -> vector<4x256xf32>
    %420 = arith.maximumf %416, %419 : vector<4x256xf32>
    %cst_199 = arith.constant dense<0.000000e+00> : vector<4x64xf32>
    %421 = tpu.matmul %420, %41, %cst_199 {dimension_numbers = #tpu.dot_dimension_numbers<[1], [0], [0], [1], [0, 0, 1, 1], [], []>} : vector<4x256xf32>, vector<256x64xf32>, vector<4x64xf32> -> vector<4x64xf32>
    %422 = tpu.iota {dimensions = array<i32: 1>} : vector<1x64xi32>
    %c8_i32 = arith.constant 8 : i32
    %c0_i32_200 = arith.constant 0 : i32
    %423 = arith.cmpi eq, %c8_i32, %c0_i32_200 : i32
    %c1_i32_201 = arith.constant 1 : i32
    %424 = arith.select %423, %c1_i32_201, %c8_i32 : i32
    %425 = vector.broadcast %424 : i32 to vector<1x64xi32>
    %426 = arith.remsi %422, %425 : vector<1x64xi32>
    %c0_i32_202 = arith.constant 0 : i32
    %427 = vector.broadcast %c0_i32_202 : i32 to vector<1x64xi32>
    %428 = arith.cmpi ne, %426, %427 : vector<1x64xi32>
    %c0_i32_203 = arith.constant 0 : i32
    %429 = vector.broadcast %c0_i32_203 : i32 to vector<1x64xi32>
    %430 = arith.cmpi slt, %426, %429 : vector<1x64xi32>
    %c0_i32_204 = arith.constant 0 : i32
    %431 = arith.cmpi slt, %424, %c0_i32_204 : i32
    %432 = vector.broadcast %431 : i1 to vector<1x64xi1>
    %433 = vector.broadcast %432 : vector<1x64xi1> to vector<1x64xi1>
    %434 = arith.xori %430, %433 : vector<1x64xi1>
    %435 = arith.andi %434, %428 : vector<1x64xi1>
    %436 = vector.broadcast %424 : i32 to vector<1x64xi32>
    %437 = arith.addi %426, %436 : vector<1x64xi32>
    %438 = arith.select %435, %437, %426 : vector<1x64xi1>, vector<1x64xi32>
    %cst_205 = arith.constant 0.000000e+00 : f32
    %439 = vector.broadcast %cst_205 : f32 to vector<4x1xf32>
    %cst_206 = arith.constant 0.000000e+00 : f32
    %440 = vector.broadcast %cst_206 : f32 to vector<4x8xf32>
    %441 = vector.extract_strided_slice %421 {offsets = [0, 0], sizes = [4, 56], strides = [1, 1]} : vector<4x64xf32> to vector<4x56xf32>
    %442 = tpu.concatenate %440, %441 in 1 : vector<4x8xf32>, vector<4x56xf32> -> vector<4x64xf32>
    %c0_i32_207 = arith.constant 0 : i32
    %443 = vector.broadcast %c0_i32_207 : i32 to vector<1x64xi32>
    %444 = arith.cmpi ne, %438, %443 : vector<1x64xi32>
    %445 = vector.extract_strided_slice %442 {offsets = [0, 0], sizes = [4, 63], strides = [1, 1]} : vector<4x64xf32> to vector<4x63xf32>
    %446 = tpu.concatenate %439, %445 in 1 : vector<4x1xf32>, vector<4x63xf32> -> vector<4x64xf32>
    %cst_208 = arith.constant 0.000000e+00 : f32
    %447 = vector.shape_cast %444 : vector<1x64xi1> to vector<1x64xi1>
    %448 = vector.broadcast %447 : vector<1x64xi1> to vector<4x64xi1>
    %449 = vector.broadcast %cst_208 : f32 to vector<4x64xf32>
    %450 = arith.select %448, %446, %449 : vector<4x64xi1>, vector<4x64xf32>
    %c7_i32 = arith.constant 7 : i32
    %451 = vector.broadcast %c7_i32 : i32 to vector<1x64xi32>
    %452 = arith.cmpi ne, %438, %451 : vector<1x64xi32>
    %453 = vector.extract_strided_slice %442 {offsets = [0, 1], sizes = [4, 63], strides = [1, 1]} : vector<4x64xf32> to vector<4x63xf32>
    %454 = tpu.concatenate %453, %439 in 1 : vector<4x63xf32>, vector<4x1xf32> -> vector<4x64xf32>
    %cst_209 = arith.constant 0.000000e+00 : f32
    %455 = vector.shape_cast %452 : vector<1x64xi1> to vector<1x64xi1>
    %456 = vector.broadcast %455 : vector<1x64xi1> to vector<4x64xi1>
    %457 = vector.broadcast %cst_209 : f32 to vector<4x64xf32>
    %458 = arith.select %456, %454, %457 : vector<4x64xi1>, vector<4x64xf32>
    %c0_i32_210 = arith.constant 0 : i32
    %459 = vector.broadcast %c0_i32_210 : i32 to vector<1x64xi32>
    %460 = arith.cmpi ne, %438, %459 : vector<1x64xi32>
    %461 = vector.extract_strided_slice %421 {offsets = [0, 0], sizes = [4, 63], strides = [1, 1]} : vector<4x64xf32> to vector<4x63xf32>
    %462 = tpu.concatenate %439, %461 in 1 : vector<4x1xf32>, vector<4x63xf32> -> vector<4x64xf32>
    %cst_211 = arith.constant 0.000000e+00 : f32
    %463 = vector.shape_cast %460 : vector<1x64xi1> to vector<1x64xi1>
    %464 = vector.broadcast %463 : vector<1x64xi1> to vector<4x64xi1>
    %465 = vector.broadcast %cst_211 : f32 to vector<4x64xf32>
    %466 = arith.select %464, %462, %465 : vector<4x64xi1>, vector<4x64xf32>
    %c7_i32_212 = arith.constant 7 : i32
    %467 = vector.broadcast %c7_i32_212 : i32 to vector<1x64xi32>
    %468 = arith.cmpi ne, %438, %467 : vector<1x64xi32>
    %469 = vector.extract_strided_slice %421 {offsets = [0, 1], sizes = [4, 63], strides = [1, 1]} : vector<4x64xf32> to vector<4x63xf32>
    %470 = tpu.concatenate %469, %439 in 1 : vector<4x63xf32>, vector<4x1xf32> -> vector<4x64xf32>
    %cst_213 = arith.constant 0.000000e+00 : f32
    %471 = vector.shape_cast %468 : vector<1x64xi1> to vector<1x64xi1>
    %472 = vector.broadcast %471 : vector<1x64xi1> to vector<4x64xi1>
    %473 = vector.broadcast %cst_213 : f32 to vector<4x64xf32>
    %474 = arith.select %472, %470, %473 : vector<4x64xi1>, vector<4x64xf32>
    %cst_214 = arith.constant 0.000000e+00 : f32
    %475 = vector.broadcast %cst_214 : f32 to vector<4x8xf32>
    %476 = vector.extract_strided_slice %421 {offsets = [0, 8], sizes = [4, 56], strides = [1, 1]} : vector<4x64xf32> to vector<4x56xf32>
    %477 = tpu.concatenate %476, %475 in 1 : vector<4x56xf32>, vector<4x8xf32> -> vector<4x64xf32>
    %c0_i32_215 = arith.constant 0 : i32
    %478 = vector.broadcast %c0_i32_215 : i32 to vector<1x64xi32>
    %479 = arith.cmpi ne, %438, %478 : vector<1x64xi32>
    %480 = vector.extract_strided_slice %477 {offsets = [0, 0], sizes = [4, 63], strides = [1, 1]} : vector<4x64xf32> to vector<4x63xf32>
    %481 = tpu.concatenate %439, %480 in 1 : vector<4x1xf32>, vector<4x63xf32> -> vector<4x64xf32>
    %cst_216 = arith.constant 0.000000e+00 : f32
    %482 = vector.shape_cast %479 : vector<1x64xi1> to vector<1x64xi1>
    %483 = vector.broadcast %482 : vector<1x64xi1> to vector<4x64xi1>
    %484 = vector.broadcast %cst_216 : f32 to vector<4x64xf32>
    %485 = arith.select %483, %481, %484 : vector<4x64xi1>, vector<4x64xf32>
    %c7_i32_217 = arith.constant 7 : i32
    %486 = vector.broadcast %c7_i32_217 : i32 to vector<1x64xi32>
    %487 = arith.cmpi ne, %438, %486 : vector<1x64xi32>
    %488 = vector.extract_strided_slice %477 {offsets = [0, 1], sizes = [4, 63], strides = [1, 1]} : vector<4x64xf32> to vector<4x63xf32>
    %489 = tpu.concatenate %488, %439 in 1 : vector<4x63xf32>, vector<4x1xf32> -> vector<4x64xf32>
    %cst_218 = arith.constant 0.000000e+00 : f32
    %490 = vector.shape_cast %487 : vector<1x64xi1> to vector<1x64xi1>
    %491 = vector.broadcast %490 : vector<1x64xi1> to vector<4x64xi1>
    %492 = vector.broadcast %cst_218 : f32 to vector<4x64xf32>
    %493 = arith.select %491, %489, %492 : vector<4x64xi1>, vector<4x64xf32>
    %494 = tpu.concatenate %450, %442, %458, %466, %421, %474, %485, %477, %493 in 0 : vector<4x64xf32>, vector<4x64xf32>, vector<4x64xf32>, vector<4x64xf32>, vector<4x64xf32>, vector<4x64xf32>, vector<4x64xf32>, vector<4x64xf32>, vector<4x64xf32> -> vector<36x64xf32>
    %cst_219 = arith.constant dense<0.000000e+00> : vector<4x64xf32>
    %495 = tpu.matmul %27, %494, %cst_219 {dimension_numbers = #tpu.dot_dimension_numbers<[1], [0], [0], [1], [0, 0, 1, 1], [], []>} : vector<4x36xf32>, vector<36x64xf32>, vector<4x64xf32> -> vector<4x64xf32>
    %496 = vector.broadcast %28 : vector<4x1xf32> to vector<4x64xf32>
    %497 = arith.addf %495, %496 : vector<4x64xf32>
    %cst_220 = arith.constant 0.000000e+00 : f32
    %498 = vector.broadcast %cst_220 : f32 to vector<4x64xf32>
    %499 = arith.maximumf %497, %498 : vector<4x64xf32>
    %cst_221 = arith.constant dense<0.000000e+00> : vector<4x256xf32>
    %500 = tpu.matmul %499, %37, %cst_221 {dimension_numbers = #tpu.dot_dimension_numbers<[1], [0], [0], [1], [0, 0, 1, 1], [], []>} : vector<4x64xf32>, vector<64x256xf32>, vector<4x256xf32> -> vector<4x256xf32>
    %501 = arith.subf %412, %500 : vector<4x256xf32>
    %cst_222 = arith.constant 0.000000e+00 : f32
    %502 = vector.broadcast %cst_222 : f32 to vector<4x1xf32>
    %503 = vector.extract_strided_slice %499 {offsets = [0, 1], sizes = [4, 63], strides = [1, 1]} : vector<4x64xf32> to vector<4x63xf32>
    %504 = tpu.concatenate %503, %502 in 1 : vector<4x63xf32>, vector<4x1xf32> -> vector<4x64xf32>
    %505 = arith.maximumf %499, %504 : vector<4x64xf32>
    %cst_223 = arith.constant 0.000000e+00 : f32
    %506 = vector.broadcast %cst_223 : f32 to vector<4x8xf32>
    %507 = vector.extract_strided_slice %505 {offsets = [0, 8], sizes = [4, 56], strides = [1, 1]} : vector<4x64xf32> to vector<4x56xf32>
    %508 = tpu.concatenate %507, %506 in 1 : vector<4x56xf32>, vector<4x8xf32> -> vector<4x64xf32>
    %509 = arith.maximumf %505, %508 : vector<4x64xf32>
    %cst_224 = arith.constant dense<0.000000e+00> : vector<4x16xf32>
    %510 = tpu.matmul %509, %42, %cst_224 {dimension_numbers = #tpu.dot_dimension_numbers<[1], [0], [0], [1], [0, 0, 1, 1], [], []>} : vector<4x64xf32>, vector<64x16xf32>, vector<4x16xf32> -> vector<4x16xf32>
    %511 = tpu.iota {dimensions = array<i32: 1>} : vector<1x16xi32>
    %c4_i32 = arith.constant 4 : i32
    %c0_i32_225 = arith.constant 0 : i32
    %512 = arith.cmpi eq, %c4_i32, %c0_i32_225 : i32
    %c1_i32_226 = arith.constant 1 : i32
    %513 = arith.select %512, %c1_i32_226, %c4_i32 : i32
    %514 = vector.broadcast %513 : i32 to vector<1x16xi32>
    %515 = arith.remsi %511, %514 : vector<1x16xi32>
    %c0_i32_227 = arith.constant 0 : i32
    %516 = vector.broadcast %c0_i32_227 : i32 to vector<1x16xi32>
    %517 = arith.cmpi ne, %515, %516 : vector<1x16xi32>
    %c0_i32_228 = arith.constant 0 : i32
    %518 = vector.broadcast %c0_i32_228 : i32 to vector<1x16xi32>
    %519 = arith.cmpi slt, %515, %518 : vector<1x16xi32>
    %c0_i32_229 = arith.constant 0 : i32
    %520 = arith.cmpi slt, %513, %c0_i32_229 : i32
    %521 = vector.broadcast %520 : i1 to vector<1x16xi1>
    %522 = vector.broadcast %521 : vector<1x16xi1> to vector<1x16xi1>
    %523 = arith.xori %519, %522 : vector<1x16xi1>
    %524 = arith.andi %523, %517 : vector<1x16xi1>
    %525 = vector.broadcast %513 : i32 to vector<1x16xi32>
    %526 = arith.addi %515, %525 : vector<1x16xi32>
    %527 = arith.select %524, %526, %515 : vector<1x16xi1>, vector<1x16xi32>
    %cst_230 = arith.constant 0.000000e+00 : f32
    %528 = vector.broadcast %cst_230 : f32 to vector<4x1xf32>
    %cst_231 = arith.constant 0.000000e+00 : f32
    %529 = vector.broadcast %cst_231 : f32 to vector<4x4xf32>
    %530 = vector.extract_strided_slice %510 {offsets = [0, 0], sizes = [4, 12], strides = [1, 1]} : vector<4x16xf32> to vector<4x12xf32>
    %531 = tpu.concatenate %529, %530 in 1 : vector<4x4xf32>, vector<4x12xf32> -> vector<4x16xf32>
    %c0_i32_232 = arith.constant 0 : i32
    %532 = vector.broadcast %c0_i32_232 : i32 to vector<1x16xi32>
    %533 = arith.cmpi ne, %527, %532 : vector<1x16xi32>
    %534 = vector.extract_strided_slice %531 {offsets = [0, 0], sizes = [4, 15], strides = [1, 1]} : vector<4x16xf32> to vector<4x15xf32>
    %535 = tpu.concatenate %528, %534 in 1 : vector<4x1xf32>, vector<4x15xf32> -> vector<4x16xf32>
    %cst_233 = arith.constant 0.000000e+00 : f32
    %536 = vector.shape_cast %533 : vector<1x16xi1> to vector<1x16xi1>
    %537 = vector.broadcast %536 : vector<1x16xi1> to vector<4x16xi1>
    %538 = vector.broadcast %cst_233 : f32 to vector<4x16xf32>
    %539 = arith.select %537, %535, %538 : vector<4x16xi1>, vector<4x16xf32>
    %c3_i32 = arith.constant 3 : i32
    %540 = vector.broadcast %c3_i32 : i32 to vector<1x16xi32>
    %541 = arith.cmpi ne, %527, %540 : vector<1x16xi32>
    %542 = vector.extract_strided_slice %531 {offsets = [0, 1], sizes = [4, 15], strides = [1, 1]} : vector<4x16xf32> to vector<4x15xf32>
    %543 = tpu.concatenate %542, %528 in 1 : vector<4x15xf32>, vector<4x1xf32> -> vector<4x16xf32>
    %cst_234 = arith.constant 0.000000e+00 : f32
    %544 = vector.shape_cast %541 : vector<1x16xi1> to vector<1x16xi1>
    %545 = vector.broadcast %544 : vector<1x16xi1> to vector<4x16xi1>
    %546 = vector.broadcast %cst_234 : f32 to vector<4x16xf32>
    %547 = arith.select %545, %543, %546 : vector<4x16xi1>, vector<4x16xf32>
    %c0_i32_235 = arith.constant 0 : i32
    %548 = vector.broadcast %c0_i32_235 : i32 to vector<1x16xi32>
    %549 = arith.cmpi ne, %527, %548 : vector<1x16xi32>
    %550 = vector.extract_strided_slice %510 {offsets = [0, 0], sizes = [4, 15], strides = [1, 1]} : vector<4x16xf32> to vector<4x15xf32>
    %551 = tpu.concatenate %528, %550 in 1 : vector<4x1xf32>, vector<4x15xf32> -> vector<4x16xf32>
    %cst_236 = arith.constant 0.000000e+00 : f32
    %552 = vector.shape_cast %549 : vector<1x16xi1> to vector<1x16xi1>
    %553 = vector.broadcast %552 : vector<1x16xi1> to vector<4x16xi1>
    %554 = vector.broadcast %cst_236 : f32 to vector<4x16xf32>
    %555 = arith.select %553, %551, %554 : vector<4x16xi1>, vector<4x16xf32>
    %c3_i32_237 = arith.constant 3 : i32
    %556 = vector.broadcast %c3_i32_237 : i32 to vector<1x16xi32>
    %557 = arith.cmpi ne, %527, %556 : vector<1x16xi32>
    %558 = vector.extract_strided_slice %510 {offsets = [0, 1], sizes = [4, 15], strides = [1, 1]} : vector<4x16xf32> to vector<4x15xf32>
    %559 = tpu.concatenate %558, %528 in 1 : vector<4x15xf32>, vector<4x1xf32> -> vector<4x16xf32>
    %cst_238 = arith.constant 0.000000e+00 : f32
    %560 = vector.shape_cast %557 : vector<1x16xi1> to vector<1x16xi1>
    %561 = vector.broadcast %560 : vector<1x16xi1> to vector<4x16xi1>
    %562 = vector.broadcast %cst_238 : f32 to vector<4x16xf32>
    %563 = arith.select %561, %559, %562 : vector<4x16xi1>, vector<4x16xf32>
    %cst_239 = arith.constant 0.000000e+00 : f32
    %564 = vector.broadcast %cst_239 : f32 to vector<4x4xf32>
    %565 = vector.extract_strided_slice %510 {offsets = [0, 4], sizes = [4, 12], strides = [1, 1]} : vector<4x16xf32> to vector<4x12xf32>
    %566 = tpu.concatenate %565, %564 in 1 : vector<4x12xf32>, vector<4x4xf32> -> vector<4x16xf32>
    %c0_i32_240 = arith.constant 0 : i32
    %567 = vector.broadcast %c0_i32_240 : i32 to vector<1x16xi32>
    %568 = arith.cmpi ne, %527, %567 : vector<1x16xi32>
    %569 = vector.extract_strided_slice %566 {offsets = [0, 0], sizes = [4, 15], strides = [1, 1]} : vector<4x16xf32> to vector<4x15xf32>
    %570 = tpu.concatenate %528, %569 in 1 : vector<4x1xf32>, vector<4x15xf32> -> vector<4x16xf32>
    %cst_241 = arith.constant 0.000000e+00 : f32
    %571 = vector.shape_cast %568 : vector<1x16xi1> to vector<1x16xi1>
    %572 = vector.broadcast %571 : vector<1x16xi1> to vector<4x16xi1>
    %573 = vector.broadcast %cst_241 : f32 to vector<4x16xf32>
    %574 = arith.select %572, %570, %573 : vector<4x16xi1>, vector<4x16xf32>
    %c3_i32_242 = arith.constant 3 : i32
    %575 = vector.broadcast %c3_i32_242 : i32 to vector<1x16xi32>
    %576 = arith.cmpi ne, %527, %575 : vector<1x16xi32>
    %577 = vector.extract_strided_slice %566 {offsets = [0, 1], sizes = [4, 15], strides = [1, 1]} : vector<4x16xf32> to vector<4x15xf32>
    %578 = tpu.concatenate %577, %528 in 1 : vector<4x15xf32>, vector<4x1xf32> -> vector<4x16xf32>
    %cst_243 = arith.constant 0.000000e+00 : f32
    %579 = vector.shape_cast %576 : vector<1x16xi1> to vector<1x16xi1>
    %580 = vector.broadcast %579 : vector<1x16xi1> to vector<4x16xi1>
    %581 = vector.broadcast %cst_243 : f32 to vector<4x16xf32>
    %582 = arith.select %580, %578, %581 : vector<4x16xi1>, vector<4x16xf32>
    %583 = tpu.concatenate %539, %531, %547, %555, %510, %563, %574, %566, %582 in 0 : vector<4x16xf32>, vector<4x16xf32>, vector<4x16xf32>, vector<4x16xf32>, vector<4x16xf32>, vector<4x16xf32>, vector<4x16xf32>, vector<4x16xf32>, vector<4x16xf32> -> vector<36x16xf32>
    %cst_244 = arith.constant dense<0.000000e+00> : vector<4x16xf32>
    %584 = tpu.matmul %29, %583, %cst_244 {dimension_numbers = #tpu.dot_dimension_numbers<[1], [0], [0], [1], [0, 0, 1, 1], [], []>} : vector<4x36xf32>, vector<36x16xf32>, vector<4x16xf32> -> vector<4x16xf32>
    %585 = vector.broadcast %30 : vector<4x1xf32> to vector<4x16xf32>
    %586 = arith.addf %584, %585 : vector<4x16xf32>
    %cst_245 = arith.constant 0.000000e+00 : f32
    %587 = vector.broadcast %cst_245 : f32 to vector<4x16xf32>
    %588 = arith.maximumf %586, %587 : vector<4x16xf32>
    %cst_246 = arith.constant dense<0.000000e+00> : vector<4x64xf32>
    %589 = tpu.matmul %588, %38, %cst_246 {dimension_numbers = #tpu.dot_dimension_numbers<[1], [0], [0], [1], [0, 0, 1, 1], [], []>} : vector<4x16xf32>, vector<16x64xf32>, vector<4x64xf32> -> vector<4x64xf32>
    %590 = arith.subf %499, %589 : vector<4x64xf32>
    %cst_247 = arith.constant dense<0.000000e+00> : vector<4x256xf32>
    %591 = tpu.matmul %590, %37, %cst_247 {dimension_numbers = #tpu.dot_dimension_numbers<[1], [0], [0], [1], [0, 0, 1, 1], [], []>} : vector<4x64xf32>, vector<64x256xf32>, vector<4x256xf32> -> vector<4x256xf32>
    %cst_248 = arith.constant 0.000000e+00 : f32
    %592 = vector.broadcast %cst_248 : f32 to vector<4x1xf32>
    %593 = vector.extract_strided_slice %588 {offsets = [0, 1], sizes = [4, 15], strides = [1, 1]} : vector<4x16xf32> to vector<4x15xf32>
    %594 = tpu.concatenate %593, %592 in 1 : vector<4x15xf32>, vector<4x1xf32> -> vector<4x16xf32>
    %595 = arith.maximumf %588, %594 : vector<4x16xf32>
    %cst_249 = arith.constant 0.000000e+00 : f32
    %596 = vector.broadcast %cst_249 : f32 to vector<4x4xf32>
    %597 = vector.extract_strided_slice %595 {offsets = [0, 4], sizes = [4, 12], strides = [1, 1]} : vector<4x16xf32> to vector<4x12xf32>
    %598 = tpu.concatenate %597, %596 in 1 : vector<4x12xf32>, vector<4x4xf32> -> vector<4x16xf32>
    %599 = arith.maximumf %595, %598 : vector<4x16xf32>
    %cst_250 = arith.constant dense<0.000000e+00> : vector<4x4xf32>
    %600 = tpu.matmul %599, %43, %cst_250 {dimension_numbers = #tpu.dot_dimension_numbers<[1], [0], [0], [1], [0, 0, 1, 1], [], []>} : vector<4x16xf32>, vector<16x4xf32>, vector<4x4xf32> -> vector<4x4xf32>
    %601 = tpu.iota {dimensions = array<i32: 1>} : vector<1x4xi32>
    %c2_i32 = arith.constant 2 : i32
    %c0_i32_251 = arith.constant 0 : i32
    %602 = arith.cmpi eq, %c2_i32, %c0_i32_251 : i32
    %c1_i32_252 = arith.constant 1 : i32
    %603 = arith.select %602, %c1_i32_252, %c2_i32 : i32
    %604 = vector.broadcast %603 : i32 to vector<1x4xi32>
    %605 = arith.remsi %601, %604 : vector<1x4xi32>
    %c0_i32_253 = arith.constant 0 : i32
    %606 = vector.broadcast %c0_i32_253 : i32 to vector<1x4xi32>
    %607 = arith.cmpi ne, %605, %606 : vector<1x4xi32>
    %c0_i32_254 = arith.constant 0 : i32
    %608 = vector.broadcast %c0_i32_254 : i32 to vector<1x4xi32>
    %609 = arith.cmpi slt, %605, %608 : vector<1x4xi32>
    %c0_i32_255 = arith.constant 0 : i32
    %610 = arith.cmpi slt, %603, %c0_i32_255 : i32
    %611 = vector.broadcast %610 : i1 to vector<1x4xi1>
    %612 = vector.broadcast %611 : vector<1x4xi1> to vector<1x4xi1>
    %613 = arith.xori %609, %612 : vector<1x4xi1>
    %614 = arith.andi %613, %607 : vector<1x4xi1>
    %615 = vector.broadcast %603 : i32 to vector<1x4xi32>
    %616 = arith.addi %605, %615 : vector<1x4xi32>
    %617 = arith.select %614, %616, %605 : vector<1x4xi1>, vector<1x4xi32>
    %cst_256 = arith.constant 0.000000e+00 : f32
    %618 = vector.broadcast %cst_256 : f32 to vector<4x1xf32>
    %cst_257 = arith.constant 0.000000e+00 : f32
    %619 = vector.broadcast %cst_257 : f32 to vector<4x2xf32>
    %620 = vector.extract_strided_slice %600 {offsets = [0, 0], sizes = [4, 2], strides = [1, 1]} : vector<4x4xf32> to vector<4x2xf32>
    %621 = tpu.concatenate %619, %620 in 1 : vector<4x2xf32>, vector<4x2xf32> -> vector<4x4xf32>
    %c0_i32_258 = arith.constant 0 : i32
    %622 = vector.broadcast %c0_i32_258 : i32 to vector<1x4xi32>
    %623 = arith.cmpi ne, %617, %622 : vector<1x4xi32>
    %624 = vector.extract_strided_slice %621 {offsets = [0, 0], sizes = [4, 3], strides = [1, 1]} : vector<4x4xf32> to vector<4x3xf32>
    %625 = tpu.concatenate %618, %624 in 1 : vector<4x1xf32>, vector<4x3xf32> -> vector<4x4xf32>
    %cst_259 = arith.constant 0.000000e+00 : f32
    %626 = vector.shape_cast %623 : vector<1x4xi1> to vector<1x4xi1>
    %627 = vector.broadcast %626 : vector<1x4xi1> to vector<4x4xi1>
    %628 = vector.broadcast %cst_259 : f32 to vector<4x4xf32>
    %629 = arith.select %627, %625, %628 : vector<4x4xi1>, vector<4x4xf32>
    %c1_i32_260 = arith.constant 1 : i32
    %630 = vector.broadcast %c1_i32_260 : i32 to vector<1x4xi32>
    %631 = arith.cmpi ne, %617, %630 : vector<1x4xi32>
    %632 = vector.extract_strided_slice %621 {offsets = [0, 1], sizes = [4, 3], strides = [1, 1]} : vector<4x4xf32> to vector<4x3xf32>
    %633 = tpu.concatenate %632, %618 in 1 : vector<4x3xf32>, vector<4x1xf32> -> vector<4x4xf32>
    %cst_261 = arith.constant 0.000000e+00 : f32
    %634 = vector.shape_cast %631 : vector<1x4xi1> to vector<1x4xi1>
    %635 = vector.broadcast %634 : vector<1x4xi1> to vector<4x4xi1>
    %636 = vector.broadcast %cst_261 : f32 to vector<4x4xf32>
    %637 = arith.select %635, %633, %636 : vector<4x4xi1>, vector<4x4xf32>
    %c0_i32_262 = arith.constant 0 : i32
    %638 = vector.broadcast %c0_i32_262 : i32 to vector<1x4xi32>
    %639 = arith.cmpi ne, %617, %638 : vector<1x4xi32>
    %640 = vector.extract_strided_slice %600 {offsets = [0, 0], sizes = [4, 3], strides = [1, 1]} : vector<4x4xf32> to vector<4x3xf32>
    %641 = tpu.concatenate %618, %640 in 1 : vector<4x1xf32>, vector<4x3xf32> -> vector<4x4xf32>
    %cst_263 = arith.constant 0.000000e+00 : f32
    %642 = vector.shape_cast %639 : vector<1x4xi1> to vector<1x4xi1>
    %643 = vector.broadcast %642 : vector<1x4xi1> to vector<4x4xi1>
    %644 = vector.broadcast %cst_263 : f32 to vector<4x4xf32>
    %645 = arith.select %643, %641, %644 : vector<4x4xi1>, vector<4x4xf32>
    %c1_i32_264 = arith.constant 1 : i32
    %646 = vector.broadcast %c1_i32_264 : i32 to vector<1x4xi32>
    %647 = arith.cmpi ne, %617, %646 : vector<1x4xi32>
    %648 = vector.extract_strided_slice %600 {offsets = [0, 1], sizes = [4, 3], strides = [1, 1]} : vector<4x4xf32> to vector<4x3xf32>
    %649 = tpu.concatenate %648, %618 in 1 : vector<4x3xf32>, vector<4x1xf32> -> vector<4x4xf32>
    %cst_265 = arith.constant 0.000000e+00 : f32
    %650 = vector.shape_cast %647 : vector<1x4xi1> to vector<1x4xi1>
    %651 = vector.broadcast %650 : vector<1x4xi1> to vector<4x4xi1>
    %652 = vector.broadcast %cst_265 : f32 to vector<4x4xf32>
    %653 = arith.select %651, %649, %652 : vector<4x4xi1>, vector<4x4xf32>
    %cst_266 = arith.constant 0.000000e+00 : f32
    %654 = vector.broadcast %cst_266 : f32 to vector<4x2xf32>
    %655 = vector.extract_strided_slice %600 {offsets = [0, 2], sizes = [4, 2], strides = [1, 1]} : vector<4x4xf32> to vector<4x2xf32>
    %656 = tpu.concatenate %655, %654 in 1 : vector<4x2xf32>, vector<4x2xf32> -> vector<4x4xf32>
    %c0_i32_267 = arith.constant 0 : i32
    %657 = vector.broadcast %c0_i32_267 : i32 to vector<1x4xi32>
    %658 = arith.cmpi ne, %617, %657 : vector<1x4xi32>
    %659 = vector.extract_strided_slice %656 {offsets = [0, 0], sizes = [4, 3], strides = [1, 1]} : vector<4x4xf32> to vector<4x3xf32>
    %660 = tpu.concatenate %618, %659 in 1 : vector<4x1xf32>, vector<4x3xf32> -> vector<4x4xf32>
    %cst_268 = arith.constant 0.000000e+00 : f32
    %661 = vector.shape_cast %658 : vector<1x4xi1> to vector<1x4xi1>
    %662 = vector.broadcast %661 : vector<1x4xi1> to vector<4x4xi1>
    %663 = vector.broadcast %cst_268 : f32 to vector<4x4xf32>
    %664 = arith.select %662, %660, %663 : vector<4x4xi1>, vector<4x4xf32>
    %c1_i32_269 = arith.constant 1 : i32
    %665 = vector.broadcast %c1_i32_269 : i32 to vector<1x4xi32>
    %666 = arith.cmpi ne, %617, %665 : vector<1x4xi32>
    %667 = vector.extract_strided_slice %656 {offsets = [0, 1], sizes = [4, 3], strides = [1, 1]} : vector<4x4xf32> to vector<4x3xf32>
    %668 = tpu.concatenate %667, %618 in 1 : vector<4x3xf32>, vector<4x1xf32> -> vector<4x4xf32>
    %cst_270 = arith.constant 0.000000e+00 : f32
    %669 = vector.shape_cast %666 : vector<1x4xi1> to vector<1x4xi1>
    %670 = vector.broadcast %669 : vector<1x4xi1> to vector<4x4xi1>
    %671 = vector.broadcast %cst_270 : f32 to vector<4x4xf32>
    %672 = arith.select %670, %668, %671 : vector<4x4xi1>, vector<4x4xf32>
    %673 = tpu.concatenate %629, %621, %637, %645, %600, %653, %664, %656, %672 in 0 : vector<4x4xf32>, vector<4x4xf32>, vector<4x4xf32>, vector<4x4xf32>, vector<4x4xf32>, vector<4x4xf32>, vector<4x4xf32>, vector<4x4xf32>, vector<4x4xf32> -> vector<36x4xf32>
    %cst_271 = arith.constant dense<0.000000e+00> : vector<4x4xf32>
    %674 = tpu.matmul %31, %673, %cst_271 {dimension_numbers = #tpu.dot_dimension_numbers<[1], [0], [0], [1], [0, 0, 1, 1], [], []>} : vector<4x36xf32>, vector<36x4xf32>, vector<4x4xf32> -> vector<4x4xf32>
    %675 = vector.broadcast %32 : vector<4x1xf32> to vector<4x4xf32>
    %676 = arith.addf %674, %675 : vector<4x4xf32>
    %cst_272 = arith.constant 0.000000e+00 : f32
    %677 = vector.broadcast %cst_272 : f32 to vector<4x4xf32>
    %678 = arith.maximumf %676, %677 : vector<4x4xf32>
    %cst_273 = arith.constant dense<0.000000e+00> : vector<4x16xf32>
    %679 = tpu.matmul %678, %39, %cst_273 {dimension_numbers = #tpu.dot_dimension_numbers<[1], [0], [0], [1], [0, 0, 1, 1], [], []>} : vector<4x4xf32>, vector<4x16xf32>, vector<4x16xf32> -> vector<4x16xf32>
    %680 = arith.subf %588, %679 : vector<4x16xf32>
    %cst_274 = arith.constant dense<0.000000e+00> : vector<4x256xf32>
    %681 = tpu.matmul %680, %40, %cst_274 {dimension_numbers = #tpu.dot_dimension_numbers<[1], [0], [0], [1], [0, 0, 1, 1], [], []>} : vector<4x16xf32>, vector<16x256xf32>, vector<4x256xf32> -> vector<4x256xf32>
    %682 = tpu.concatenate %501, %591, %681 in 0 : vector<4x256xf32>, vector<4x256xf32>, vector<4x256xf32> -> vector<12x256xf32>
    %cst_275 = arith.constant dense<0.000000e+00> : vector<16x256xf32>
    %683 = tpu.matmul %33, %682, %cst_275 {dimension_numbers = #tpu.dot_dimension_numbers<[1], [0], [0], [1], [0, 0, 1, 1], [], []>} : vector<16x12xf32>, vector<12x256xf32>, vector<16x256xf32> -> vector<16x256xf32>
    %684 = vector.broadcast %34 : vector<16x1xf32> to vector<16x256xf32>
    %685 = arith.addf %683, %684 : vector<16x256xf32>
    %cst_276 = arith.constant 0.000000e+00 : f32
    %686 = vector.broadcast %cst_276 : f32 to vector<16x256xf32>
    %687 = arith.subf %686, %685 : vector<16x256xf32>
    %688 = math.exp %687 : vector<16x256xf32>
    %cst_277 = arith.constant 1.000000e+00 : f32
    %689 = vector.broadcast %cst_277 : f32 to vector<16x256xf32>
    %690 = arith.addf %689, %688 : vector<16x256xf32>
    %cst_278 = arith.constant 1.000000e+00 : f32
    %691 = vector.broadcast %cst_278 : f32 to vector<16x256xf32>
    %692 = arith.divf %691, %690 : vector<16x256xf32>
    %693 = arith.mulf %407, %692 : vector<16x256xf32>
    %694 = tpu.concatenate %693, %501 in 0 : vector<16x256xf32>, vector<4x256xf32> -> vector<20x256xf32>
    %cst_279 = arith.constant dense<0.000000e+00> : vector<16x256xf32>
    %695 = tpu.matmul %35, %694, %cst_279 {dimension_numbers = #tpu.dot_dimension_numbers<[1], [0], [0], [1], [0, 0, 1, 1], [], []>} : vector<16x20xf32>, vector<20x256xf32>, vector<16x256xf32> -> vector<16x256xf32>
    %696 = vector.broadcast %36 : vector<16x1xf32> to vector<16x256xf32>
    %697 = arith.addf %695, %696 : vector<16x256xf32>
    %c0_280 = arith.constant 0 : index
    %c0_281 = arith.constant 0 : index
    %c0_282 = arith.constant 0 : index
    %698 = vector.load %arg46[%c0_280, %c0_281, %c0_282] : memref<1x16x256xf32, #tpu.memory_space<vmem>>, vector<1x16x256xf32>
    %699 = vector.shape_cast %698 : vector<1x16x256xf32> to vector<16x256xf32>
    %700 = vector.shape_cast %697 : vector<16x256xf32> to vector<1x16x256xf32>
    tpu.vector_store %arg46[%c0_280, %c0_281, %c0_282], %700 {strides = array<i32>} : memref<1x16x256xf32, #tpu.memory_space<vmem>>, vector<1x16x256xf32>,
    return
  }
  func.func @transform_0(%arg0: i32) -> (i32, i32, i32) {
    %c0_i32 = arith.constant 0 : i32
    %c0_i32_0 = arith.constant 0 : i32
    %c0_i32_1 = arith.constant 0 : i32
    return %arg0, %c0_i32, %c0_i32_0 : i32, i32, i32
  }
  func.func @transform_1(%arg0: i32) -> (i32, i32) {
    %c0_i32 = arith.constant 0 : i32
    %c0_i32_0 = arith.constant 0 : i32
    %c0_i32_1 = arith.constant 0 : i32
    return %c0_i32, %c0_i32_0 : i32, i32
  }
  func.func @transform_2(%arg0: i32) -> (i32, i32) {
    %c0_i32 = arith.constant 0 : i32
    %c0_i32_0 = arith.constant 0 : i32
    %c0_i32_1 = arith.constant 0 : i32
    return %c0_i32, %c0_i32_0 : i32, i32
  }
  func.func @transform_3(%arg0: i32) -> (i32, i32) {
    %c0_i32 = arith.constant 0 : i32
    %c0_i32_0 = arith.constant 0 : i32
    %c0_i32_1 = arith.constant 0 : i32
    return %c0_i32, %c0_i32_0 : i32, i32
  }
  func.func @transform_4(%arg0: i32) -> (i32, i32) {
    %c0_i32 = arith.constant 0 : i32
    %c0_i32_0 = arith.constant 0 : i32
    %c0_i32_1 = arith.constant 0 : i32
    return %c0_i32, %c0_i32_0 : i32, i32
  }
  func.func @transform_5(%arg0: i32) -> (i32, i32) {
    %c0_i32 = arith.constant 0 : i32
    %c0_i32_0 = arith.constant 0 : i32
    %c0_i32_1 = arith.constant 0 : i32
    return %c0_i32, %c0_i32_0 : i32, i32
  }
  func.func @transform_6(%arg0: i32) -> (i32, i32) {
    %c0_i32 = arith.constant 0 : i32
    %c0_i32_0 = arith.constant 0 : i32
    %c0_i32_1 = arith.constant 0 : i32
    return %c0_i32, %c0_i32_0 : i32, i32
  }
  func.func @transform_7(%arg0: i32) -> (i32, i32) {
    %c0_i32 = arith.constant 0 : i32
    %c0_i32_0 = arith.constant 0 : i32
    %c0_i32_1 = arith.constant 0 : i32
    return %c0_i32, %c0_i32_0 : i32, i32
  }
  func.func @transform_8(%arg0: i32) -> (i32, i32) {
    %c0_i32 = arith.constant 0 : i32
    %c0_i32_0 = arith.constant 0 : i32
    %c0_i32_1 = arith.constant 0 : i32
    return %c0_i32, %c0_i32_0 : i32, i32
  }
  func.func @transform_9(%arg0: i32) -> (i32, i32) {
    %c0_i32 = arith.constant 0 : i32
    %c0_i32_0 = arith.constant 0 : i32
    %c0_i32_1 = arith.constant 0 : i32
    return %c0_i32, %c0_i32_0 : i32, i32
  }
  func.func @transform_10(%arg0: i32) -> (i32, i32) {
    %c0_i32 = arith.constant 0 : i32
    %c0_i32_0 = arith.constant 0 : i32
    %c0_i32_1 = arith.constant 0 : i32
    return %c0_i32, %c0_i32_0 : i32, i32
  }
  func.func @transform_11(%arg0: i32) -> (i32, i32) {
    %c0_i32 = arith.constant 0 : i32
    %c0_i32_0 = arith.constant 0 : i32
    %c0_i32_1 = arith.constant 0 : i32
    return %c0_i32, %c0_i32_0 : i32, i32
  }
  func.func @transform_12(%arg0: i32) -> (i32, i32) {
    %c0_i32 = arith.constant 0 : i32
    %c0_i32_0 = arith.constant 0 : i32
    %c0_i32_1 = arith.constant 0 : i32
    return %c0_i32, %c0_i32_0 : i32, i32
  }
  func.func @transform_13(%arg0: i32) -> (i32, i32) {
    %c0_i32 = arith.constant 0 : i32
    %c0_i32_0 = arith.constant 0 : i32
    %c0_i32_1 = arith.constant 0 : i32
    return %c0_i32, %c0_i32_0 : i32, i32
  }
  func.func @transform_14(%arg0: i32) -> (i32, i32) {
    %c0_i32 = arith.constant 0 : i32
    %c0_i32_0 = arith.constant 0 : i32
    %c0_i32_1 = arith.constant 0 : i32
    return %c0_i32, %c0_i32_0 : i32, i32
  }
  func.func @transform_15(%arg0: i32) -> (i32, i32) {
    %c0_i32 = arith.constant 0 : i32
    %c0_i32_0 = arith.constant 0 : i32
    %c0_i32_1 = arith.constant 0 : i32
    return %c0_i32, %c0_i32_0 : i32, i32
  }
  func.func @transform_16(%arg0: i32) -> (i32, i32) {
    %c0_i32 = arith.constant 0 : i32
    %c0_i32_0 = arith.constant 0 : i32
    %c0_i32_1 = arith.constant 0 : i32
    return %c0_i32, %c0_i32_0 : i32, i32
  }
  func.func @transform_17(%arg0: i32) -> (i32, i32) {
    %c0_i32 = arith.constant 0 : i32
    %c0_i32_0 = arith.constant 0 : i32
    %c0_i32_1 = arith.constant 0 : i32
    return %c0_i32, %c0_i32_0 : i32, i32
  }
  func.func @transform_18(%arg0: i32) -> (i32, i32) {
    %c0_i32 = arith.constant 0 : i32
    %c0_i32_0 = arith.constant 0 : i32
    %c0_i32_1 = arith.constant 0 : i32
    return %c0_i32, %c0_i32_0 : i32, i32
  }
  func.func @transform_19(%arg0: i32) -> (i32, i32) {
    %c0_i32 = arith.constant 0 : i32
    %c0_i32_0 = arith.constant 0 : i32
    %c0_i32_1 = arith.constant 0 : i32
    return %c0_i32, %c0_i32_0 : i32, i32
  }
  func.func @transform_20(%arg0: i32) -> (i32, i32) {
    %c0_i32 = arith.constant 0 : i32
    %c0_i32_0 = arith.constant 0 : i32
    %c0_i32_1 = arith.constant 0 : i32
    return %c0_i32, %c0_i32_0 : i32, i32
  }
  func.func @transform_21(%arg0: i32) -> (i32, i32) {
    %c0_i32 = arith.constant 0 : i32
    %c0_i32_0 = arith.constant 0 : i32
    %c0_i32_1 = arith.constant 0 : i32
    return %c0_i32, %c0_i32_0 : i32, i32
  }
  func.func @transform_22(%arg0: i32) -> (i32, i32) {
    %c0_i32 = arith.constant 0 : i32
    %c0_i32_0 = arith.constant 0 : i32
    %c0_i32_1 = arith.constant 0 : i32
    return %c0_i32, %c0_i32_0 : i32, i32
  }
  func.func @transform_23(%arg0: i32) -> (i32, i32) {
    %c0_i32 = arith.constant 0 : i32
    %c0_i32_0 = arith.constant 0 : i32
    %c0_i32_1 = arith.constant 0 : i32
    return %c0_i32, %c0_i32_0 : i32, i32
  }
  func.func @transform_24(%arg0: i32) -> (i32, i32) {
    %c0_i32 = arith.constant 0 : i32
    %c0_i32_0 = arith.constant 0 : i32
    %c0_i32_1 = arith.constant 0 : i32
    return %c0_i32, %c0_i32_0 : i32, i32
  }
  func.func @transform_25(%arg0: i32) -> (i32, i32) {
    %c0_i32 = arith.constant 0 : i32
    %c0_i32_0 = arith.constant 0 : i32
    %c0_i32_1 = arith.constant 0 : i32
    return %c0_i32, %c0_i32_0 : i32, i32
  }
  func.func @transform_26(%arg0: i32) -> (i32, i32) {
    %c0_i32 = arith.constant 0 : i32
    %c0_i32_0 = arith.constant 0 : i32
    %c0_i32_1 = arith.constant 0 : i32
    return %c0_i32, %c0_i32_0 : i32, i32
  }
  func.func @transform_27(%arg0: i32) -> (i32, i32) {
    %c0_i32 = arith.constant 0 : i32
    %c0_i32_0 = arith.constant 0 : i32
    %c0_i32_1 = arith.constant 0 : i32
    return %c0_i32, %c0_i32_0 : i32, i32
  }
  func.func @transform_28(%arg0: i32) -> (i32, i32) {
    %c0_i32 = arith.constant 0 : i32
    %c0_i32_0 = arith.constant 0 : i32
    %c0_i32_1 = arith.constant 0 : i32
    return %c0_i32, %c0_i32_0 : i32, i32
  }
  func.func @transform_29(%arg0: i32) -> (i32, i32) {
    %c0_i32 = arith.constant 0 : i32
    %c0_i32_0 = arith.constant 0 : i32
    %c0_i32_1 = arith.constant 0 : i32
    return %c0_i32, %c0_i32_0 : i32, i32
  }
  func.func @transform_30(%arg0: i32) -> (i32, i32) {
    %c0_i32 = arith.constant 0 : i32
    %c0_i32_0 = arith.constant 0 : i32
    %c0_i32_1 = arith.constant 0 : i32
    return %c0_i32, %c0_i32_0 : i32, i32
  }
  func.func @transform_31(%arg0: i32) -> (i32, i32) {
    %c0_i32 = arith.constant 0 : i32
    %c0_i32_0 = arith.constant 0 : i32
    %c0_i32_1 = arith.constant 0 : i32
    return %c0_i32, %c0_i32_0 : i32, i32
  }
  func.func @transform_32(%arg0: i32) -> (i32, i32) {
    %c0_i32 = arith.constant 0 : i32
    %c0_i32_0 = arith.constant 0 : i32
    %c0_i32_1 = arith.constant 0 : i32
    return %c0_i32, %c0_i32_0 : i32, i32
  }
  func.func @transform_33(%arg0: i32) -> (i32, i32) {
    %c0_i32 = arith.constant 0 : i32
    %c0_i32_0 = arith.constant 0 : i32
    %c0_i32_1 = arith.constant 0 : i32
    return %c0_i32, %c0_i32_0 : i32, i32
  }
  func.func @transform_34(%arg0: i32) -> (i32, i32) {
    %c0_i32 = arith.constant 0 : i32
    %c0_i32_0 = arith.constant 0 : i32
    %c0_i32_1 = arith.constant 0 : i32
    return %c0_i32, %c0_i32_0 : i32, i32
  }
  func.func @transform_35(%arg0: i32) -> (i32, i32) {
    %c0_i32 = arith.constant 0 : i32
    %c0_i32_0 = arith.constant 0 : i32
    %c0_i32_1 = arith.constant 0 : i32
    return %c0_i32, %c0_i32_0 : i32, i32
  }
  func.func @transform_36(%arg0: i32) -> (i32, i32) {
    %c0_i32 = arith.constant 0 : i32
    %c0_i32_0 = arith.constant 0 : i32
    %c0_i32_1 = arith.constant 0 : i32
    return %c0_i32, %c0_i32_0 : i32, i32
  }
  func.func @transform_37(%arg0: i32) -> (i32, i32) {
    %c0_i32 = arith.constant 0 : i32
    %c0_i32_0 = arith.constant 0 : i32
    %c0_i32_1 = arith.constant 0 : i32
    return %c0_i32, %c0_i32_0 : i32, i32
  }
  func.func @transform_38(%arg0: i32) -> (i32, i32) {
    %c0_i32 = arith.constant 0 : i32
    %c0_i32_0 = arith.constant 0 : i32
    %c0_i32_1 = arith.constant 0 : i32
    return %c0_i32, %c0_i32_0 : i32, i32
  }
  func.func @transform_39(%arg0: i32) -> (i32, i32) {
    %c0_i32 = arith.constant 0 : i32
    %c0_i32_0 = arith.constant 0 : i32
    %c0_i32_1 = arith.constant 0 : i32
    return %c0_i32, %c0_i32_0 : i32, i32
  }
  func.func @transform_40(%arg0: i32) -> (i32, i32) {
    %c0_i32 = arith.constant 0 : i32
    %c0_i32_0 = arith.constant 0 : i32
    %c0_i32_1 = arith.constant 0 : i32
    return %c0_i32, %c0_i32_0 : i32, i32
  }
  func.func @transform_41(%arg0: i32) -> (i32, i32) {
    %c0_i32 = arith.constant 0 : i32
    %c0_i32_0 = arith.constant 0 : i32
    %c0_i32_1 = arith.constant 0 : i32
    return %c0_i32, %c0_i32_0 : i32, i32
  }
  func.func @transform_42(%arg0: i32) -> (i32, i32) {
    %c0_i32 = arith.constant 0 : i32
    %c0_i32_0 = arith.constant 0 : i32
    %c0_i32_1 = arith.constant 0 : i32
    return %c0_i32, %c0_i32_0 : i32, i32
  }
  func.func @transform_43(%arg0: i32) -> (i32, i32) {
    %c0_i32 = arith.constant 0 : i32
    %c0_i32_0 = arith.constant 0 : i32
    %c0_i32_1 = arith.constant 0 : i32
    return %c0_i32, %c0_i32_0 : i32, i32
  }
  func.func @transform_44(%arg0: i32) -> (i32, i32) {
    %c0_i32 = arith.constant 0 : i32
    %c0_i32_0 = arith.constant 0 : i32
    %c0_i32_1 = arith.constant 0 : i32
    return %c0_i32, %c0_i32_0 : i32, i32
  }
  func.func @transform_45(%arg0: i32) -> (i32, i32, i32) {
    %c0_i32 = arith.constant 0 : i32
    %c0_i32_0 = arith.constant 0 : i32
    %c0_i32_1 = arith.constant 0 : i32
    return %arg0, %c0_i32, %c0_i32_0 : i32, i32, i32
  }
}

</mosaic_0001>

<bundles_post_ra>
// kernel: fdeb_forward.1
= control target key start
LH: loop header
LB: loop body
LE: loop exit
PB: predicated region body
PF: predicated region fallthrough
CT: control target
= control target key end

     0   :  { %s5162_s6 = smov 1   ;;  %s5163_s10 = smov 2   ;;  %s7009_s0 = inlined_call_operand.smem [shape: u32[46], index: -1, kind: input, shape index: {}] }
   0x1   :  { %s5226_s5 = sld [smem:[%s7009_s0]]   ;;  %s5164_s14 = smov 3  }
   0x2   :  { %s5231_s9 = sld [smem:[%s7009_s0 + %s5162_s6]]   ;;  %s5165_s18 = smov 4  }
   0x3   :  { %s5236_s13 = sld [smem:[%s7009_s0 + %s5163_s10]]   ;;  %s5166_s22 = smov 5  }
   0x4   :  { %s5241_s17 = sld [smem:[%s7009_s0 + %s5164_s14]]   ;;  %s5167_s26 = smov 6  }
   0x5   :  { %s5246_s21 = sld [smem:[%s7009_s0 + %s5165_s18]]   ;;  %s5168_s30 = smov 7  }
   0x6   :  { %s5251_s25 = sld [smem:[%s7009_s0 + %s5166_s22]]   ;;  %s5169_s4 = smov 8  }
   0x7   :  { %7043 = sst [smem:[#allocation2_spill]] %s5226_s5  ;;  %s5170_s10 = smov 9  }
   0x8   :  { %7044 = sst [smem:[#allocation3_spill]] %s5231_s9  ;;  %s5171_s15 = smov 10  }
   0x9   :  { %s5256_s29 = sld [smem:[%s7009_s0 + %s5167_s26]]   ;;  %s5172_s20 = smov 11  }
   0xa   :  { %7045 = sst [smem:[#allocation4_spill]] %s5241_s17  ;;  %s5173_s26 = smov 12  }
   0xb   :  { %s5261_s3 = sld [smem:[%s7009_s0 + %s5168_s30]]   ;;  %s5174_s1 = smov 13  }
   0xc   :  { %s5266_s8 = sld [smem:[%s7009_s0 + %s5169_s4]]   ;;  %s5175_s7 = smov 14  }
   0xd   :  { %s5271_s14 = sld [smem:[%s7009_s0 + %s5170_s10]]   ;;  %s5177_s22 = smov 16  }
   0xe   :  { %s5276_s19 = sld [smem:[%s7009_s0 + %s5171_s15]]   ;;  %s5176_s15 = smov 15  }
   0xf   :  { %s5281_s24 = sld [smem:[%s7009_s0 + %s5172_s20]]   ;;  %s5178_s28 = smov 17  }
  0x10   :  { %s5286_s30 = sld [smem:[%s7009_s0 + %s5173_s26]]  }
  0x11   :  { %7046 = sst [smem:[#allocation5_spill]] %s5261_s3 }
  0x12   :  { %7047 = sst [smem:[#allocation6_spill]] %s5266_s8 }
  0x13   :  { %s5291_s6 = sld [smem:[%s7009_s0 + %s5174_s1]]  }
  0x14   :  { %s5296_s12 = sld [smem:[%s7009_s0 + %s5175_s7]]   ;;  %s5179_s7 = smov 18  }
  0x15   :  { %s5301_s20 = sld [smem:[%s7009_s0 + %s5176_s15]]   ;;  %s5180_s15 = smov 19  }
  0x16   :  { %s5306_s27 = sld [smem:[%s7009_s0 + %s5177_s22]]   ;;  %s5181_s22 = smov 20  }
  0x17   :  { %s5311_s4 = sld [smem:[%s7009_s0 + %s5178_s28]]   ;;  %s5182_s28 = smov 21  }
  0x18   :  { %s5316_s17 = sld [smem:[%s7009_s0 + %s5179_s7]]   ;;  %s5183_s7 = smov 22  }
  0x19   :  { %7048 = sst [smem:[#allocation7_spill]] %s5291_s6 }
  0x1a   :  { %7049 = sst [smem:[#allocation8_spill]] %s5296_s12 }
  0x1b   :  { %s5321_s12 = sld [smem:[%s7009_s0 + %s5180_s15]]   ;;  %s5184_s15 = smov 23  }
  0x1c   :  { %7050 = sst [smem:[#allocation9_spill]] %s5306_s27 }
  0x1d   :  { %7051 = sst [smem:[#allocation10_spill]] %s5311_s4 }
  0x1e   :  { %7052 = sst [smem:[#allocation11_spill]] %s5316_s17 }
  0x1f   :  { %s5326_s27 = sld [smem:[%s7009_s0 + %s5181_s22]]   ;;  %s5185_s22 = smov 24  }
  0x20   :  { %s5331_s4 = sld [smem:[%s7009_s0 + %s5182_s28]]   ;;  %s5186_s28 = smov 25  }
  0x21   :  { %7053 = sst [smem:[#allocation12_spill]] %s5321_s12 }
  0x22   :  { %s5336_s17 = sld [smem:[%s7009_s0 + %s5183_s7]]   ;;  %s5187_s7 = smov 26  }
  0x23   :  { %s5341_s12 = sld [smem:[%s7009_s0 + %s5184_s15]]   ;;  %s5188_s15 = smov 27  }
  0x25   :  { %7054 = sst [smem:[#allocation13_spill]] %s5326_s27 }
  0x26   :  { %7055 = sst [smem:[#allocation14_spill]] %s5331_s4 }
  0x27   :  { %s5346_s27 = sld [smem:[%s7009_s0 + %s5185_s22]]   ;;  %s5189_s22 = smov 28  }
  0x28   :  { %7056 = sst [smem:[#allocation15_spill]] %s5336_s17 }
  0x29   :  { %7057 = sst [smem:[#allocation16_spill]] %s5341_s12 }
  0x2a   :  { %s5351_s4 = sld [smem:[%s7009_s0 + %s5186_s28]]   ;;  %s5190_s28 = smov 29  }
  0x2b   :  { %s5356_s17 = sld [smem:[%s7009_s0 + %s5187_s7]]   ;;  %s5191_s7 = smov 30  }
  0x2c   :  { %s5361_s12 = sld [smem:[%s7009_s0 + %s5188_s15]]   ;;  %s5192_s15 = smov 31  }
  0x2d   :  { %7058 = sst [smem:[#allocation17_spill]] %s5346_s27 }
  0x2e   :  { %s5366_s27 = sld [smem:[%s7009_s0 + %s5189_s22]]   ;;  %s5193_s22 = smov 32  }
  0x30   :  { %7059 = sst [smem:[#allocation18_spill]] %s5351_s4 }
  0x31   :  { %7060 = sst [smem:[#allocation19_spill]] %s5356_s17 }
  0x32   :  { %7061 = sst [smem:[#allocation20_spill]] %s5361_s12 }
  0x33   :  { %s5371_s4 = sld [smem:[%s7009_s0 + %s5190_s28]]   ;;  %s5194_s28 = smov 33  }
  0x34   :  { %7062 = sst [smem:[#allocation21_spill]] %s5366_s27 }
  0x35   :  { %s5376_s17 = sld [smem:[%s7009_s0 + %s5191_s7]]   ;;  %s5195_s7 = smov 34  }
  0x36   :  { %s5381_s12 = sld [smem:[%s7009_s0 + %s5192_s15]]   ;;  %s5196_s15 = smov 35  }
  0x37   :  { %s5386_s27 = sld [smem:[%s7009_s0 + %s5193_s22]]   ;;  %s5197_s22 = smov 36  }
  0x39   :  { %7063 = sst [smem:[#allocation22_spill]] %s5371_s4 }
  0x3a   :  { %s5391_s4 = sld [smem:[%s7009_s0 + %s5194_s28]]   ;;  %s5198_s28 = smov 37  }
  0x3b   :  { %7064 = sst [smem:[#allocation23_spill]] %s5376_s17 }
  0x3c   :  { %7065 = sst [smem:[#allocation24_spill]] %s5381_s12 }
  0x3d   :  { %7066 = sst [smem:[#allocation25_spill]] %s5386_s27 }
  0x3e   :  { %s5396_s17 = sld [smem:[%s7009_s0 + %s5195_s7]]   ;;  %s5199_s7 = smov 38  }
  0x3f   :  { %s5401_s12 = sld [smem:[%s7009_s0 + %s5196_s15]]   ;;  %s5200_s15 = smov 39  }
  0x40   :  { %7067 = sst [smem:[#allocation26_spill]] %s5391_s4 }
  0x41   :  { %s5406_s27 = sld [smem:[%s7009_s0 + %s5197_s22]]   ;;  %s5201_s22 = smov 40  }
  0x42   :  { %s5411_s4 = sld [smem:[%s7009_s0 + %s5198_s28]]   ;;  %s5202_s28 = smov 41  }
  0x44   :  { %7068 = sst [smem:[#allocation27_spill]] %s5396_s17 }
  0x45   :  { %7069 = sst [smem:[#allocation28_spill]] %s5401_s12 }
  0x46   :  { %s5416_s17 = sld [smem:[%s7009_s0 + %s5199_s7]]   ;;  %s5203_s7 = smov 42  }
  0x47   :  { %7070 = sst [smem:[#allocation29_spill]] %s5406_s27 }
  0x48   :  { %7071 = sst [smem:[#allocation30_spill]] %s5411_s4 }
  0x49   :  { %s5421_s12 = sld [smem:[%s7009_s0 + %s5200_s15]]   ;;  %s5204_s15 = smov 43  }
  0x4a   :  { %s5426_s27 = sld [smem:[%s7009_s0 + %s5201_s22]]   ;;  %s5205_s22 = smov 44  }
  0x4b   :  { %s5431_s4 = sld [smem:[%s7009_s0 + %s5202_s28]]   ;;  %s5206_s28 = smov 45  }
  0x4c   :  { %7072 = sst [smem:[#allocation31_spill]] %s5416_s17 }
  0x4d   :  { %s5436_s17 = sld [smem:[%s7009_s0 + %s5203_s7]]   ;;  %s5453_s7 = smov 0  }
  0x4f   :  { %7073 = sst [smem:[#allocation32_spill]] %s5421_s12 }
  0x50   :  { %7074 = sst [smem:[#allocation33_spill]] %s5426_s27 }
  0x51   :  { %7075 = sst [smem:[#allocation34_spill]] %s5431_s4 }
  0x52   :  { %s5441_s12 = sld [smem:[%s7009_s0 + %s5204_s15]]  }
  0x53   :  { %s5446_s27 = sld [smem:[%s7009_s0 + %s5205_s22]]  }
  0x54   :  { %s5451_s4 = sld [smem:[%s7009_s0 + %s5206_s28]]  }
  0x55 LB: > { %s7076_s8 = sld [smem:[#allocation6_spill]]  ;;  %s4784_s10 = sadd.s32 4294967295, %s5160_s7   ;;  %s5160_s7 = sphi %s5453_s7, %s101_s7  }
  0x56   : > { %s7077_s6 = sld [smem:[#allocation7_spill]]  ;;  %p4788_p0 = scmp.ge.s32.totalorder %s5160_s7, 1 }
  0x57   : > { %s7078_s3 = sld [smem:[#allocation5_spill]]  ;;  %p1233_p1 = scmp.lt.s32.totalorder %s5160_s7, 3 }
  0x59   : > { %p1234_p2 = pnand %p4788_p0, %p1233_p1 }
  0x5a   : > { %s7079_s5 = sld [smem:[#allocation2_spill]] (!%p1234_p2)  ;;  %p1341_p3 = scmp.lt.s32.totalorder (!%p1234_p2), %s4784_s10, 1 }
  0x5b   : > { %1237 = sbr.rel (%p1234_p2) target bundleno = 5988 (0x1764), region = 200  ;;  %s7080_s9 = sld [smem:[#allocation3_spill]] (!%p1234_p2) }
  0x5c   : > { %s7029_s15 = smov (!%p1234_p2), 112   ;;  %s5209_s16 = smov (!%p1234_p2), 16  }
  0x5d   : > { %s7033_s18 = smov (!%p1234_p2), 127   ;;  %s7030_s22 = smov (!%p1234_p2), 1  }
  0x5e   : > { %s7091_s23 = sld [smem:[#allocation10_spill]] (!%p1234_p2) }
  0x5f   : > { %s7092_s26 = sld [smem:[#allocation12_spill]] (!%p1234_p2) }
  0x60   : > { %v1373_v0 = vld [vmem:[%s5251_s25 + $0x48] sm:$0xff]  ;;  %v5207_v1 = vmov 0   ;;  %s7141_s10 = smov (!%p1341_p3, %s4784_s10), 1  ;;  %v1371_v2 = vld [vmem:[%s5251_s25 + $0x38] sm:$0xff]  ;;  %v1354_v7 = vld [vmem:[%s5246_s21] sm:$0xff]  ;;  %vm1539_vm0 = vcmask 130048  }
  0x61   : > { %5110 = vset.pattern.permute.xlu0 %v5207_v1  ;;  %5111 = vset.pattern.permute.xlu1 %v5207_v1  ;;  %s7028_s0 = sshll.u32 %s7141_s10, 5  ;;  %v1372_v8 = vld [vmem:[%s5251_s25 + $0x40] sm:$0xff]  ;;  %v1370_v9 = vld [vmem:[%s5251_s25 + $0x30] sm:$0xff]  ;;  %v1369_v10 = vld [vmem:[%s5251_s25 + $0x28] sm:$0xff]  ;;  %s7093_s28 = sld [smem:[#allocation8_spill]] }
  0x62   : > { %1636 = vperm.xlu0 %5110, %v1373_v0   ;;  %5112 = vset.pattern.permute.xlu2 %v5207_v1  ;;  %s1345_s11 = scalar_lea.vmem %s7079_s5, %s7028_s0  ;;  %v1355_v11 = vld [vmem:[%s5246_s21 + $0x8] sm:$0xff]  ;;  %v1367_v12 = vld [vmem:[%s5251_s25 + $0x18] sm:$0xff]  ;;  %v1366_v13 = vld [vmem:[%s5251_s25 + $0x10] sm:$0xff]  ;;  %s7094_s1 = sld [smem:[#allocation9_spill]] }
  0x63   : > { %1626 = vperm.xlu1 %5111, %v1371_v2   ;;  %v5469_v3 = vld [vmem:[%s1345_s11 + $0x10] sm:$0xff]  ;;  %v5471_v4 = vld [vmem:[%s1345_s11 + $0x18] sm:$0xff]  ;;  %v5473_v5 = vld [vmem:[%s1345_s11] sm:$0xff]  ;;  %1616 = vperm.xlu2 %5112, %v1369_v10   ;;  %s7095_s2 = sld [smem:[#allocation4_spill]]  ;;  %s5213_s5 = smov 120  }
  0x64   : > { %1683 = vmatpush.msra.mxu2 %v5469_v3  ;;  %1730 = vmatpush.msra.mxu3 %v5471_v4  ;;  %v5477_v6 = vld [vmem:[%s1345_s11 + $0x8] sm:$0xff]  ;;  %v1368_v14 = vld [vmem:[%s5251_s25 + $0x20] sm:$0xff]  ;;  %v1356_v15 = vld [vmem:[%s5246_s21 + $0x10] sm:$0xff]  ;;  %s7096_s11 = sld [smem:[#allocation11_spill]] }
  0x65   : > { %1557 = vmatpush.msra.mxu0 %v5469_v3  ;;  %1577 = vmatpush.msra.mxu1 %v5471_v4  ;;  %v1364_v16 = vld [vmem:[%s5251_s25] sm:$0xff]  ;;  %v1365_v17 = vld [vmem:[%s5251_s25 + $0x8] sm:$0xff]  ;;  %v1357_v18 = vld [vmem:[%s5246_s21 + $0x18] sm:$0xff]  ;;  %s7098_s0 = sld [smem:[#allocation13_spill]] }
  0x66   : > { %1684 = vmatpush.msra.mxu2 %v5473_v5  ;;  %1731 = vmatpush.msra.mxu3 %v5477_v6  ;;  %v1358_v19 = vld [vmem:[%s5246_s21 + $0x20] sm:$0xff]  ;;  %v1359_v20 = vld [vmem:[%s5246_s21 + $0x28] sm:$0xff]  ;;  %v1360_v22 = vld [vmem:[%s5246_s21 + $0x30] sm:$0xff] }
  0x67   : > { %4795 = vmatmul.msk.f32.vlgmr.msra.gmra.mxu2 %vm1539_vm0, %v1354_v7  ;;  %4805 = vmatmul.msk.f32.vlgmr.msra.gmra.mxu3 %vm1539_vm0, %v1354_v7  ;;  %v1377_v21 = vld [vmem:[%s7078_s3 + $0x8] sm:$0xff]  ;;  %v1361_v23 = vld [vmem:[%s5246_s21 + $0x38] sm:$0xff]  ;;  %v1362_v24 = vld [vmem:[%s5246_s21 + $0x40] sm:$0xff] }
  0x68   : > { %1558 = vmatpush.msra.mxu0 %v5473_v5  ;;  %1578 = vmatpush.msra.mxu1 %v5477_v6  ;;  %v1363_v25 = vld [vmem:[%s5246_s21 + $0x48] sm:$0xff]  ;;  %v1376_v26 = vld [vmem:[%s7078_s3] sm:$0xff]  ;;  %s5212_s3 = smov 8  }
  0x69   : > { %v1351_v42 = vld [vmem:[%s7080_s9] sm:$0xff]  ;;  %s7126_s9 = sld [smem:[#allocation28_spill]] }
  0x6a   : > { %1631 = vperm.xlu0 %5110, %v1372_v8   ;;  %4793 = vmatmul.msk.f32.vlgmr.msra.gmra.mxu0 %vm1539_vm0, %v1351_v42 }
  0x6b   : > { %1621 = vperm.xlu1 %5111, %v1370_v9   ;;  %1611 = vperm.xlu2 %5112, %v1368_v14  }
  0x6c   : > { %4794 = vmatmul.msk.f32.vlgmr.msra.gmra.mxu1 %vm1539_vm0, %v1351_v42 }
  0x6f   : > { %4796 = vmatmul.msk.f32.gmra.mxu2 %vm1539_vm0, %v1355_v11  ;;  %4806 = vmatmul.msk.f32.gmra.mxu3 %vm1539_vm0, %v1355_v11 }
  0x72   : > { %1606 = vperm.xlu0 %5110, %v1367_v12  }
  0x73   : > { %1601 = vperm.xlu1 %5111, %v1366_v13   ;;  %1596 = vperm.xlu2 %5112, %v1365_v17  }
  0x77   : > { %4797 = vmatmul.msk.f32.gmra.mxu2 %vm1539_vm0, %v1356_v15  ;;  %4807 = vmatmul.msk.f32.gmra.mxu3 %vm1539_vm0, %v1356_v15 }
  0x7a   : > { %1591 = vperm.xlu0 %5110, %v1364_v16  }
  0x7b   : > { %1830 = vperm.xlu1 %5111, %v1377_v21   ;;  %1825 = vperm.xlu2 %5112, %v1376_v26  }
  0x7f   : > { %4798 = vmatmul.msk.f32.gmra.mxu2 %vm1539_vm0, %v1357_v18  ;;  %4808 = vmatmul.msk.f32.gmra.mxu3 %vm1539_vm0, %v1357_v18 }
  0x87   : > { %4799 = vmatmul.msk.f32.gmra.mxu2 %vm1539_vm0, %v1358_v19  ;;  %4809 = vmatmul.msk.f32.gmra.mxu3 %vm1539_vm0, %v1358_v19 }
  0x8f   : > { %4800 = vmatmul.msk.f32.gmra.mxu2 %vm1539_vm0, %v1359_v20  ;;  %4810 = vmatmul.msk.f32.gmra.mxu3 %vm1539_vm0, %v1359_v20 }
  0x97   : > { %4801 = vmatmul.msk.f32.gmra.mxu2 %vm1539_vm0, %v1360_v22  ;;  %4811 = vmatmul.msk.f32.gmra.mxu3 %vm1539_vm0, %v1360_v22 }
  0x9f   : > { %4802 = vmatmul.msk.f32.gmra.mxu2 %vm1539_vm0, %v1361_v23  ;;  %4812 = vmatmul.msk.f32.gmra.mxu3 %vm1539_vm0, %v1361_v23 }
  0xa7   : > { %4803 = vmatmul.msk.f32.gmra.mxu2 %vm1539_vm0, %v1362_v24  ;;  %4813 = vmatmul.msk.f32.gmra.mxu3 %vm1539_vm0, %v1362_v24 }
  0xaf   : > { %4804 = vmatmul.msk.f32.gmra.mxu2 %vm1539_vm0, %v1363_v25  ;;  %4814 = vmatmul.msk.f32.gmra.mxu3 %vm1539_vm0, %v1363_v25 }
  0xbd   : > { %v1617_v46 = vpop.permute.xlu2 %1616 }
  0xc5   : > { %v1612_v52 = vpop.permute.xlu2 %1611 }
  0xcd   : > { %v1597_v23 = vpop.permute.xlu2 %1596 }
  0xd4   : > { %v1637_v41 = vpop.permute.xlu0 %1636 }
  0xd5   : > { %v1627_v45 = vpop.permute.xlu1 %1626 }
  0xdc   : > { %v1632_v47 = vpop.permute.xlu0 %1631 }
  0xdd   : > { %v1622_v50 = vpop.permute.xlu1 %1621 }
  0xe4   : > { %v1607_v58 = vpop.permute.xlu0 %1606 }
  0xe5   : > { %v1602_v16 = vpop.permute.xlu1 %1601 }
  0xea   : > { %v5525_v27 = vpop.f32.mrf.mxu2  ;;  %v5527_v28 = vpop.f32.mrf.mxu3 }
  0xf2   : > { %v5529_v29 = vpop.f32.mrf.mxu2  ;;  %v5531_v30 = vpop.f32.mrf.mxu3 }
  0xfa   : > { %v5533_v31 = vpop.f32.mrf.mxu2  ;;  %v5535_v32 = vpop.f32.mrf.mxu3 }
 0x102   : > { %v1695_v33 = vpop.f32.mrf.mxu2  ;;  %v5537_v34 = vpop.f32.mrf.mxu3 }
 0x103   : > { %v1696_v20 = vadd.f32 %v1695_v33, %v1607_v58  ;;  %v1743_v24 = vadd.f32 %v5537_v34, %v1607_v58  ;;  %v1740_v33 = vadd.f32 %v5535_v32, %v1602_v16  ;;  %v1690_v34 = vadd.f32 %v5529_v29, %v1597_v23 }
 0x105   : > { %v1789_v42 = vmul.f32 0.05, %v1696_v20  ;;  %vm1769_vm13 = vcmp.ge.f32.partialorder %v1696_v20, 0.0  ;;  %vm1770_vm14 = vcmp.ge.f32.partialorder %v1743_v24, 0.0 }
 0x10a   : > { %v1698_v35 = vpop.f32.mrf.mxu2  ;;  %v1745_v36 = vpop.f32.mrf.mxu3 }
 0x10b   : > { %v1699_v13 = vadd.f32 %v1698_v35, %v1612_v52  ;;  %v1746_v17 = vadd.f32 %v1745_v36, %v1612_v52  ;;  %v1693_v35 = vadd.f32 %v5533_v31, %v1602_v16  ;;  %v1737_v31 = vadd.f32 %v5531_v30, %v1597_v23 }
 0x10c   : > { %v1785_v30 = vmul.f32 0.05, %v1690_v34 }
 0x10d   : > { %vm1771_vm11 = vcmp.ge.f32.partialorder %v1699_v13, 0.0  ;;  %vm1772_vm12 = vcmp.ge.f32.partialorder %v1746_v17, 0.0  ;;  %vm1767_vm15 = vcmp.ge.f32.partialorder %v1693_v35, 0.0 }
 0x112   : > { %v1701_v37 = vpop.f32.mrf.mxu2  ;;  %v1748_v38 = vpop.f32.mrf.mxu3 }
 0x113   : > { %v1702_v7 = vadd.f32 %v1701_v37, %v1617_v46  ;;  %v1749_v10 = vadd.f32 %v1748_v38, %v1617_v46  ;;  %v1791_v37 = vmul.f32 0.05, %v1699_v13  ;;  %v1592_v38 = vpop.permute.xlu0 %1591  ;;  %v1787_v46 = vmul.f32 0.05, %v1693_v35 }
 0x115   : > { %v1793_v22 = vmul.f32 0.05, %v1702_v7  ;;  %vm1773_vm9 = vcmp.ge.f32.partialorder %v1702_v7, 0.0  ;;  %v1794_v26 = vmul.f32 0.05, %v1749_v10  ;;  %vm1774_vm10 = vcmp.ge.f32.partialorder %v1749_v10, 0.0 }
 0x116   : > { %v1811_v32 = vsel %vm1771_vm11, %v1699_v13, %v1791_v37  ;;  %v1382_v37 = vld [vmem:[%s5271_s14] sm:$0xff]  ;;  %vm1972_vm11 = vcmask 1039360  }
 0x11a   : > { %v1704_v39 = vpop.f32.mrf.mxu2  ;;  %v1751_v40 = vpop.f32.mrf.mxu3 }
 0x11b   : > { %v1705_v59 = vadd.f32 %v1704_v39, %v1622_v50  ;;  %v1752_v62 = vadd.f32 %v1751_v40, %v1622_v50  ;;  %v1792_v40 = vmul.f32 0.05, %v1746_v17 }
 0x11d   : > { %v1795_v15 = vmul.f32 0.05, %v1705_v59  ;;  %vm1775_vm7 = vcmp.ge.f32.partialorder %v1705_v59, 0.0  ;;  %v1796_v19 = vmul.f32 0.05, %v1752_v62  ;;  %vm1776_vm8 = vcmp.ge.f32.partialorder %v1752_v62, 0.0 }
 0x11e   : > { %v1812_v29 = vsel %vm1772_vm12, %v1746_v17, %v1792_v40  ;;  %v1402_v40 = vld [vmem:[%s5281_s24 + $0x40] sm:$0xff]  ;;  %vm5714_vm12 = vmneg %vm1539_vm0 }
 0x11f   : > { %v1815_v36 = vsel %vm1775_vm7, %v1705_v59, %v1795_v15  ;;  %v1816_v39 = vsel %vm1776_vm8, %v1752_v62, %v1796_v19  ;;  %v1375_v59 = vld [vmem:[%s5256_s29 + $0x8] sm:$0xff]  ;;  %v1826_v62 = vpop.permute.xlu2 %1825  ;;  %vm2037_vm7 = vcmask 916480  }
 0x122   : > { %v1707_v43 = vpop.f32.mrf.mxu2  ;;  %v1754_v44 = vpop.f32.mrf.mxu3 }
 0x123   : > { %v1708_v55 = vadd.f32 %v1707_v43, %v1627_v45  ;;  %v1755_v60 = vadd.f32 %v1754_v44, %v1627_v45  ;;  %v1814_v43 = vsel %vm1774_vm10, %v1749_v10, %v1794_v26  ;;  %v1790_v44 = vmul.f32 0.05, %v1743_v24 }
 0x124   : > { %v1687_v45 = vadd.f32 %v5525_v27, %v1592_v38  ;;  %v1807_v27 = vsel %vm1767_vm15, %v1693_v35, %v1787_v46  ;;  %v1407_v46 = vld [vmem:[%s7077_s6 + $0x8] sm:$0xff] }
 0x125   : > { %v1797_v9 = vmul.f32 0.05, %v1708_v55  ;;  %vm1777_vm5 = vcmp.ge.f32.partialorder %v1708_v55, 0.0  ;;  %v1798_v12 = vmul.f32 0.05, %v1755_v60  ;;  %vm1778_vm6 = vcmp.ge.f32.partialorder %v1755_v60, 0.0 }
 0x126   : > { %v1810_v50 = vsel %vm1770_vm14, %v1743_v24, %v1790_v44  ;;  %v1783_v52 = vmul.f32 0.05, %v1687_v45  ;;  %v1396_v44 = vld [vmem:[%s5281_s24 + $0x10] sm:$0xff] }
 0x127   : > { %v1817_v21 = vsel %vm1777_vm5, %v1708_v55, %v1797_v9  ;;  %v1818_v25 = vsel %vm1778_vm6, %v1755_v60, %v1798_v12  ;;  %vm1833_vm6 = vcmask 654336   ;;  %v5557_v60 = vpop.f32.mrf.mxu1 }
 0x12a   : > { %v1710_v48 = vpop.f32.mrf.mxu2  ;;  %v1757_v49 = vpop.f32.mrf.mxu3 }
 0x12b   : > { %v1711_v51 = vadd.f32 %v1710_v48, %v1632_v47  ;;  %v1758_v53 = vadd.f32 %v1757_v49, %v1632_v47  ;;  %v1734_v47 = vadd.f32 %v5527_v28, %v1592_v38  ;;  %v1788_v48 = vmul.f32 0.05, %v1740_v33  ;;  %v1383_v38 = vld [vmem:[%s5271_s14 + $0x8] sm:$0xff] }
 0x12c   : > { %v1809_v49 = vsel %vm1769_vm13, %v1696_v20, %v1789_v42  ;;  %v1399_v42 = vld [vmem:[%s5281_s24 + $0x28] sm:$0xff] }
 0x12d   : > { %v1799_v0 = vmul.f32 0.05, %v1711_v51  ;;  %vm1779_vm3 = vcmp.ge.f32.partialorder %v1711_v51, 0.0  ;;  %v1800_v2 = vmul.f32 0.05, %v1758_v53  ;;  %vm1780_vm4 = vcmp.ge.f32.partialorder %v1758_v53, 0.0 }
 0x12e   : > { %v1784_v28 = vmul.f32 0.05, %v1734_v47  ;;  %vm1764_vm5 = vcmp.ge.f32.partialorder %v1734_v47, 0.0 }
 0x12f   : > { %v1819_v14 = vsel %vm1779_vm3, %v1711_v51, %v1799_v0  ;;  %v1820_v18 = vsel %vm1780_vm4, %v1758_v53, %v1800_v2  ;;  %v1786_v51 = vmul.f32 0.05, %v1737_v31  ;;  %vm1766_vm3 = vcmp.ge.f32.partialorder %v1737_v31, 0.0  ;;  %v1831_v2 = vpop.permute.xlu1 %1830 }
 0x130   : > { %vm1763_vm4 = vcmp.ge.f32.partialorder %v1687_v45, 0.0  ;;  %v1804_v58 = vsel %vm1764_vm5, %v1734_v47, %v1784_v28 }
 0x131   : > { %v1806_v55 = vsel %vm1766_vm3, %v1737_v31, %v1786_v51  ;;  %v1394_v31 = vld [vmem:[%s5281_s24] sm:$0xff] }
 0x132   : > { %v1713_v54 = vpop.f32.mrf.mxu2  ;;  %v1760_v57 = vpop.f32.mrf.mxu3 }
 0x133   : > { %v1714_v56 = vadd.f32 %v1713_v54, %v1637_v41  ;;  %v1761_v61 = vadd.f32 %v1760_v57, %v1637_v41  ;;  %v1813_v41 = vsel %vm1773_vm9, %v1702_v7, %v1793_v22  ;;  %v1803_v57 = vsel %vm1763_vm4, %v1687_v45, %v1783_v52  ;;  %v1406_v45 = vld [vmem:[%s7077_s6] sm:$0xff]  ;;  %s7109_s6 = sld [smem:[#allocation31_spill]] }
 0x134   : > { %vm1945_vm9 = vcmask 7168  }
 0x135   : > { %vm1781_vm1 = vcmp.ge.f32.partialorder %v1714_v56, 0.0  ;;  %v1801_v63 = vmul.f32 0.05, %v1714_v56  ;;  %vm1782_vm2 = vcmp.ge.f32.partialorder %v1761_v61, 0.0  ;;  %v1802_v1 = vmul.f32 0.05, %v1761_v61 }
 0x137   : > { %v1821_v8 = vsel %vm1781_vm1, %v1714_v56, %v1801_v63  ;;  %v1822_v11 = vsel %vm1782_vm2, %v1761_v61, %v1802_v1  ;;  %vm1768_vm1 = vcmp.ge.f32.partialorder %v1740_v33, 0.0  ;;  %vm1765_vm2 = vcmp.ge.f32.partialorder %v1690_v34, 0.0  ;;  %v1374_v56 = vld [vmem:[%s5256_s29] sm:$0xff]  ;;  %v5559_v61 = vpop.f32.mrf.mxu0 }
 0x138   : > { %1846 = vmatpush.msrb.mxu0 %v1821_v8  ;;  %1869 = vmatpush.msrb.mxu1 %v1822_v11  ;;  %v1808_v53 = vsel %vm1768_vm1, %v1740_v33, %v1788_v48  ;;  %v1805_v54 = vsel %vm1765_vm2, %v1690_v34, %v1785_v30  ;;  %v1400_v33 = vld [vmem:[%s5281_s24 + $0x30] sm:$0xff]  ;;  %v1397_v34 = vld [vmem:[%s5281_s24 + $0x18] sm:$0xff] }
 0x13a   : > { %1847 = vmatpush.msrb.mxu0 %v1819_v14  ;;  %1870 = vmatpush.msrb.mxu1 %v1820_v18 }
 0x13c   : > { %1848 = vmatpush.msrb.mxu0 %v1817_v21  ;;  %1871 = vmatpush.msrb.mxu1 %v1818_v25 }
 0x13e   : > { %1849 = vmatpush.msrb.mxu0 %v1815_v36  ;;  %1872 = vmatpush.msrb.mxu1 %v1816_v39  ;;  %v1403_v36 = vld [vmem:[%s5281_s24 + $0x48] sm:$0xff]  ;;  %v1401_v39 = vld [vmem:[%s5281_s24 + $0x38] sm:$0xff] }
 0x140   : > { %1850 = vmatpush.msrb.mxu0 %v1813_v41  ;;  %1873 = vmatpush.msrb.mxu1 %v1814_v43  ;;  %v1398_v41 = vld [vmem:[%s5281_s24 + $0x20] sm:$0xff]  ;;  %v1395_v43 = vld [vmem:[%s5281_s24 + $0x8] sm:$0xff] }
 0x142   : > { %1851 = vmatpush.msrb.mxu0 %v1811_v32  ;;  %1874 = vmatpush.msrb.mxu1 %v1812_v29  ;;  %v1886_v29 = vlaneseq }
 0x144   : > { %1852 = vmatpush.msrb.mxu0 %v1809_v49  ;;  %1875 = vmatpush.msrb.mxu1 %v1810_v50  ;;  %v5669_v30 = vand.u32 127, %v1886_v29 }
 0x146   : > { %1853 = vmatpush.msrb.mxu0 %v1807_v27  ;;  %1876 = vmatpush.msrb.mxu1 %v1808_v53  ;;  %v1893_v51 = vand.u32 15, %v5669_v30 }
 0x148   : > { %1854 = vmatpush.msrb.mxu0 %v1805_v54  ;;  %1877 = vmatpush.msrb.mxu1 %v1806_v55  ;;  %vm5674_vm8 = vcmp.ne.s32.totalorder %v1893_v51, 0  ;;  %vm5682_vm10 = vcmp.ne.s32.totalorder %v1893_v51, 15 }
 0x14a   : > { %1855 = vmatpush.msrb.mxu0 %v1803_v57  ;;  %1878 = vmatpush.msrb.mxu1 %v1804_v58 }
 0x14b   : > { %4815 = vmatmul.msk.f32.vlgmr.msrb.gmra.mxu0 %vm1833_vm6, %v1374_v56  ;;  %4817 = vmatmul.msk.f32.vlgmr.msrb.gmra.mxu1 %vm1833_vm6, %v1374_v56 }
 0x153   : > { %4816 = vmatmul.msk.f32.gmra.mxu0 %vm1833_vm6, %v1375_v59  ;;  %4818 = vmatmul.msk.f32.gmra.mxu1 %vm1833_vm6, %v1375_v59 }
 0x1c8   : > { %v1857_v63 = vpop.f32.mrf.mxu0  ;;  %v1880_v1 = vpop.f32.mrf.mxu1 }
 0x1c9   : > { %v5561_v0 = vadd.f32 %v1857_v63, %v1826_v62  ;;  %v5575_v11 = vadd.f32 %v1880_v1, %v1826_v62 }
 0x1cb   : > { %2029 = vrot.lane.b32.xlu2 %v5561_v0, %s7029_s15 }
 0x1d0   : > { %v1860_v7 = vpop.f32.mrf.mxu0  ;;  %v1883_v9 = vpop.f32.mrf.mxu1 }
 0x1d1   : > { %v5565_v8 = vadd.f32 %v1860_v7, %v1831_v2  ;;  %v5567_v10 = vadd.f32 %v1883_v9, %v1831_v2 }
 0x1d3   : > { %2033 = vrot.lane.b32.xlu0 %v5565_v8, %s7029_s15  ;;  %2035 = vrot.lane.b32.xlu1 %v5567_v10, %s7029_s15 }
 0x1d4   : > { %1923 = vrot.lane.b32.xlu2 %v5567_v10, %s5209_s16 }
 0x1db   : > { %2031 = vrot.lane.b32.xlu0 %v5575_v11, %s7029_s15  ;;  %1919 = vrot.lane.b32.xlu1 %v5575_v11, %s5209_s16 }
 0x1dc   : > { %2015 = vrot.lane.b32.xlu2 %v5567_v10, %s7033_s18 }
 0x1e3   : > { %1917 = vrot.lane.b32.xlu0 %v5561_v0, %s5209_s16  ;;  %1921 = vrot.lane.b32.xlu1 %v5565_v8, %s5209_s16 }
 0x1e4   : > { %1993 = vrot.lane.b32.xlu2 %v5565_v8, %s7030_s22 }
 0x1eb   : > { %2009 = vrot.lane.b32.xlu0 %v5561_v0, %s7033_s18  ;;  %2011 = vrot.lane.b32.xlu1 %v5575_v11, %s7033_s18 }
 0x1f3   : > { %1989 = vrot.lane.b32.xlu0 %v5561_v0, %s7030_s22  ;;  %2013 = vrot.lane.b32.xlu1 %v5565_v8, %s7033_s18 }
 0x225   : > { %v2030_v15 = vpop.permute.xlu2 %2029 }
 0x22e   : > { %v1924_v24 = vpop.permute.xlu2 %1923 }
 0x236   : > { %v5662_v32 = vpop.permute.xlu2 %2015 }
 0x23e   : > { %v5665_v47 = vpop.permute.xlu2 %1993 }
 0x23f   : > { %v2004_v7 = vsel %vm1945_vm9, 0.0, %v5665_v47 }
 0x245   : > { %v2034_v12 = vpop.permute.xlu0 %2033  ;;  %v5597_v13 = vpop.permute.xlu1 %2035 }
 0x246   : > { %v2039_v14 = vsel %vm2037_vm7, %v2034_v12, %v5597_v13  ;;  %v2045_v25 = vsel %vm2037_vm7, %v5597_v13, 0.0 }
 0x247   : > { %2104 = vmatpush.msra.mxu0 %v2039_v14 }
 0x24d   : > { %v5601_v16 = vpop.permute.xlu0 %2031  ;;  %v1920_v19 = vpop.permute.xlu1 %1919 }
 0x24e   : > { %v2044_v17 = vsel %vm2037_vm7, %v5601_v16, 0.0  ;;  %v2038_v18 = vsel %vm2037_vm7, %v2030_v15, %v5601_v16 }
 0x24f   : > { %2050 = vrot.lane.b32.xlu1 %v2044_v17, %s7030_s22  ;;  %2048 = vrot.lane.b32.xlu0 %v2038_v18, %s7030_s22 }
 0x250   : > { %2105 = vmatpush.msra.mxu0 %v2038_v18 }
 0x255   : > { %v5609_v20 = vpop.permute.xlu0 %1917  ;;  %v5621_v23 = vpop.permute.xlu1 %1921 }
 0x256   : > { %v1931_v21 = vsel %vm1539_vm0, 0.0, %v5609_v20  ;;  %v5615_v22 = vsel %vm1539_vm0, %v5609_v20, %v1920_v19  ;;  %v5629_v26 = vsel %vm1539_vm0, %v5621_v23, %v1924_v24  ;;  %v1932_v35 = vsel %vm1539_vm0, 0.0, %v5621_v23 }
 0x257   : > { %1964 = vrot.lane.b32.xlu2 %v1931_v21, %s7033_s18  ;;  %2068 = vrot.lane.b32.xlu1 %v2038_v18, %s7033_s18  ;;  %v1888_v18 = vadd.s32 128, %v5669_v30 }
 0x258   : > { %1966 = vrot.lane.b32.xlu0 %v5615_v22, %s7033_s18 }
 0x25d   : > { %v2010_v48 = vpop.permute.xlu0 %2009  ;;  %v5667_v49 = vpop.permute.xlu1 %2011 }
 0x25e   : > { %v2017_v63 = vsel %vm1972_vm11, %v2010_v48, %v5667_v49 }
 0x25f   : > { %2052 = vrot.lane.b32.xlu2 %v2039_v14, %s7030_s22  ;;  %2054 = vrot.lane.b32.xlu1 %v2045_v25, %s7030_s22 }
 0x260   : > { %1970 = vrot.lane.b32.xlu0 %v5629_v26, %s7033_s18 }
 0x265   : > { %v5672_v27 = vpop.permute.xlu0 %1989  ;;  %v2014_v53 = vpop.permute.xlu1 %2013 }
 0x266   : > { %v2018_v59 = vsel %vm1972_vm11, %v2014_v53, %v5662_v32  ;;  %v2003_v9 = vsel %vm1945_vm9, 0.0, %v5672_v27 }
 0x267   : > { %2070 = vrot.lane.b32.xlu2 %v2044_v17, %s7033_s18  ;;  %2072 = vrot.lane.b32.xlu1 %v2039_v14, %s7033_s18 }
 0x268   : > { %1941 = vrot.lane.b32.xlu0 %v1932_v35, %s7030_s22 }
 0x26f   : > { %1968 = vrot.lane.b32.xlu2 %v1932_v35, %s7033_s18  ;;  %1995 = vrot.lane.b32.xlu1 %v5567_v10, %s7030_s22 }
 0x270   : > { %1937 = vrot.lane.b32.xlu0 %v1931_v21, %s7030_s22 }
 0x277   : > { %2074 = vrot.lane.b32.xlu2 %v2045_v25, %s7033_s18  ;;  %1939 = vrot.lane.b32.xlu1 %v5615_v22, %s7030_s22 }
 0x278   : > { %1943 = vrot.lane.b32.xlu0 %v5629_v26, %s7030_s22 }
 0x27f   : > { %1991 = vrot.lane.b32.xlu2 %v5575_v11, %s7030_s22  ;;  %2296 = vperm.xlu1 %5111, %v1403_v36   ;;  %v1900_v36 = vand.u32 15, %v1888_v18 }
 0x280   : > { %2090 = vperm.xlu0 %5110, %v1382_v37  }
 0x281   : > { %vm5739_vm13 = vcmp.ne.s32.totalorder %v1900_v36, 0  ;;  %vm5752_vm14 = vcmp.ne.s32.totalorder %v1900_v36, 15 }
 0x287   : > { %2095 = vperm.xlu2 %5112, %v1383_v38   ;;  %2281 = vperm.xlu1 %5111, %v1400_v33  }
 0x288   : > { %2286 = vperm.xlu0 %5110, %v1401_v39   ;;  %v1378_v39 = vld [vmem:[%s7076_s8] sm:$0xff] }
 0x28f   : > { %2291 = vperm.xlu2 %5112, %v1402_v40   ;;  %2266 = vperm.xlu1 %5111, %v1397_v34  }
 0x290   : > { %2271 = vperm.xlu0 %5110, %v1398_v41  }
 0x297   : > { %2276 = vperm.xlu2 %5112, %v1399_v42   ;;  %2251 = vperm.xlu1 %5111, %v1394_v31   ;;  %v2024_v42 = vsel %vm1972_vm11, %v5662_v32, 0.0 }
 0x298   : > { %2256 = vperm.xlu0 %5110, %v1395_v43   ;;  %v2023_v43 = vsel %vm1972_vm11, %v5667_v49, 0.0 }
 0x29f   : > { %2261 = vperm.xlu2 %5112, %v1396_v44  }
 0x2a0   : > { %2485 = vperm.xlu0 %5110, %v1406_v45   ;;  %v1380_v45 = vld [vmem:[%s7076_s8 + $0x10] sm:$0xff] }
 0x2a7   : > { %2490 = vperm.xlu2 %5112, %v1407_v46  }
 0x2b1   : > { %v1965_v50 = vpop.permute.xlu2 %1964 }
 0x2b9   : > { %v2053_v28 = vpop.permute.xlu2 %2052 }
 0x2ba   : > { %v2063_v54 = vsel %vm1945_vm9, 0.0, %v2053_v28 }
 0x2bb   : > { %4819 = vmatpush.msk.msra.mxu0 %vm5674_vm8, %v2063_v54 }
 0x2c1   : > { %v2051_v55 = vpop.permute.xlu1 %2050  ;;  %v2049_v56 = vpop.permute.xlu0 %2048 }
 0x2c2   : > { %v2062_v57 = vsel %vm1945_vm9, 0.0, %v2049_v56  ;;  %v2071_v62 = vpop.permute.xlu2 %2070 }
 0x2c3   : > { %4820 = vmatpush.msk.msra.mxu0 %vm5674_vm8, %v2062_v57  ;;  %v2082_v31 = vsel %vm1972_vm11, %v2071_v62, 0.0 }
 0x2c5   : > { %4821 = vmatpush.msk.msra.mxu0 %vm5682_vm10, %v2018_v59 }
 0x2c7   : > { %4822 = vmatpush.msk.msra.mxu0 %vm5682_vm10, %v2017_v63  ;;  %v1384_v63 = vld [vmem:[%s5276_s19] sm:$0xff] }
 0x2c9   : > { %v2069_v1 = vpop.permute.xlu1 %2068  ;;  %2110 = vmatpush.msra.mxu0 %v5565_v8 }
 0x2ca   : > { %v5697_v2 = vpop.permute.xlu0 %1966  ;;  %v1969_v12 = vpop.permute.xlu2 %1968  ;;  %v2076_v37 = vsel %vm1972_vm11, %v2069_v1, %v2071_v62 }
 0x2cb   : > { %2111 = vmatpush.msra.mxu0 %v5561_v0  ;;  %v1973_v0 = vsel %vm1972_vm11, %v1965_v50, %v5697_v2 }
 0x2cd   : > { %4823 = vmatpush.msk.msra.mxu0 %vm5674_vm8, %v2004_v7 }
 0x2cf   : > { %4824 = vmatpush.msk.msra.mxu0 %vm5674_vm8, %v2003_v9 }
 0x2d1   : > { %v2055_v14 = vpop.permute.xlu1 %2054 }
 0x2d2   : > { %v1971_v15 = vpop.permute.xlu0 %1970  ;;  %v2075_v19 = vpop.permute.xlu2 %2074  ;;  %v2057_v38 = vsel %vm1945_vm9, %v2053_v28, %v2055_v14 }
 0x2d3   : > { %v1974_v8 = vsel %vm1972_vm11, %v1969_v12, %v1971_v15  ;;  %v2083_v41 = vsel %vm1972_vm11, %v2075_v19, 0.0  ;;  %v1980_v48 = vsel %vm1972_vm11, %v1971_v15, 0.0 }
 0x2d4   : > { %4825 = vmatpush.msk.msra.mxu0 %vm5682_vm10, %v1974_v8 }
 0x2d6   : > { %4826 = vmatpush.msk.msra.mxu0 %vm5682_vm10, %v1973_v0 }
 0x2d8   : > { %4828 = vmatpush.msk.msra.mxu0 %vm5714_vm12, %v5621_v23  ;;  %v1379_v23 = vld [vmem:[%s7076_s8 + $0x8] sm:$0xff] }
 0x2d9   : > { %v2073_v21 = vpop.permute.xlu1 %2072 }
 0x2da   : > { %v2077_v24 = vsel %vm1972_vm11, %v2073_v21, %v2075_v19  ;;  %v1942_v25 = vpop.permute.xlu0 %1941  ;;  %4830 = vmatpush.msk.msra.mxu0 %vm5714_vm12, %v5609_v20  ;;  %v1992_v32 = vpop.permute.xlu2 %1991  ;;  %v1387_v19 = vld [vmem:[%s5276_s19 + $0x18] sm:$0xff]  ;;  %v1390_v21 = vld [vmem:[%s5276_s19 + $0x30] sm:$0xff] }
 0x2db   : > { %v1953_v35 = vsel %vm1945_vm9, 0.0, %v1942_v25  ;;  %4833 = vmatpush.msk.msra.mxu1 %vm5682_vm10, %v2077_v24  ;;  %v1997_v29 = vsel %vm1945_vm9, %v5672_v27, %v1992_v32  ;;  %v1391_v24 = vld [vmem:[%s5276_s19 + $0x38] sm:$0xff] }
 0x2dc   : > { %4831 = vmatpush.msk.msra.mxu0 %vm5674_vm8, %v1953_v35  ;;  %v1393_v35 = vld [vmem:[%s5276_s19 + $0x48] sm:$0xff] }
 0x2dd   : > { %4834 = vmatpush.msk.msra.mxu1 %vm5682_vm10, %v2076_v37 }
 0x2de   : > { %4835 = vmatmul.msk.f32.vlgmr.msra.gmra.mxu1 %vm1539_vm0, %v1379_v23 }
 0x2df   : > { %4837 = vmatpush.msk.msrb.mxu1 %vm2037_vm7, %v5597_v13  ;;  %v2056_v13 = vsel %vm1945_vm9, %v2049_v56, %v2051_v55 }
 0x2e1   : > { %4838 = vmatpush.msk.msrb.mxu1 %vm2037_vm7, %v5601_v16  ;;  %v1381_v16 = vld [vmem:[%s7076_s8 + $0x18] sm:$0xff]  ;;  %v1996_v44 = vpop.permute.xlu1 %1995  ;;  %s5217_s8 = smov 126  }
 0x2e2   : > { %v1938_v33 = vpop.permute.xlu0 %1937  ;;  %v1998_v46 = vsel %vm1945_vm9, %v5665_v47, %v1996_v44  ;;  %v2096_v53 = vpop.permute.xlu2 %2095 }
 0x2e3   : > { %4839 = vmatpush.msk.msrb.mxu1 %vm5739_vm13, %v2057_v38  ;;  %v1952_v40 = vsel %vm1945_vm9, 0.0, %v1938_v33 }
 0x2e4   : > { %4832 = vmatpush.msk.msra.mxu0 %vm5674_vm8, %v1952_v40 }
 0x2e5   : > { %4840 = vmatpush.msk.msrb.mxu1 %vm5739_vm13, %v2056_v13  ;;  %2120 = vmatmul.f32.vlgmr.msra.gmra.mxu0 %v1378_v39 }
 0x2e6   : > { %4849 = vmatpush.msk.msrb.mxu0 %vm5752_vm14, %v2083_v41  ;;  %4836 = vmatmul.msk.f32.gmra.mxu1 %vm1539_vm0, %v1381_v16 }
 0x2e7   : > { %4841 = vmatpush.msk.msrb.mxu1 %vm5752_vm14, %v2024_v42 }
 0x2e8   : > { %4850 = vmatpush.msk.msrb.mxu0 %vm5752_vm14, %v2082_v31 }
 0x2e9   : > { %4842 = vmatpush.msk.msrb.mxu1 %vm5752_vm14, %v2023_v43  ;;  %v1940_v47 = vpop.permute.xlu1 %1939 }
 0x2ea   : > { %v1946_v50 = vsel %vm1945_vm9, %v1938_v33, %v1940_v47  ;;  %v5871_v32 = vpop.permute.xlu2 %2291 }
 0x2eb   : > { %2156 = vmatpush.msrb.mxu1 %v5567_v10  ;;  %v1979_v10 = vsel %vm1972_vm11, %v5697_v2, 0.0  ;;  %v1385_v2 = vld [vmem:[%s5276_s19 + $0x8] sm:$0xff] }
 0x2ed   : > { %2157 = vmatpush.msrb.mxu1 %v5575_v11  ;;  %2123 = vmatmul.f32.gmra.mxu0 %v1380_v45  ;;  %v1944_v11 = vpop.permute.xlu0 %1943 }
 0x2ee   : > { %v1947_v49 = vsel %vm1945_vm9, %v1942_v25, %v1944_v11  ;;  %v1392_v25 = vld [vmem:[%s5276_s19 + $0x40] sm:$0xff] }
 0x2ef   : > { %4843 = vmatpush.msk.msrb.mxu1 %vm5739_vm13, %v1998_v46 }
 0x2f1   : > { %4844 = vmatpush.msk.msrb.mxu1 %vm5739_vm13, %v1997_v29  ;;  %v5864_v31 = vpop.permute.xlu1 %2296 }
 0x2f2   : > { %v5879_v11 = vpop.permute.xlu2 %2276 }
 0x2f3   : > { %4845 = vmatpush.msk.msrb.mxu1 %vm5752_vm14, %v1980_v48 }
 0x2f5   : > { %4846 = vmatpush.msk.msrb.mxu1 %vm5752_vm14, %v1979_v10  ;;  %4851 = vmatmul.msk.f32.vlgmr.msrb.gmra.mxu0 %vm1539_vm0, %v1379_v23  ;;  %v2091_v27 = vpop.permute.xlu0 %2090 }
 0x2f7   : > { %2162 = vmatpush.msrb.mxu1 %v5629_v26 }
 0x2f9   : > { %2163 = vmatpush.msrb.mxu1 %v5615_v22  ;;  %v5877_v10 = vpop.permute.xlu1 %2281 }
 0x2fb   : > { %4847 = vmatpush.msk.msrb.mxu1 %vm5739_vm13, %v1947_v49 }
 0x2fd   : > { %4848 = vmatpush.msk.msrb.mxu1 %vm5739_vm13, %v1946_v50  ;;  %4852 = vmatmul.msk.f32.gmra.mxu0 %vm1539_vm0, %v1381_v16  ;;  %v5873_v46 = vpop.permute.xlu0 %2286 }
 0x2fe   : > { %2166 = vmatmul.f32.vlgmr.msrb.gmra.mxu1 %v1378_v39 }
 0x306   : > { %2169 = vmatmul.f32.gmra.mxu1 %v1380_v45  ;;  %v1352_v45 = vld [vmem:[%s5236_s13] sm:$0xff] }
 0x35b   : > { %v2144_v51 = vpop.f32.mrf.mxu1 }
 0x362   : > { %v2121_v26 = vpop.f32.mrf.mxu0 }
 0x363   : > { %v2122_v22 = vadd.f32 %v2121_v26, %v2091_v27  ;;  %v2147_v54 = vpop.f32.mrf.mxu1 }
 0x365   : > { %v2145_v56 = vadd.f32 %v2144_v51, %v2122_v22 }
 0x367   : > { %v5808_v62 = vadd.f32 %v2145_v56, %v5473_v5  ;;  %v1386_v5 = vld [vmem:[%s5276_s19 + $0x10] sm:$0xff] }
 0x36a   : > { %v2124_v28 = vpop.f32.mrf.mxu0 }
 0x36b   : > { %v2125_v55 = vadd.f32 %v2124_v28, %v2096_v53 }
 0x36d   : > { %v2148_v57 = vadd.f32 %v2147_v54, %v2125_v55  ;;  %v5889_v54 = vpop.permute.xlu1 %2266 }
 0x36f   : > { %v5805_v59 = vadd.f32 %v2148_v57, %v5469_v3 }
 0x371   : > { %2217 = vmatpush.msrb.mxu2 %v5805_v59  ;;  %2343 = vmatpush.msra.mxu0 %v5805_v59 }
 0x372   : > { %v2190_v1 = vpop.f32.mrf.mxu0 }
 0x373   : > { %2218 = vmatpush.msrb.mxu2 %v5808_v62  ;;  %2344 = vmatpush.msra.mxu0 %v5808_v62 }
 0x374   : > { %4855 = vmatmul.msk.f32.vlgmr.msra.gmra.mxu0 %vm1539_vm0, %v1384_v63  ;;  %4853 = vmatmul.msk.f32.vlgmr.msrb.gmra.mxu2 %vm1539_vm0, %v1352_v45 }
 0x37a   : > { %v2193_v12 = vpop.f32.mrf.mxu0 }
 0x37b   : > { %v2167_v7 = vpop.f32.mrf.mxu1 }
 0x37c   : > { %4856 = vmatmul.msk.f32.gmra.mxu0 %vm1539_vm0, %v1385_v2  ;;  %v2168_v3 = vadd.f32 %v2167_v7, %v2091_v27  ;;  %v5886_v27 = vpop.permute.xlu0 %2271 }
 0x37e   : > { %v2191_v15 = vadd.f32 %v2190_v1, %v2168_v3 }
 0x380   : > { %v5824_v18 = vadd.f32 %v2191_v15, %v5477_v6  ;;  %v1389_v6 = vld [vmem:[%s5276_s19 + $0x28] sm:$0xff] }
 0x383   : > { %v2170_v9 = vpop.f32.mrf.mxu1 }
 0x384   : > { %v2171_v14 = vadd.f32 %v2170_v9, %v2096_v53  ;;  %4857 = vmatmul.msk.f32.gmra.mxu0 %vm1539_vm0, %v1386_v5 }
 0x386   : > { %v2194_v8 = vadd.f32 %v2193_v12, %v2171_v14  ;;  %v2262_v12 = vpop.permute.xlu2 %2261 }
 0x388   : > { %v5821_v0 = vadd.f32 %v2194_v8, %v5471_v4  ;;  %v1388_v4 = vld [vmem:[%s5276_s19 + $0x20] sm:$0xff] }
 0x38a   : > { %2237 = vmatpush.msrb.mxu3 %v5821_v0  ;;  %2390 = vmatpush.msra.mxu1 %v5821_v0 }
 0x38c   : > { %2238 = vmatpush.msrb.mxu3 %v5824_v18  ;;  %2391 = vmatpush.msra.mxu1 %v5824_v18 }
 0x38d   : > { %4858 = vmatmul.msk.f32.gmra.mxu0 %vm1539_vm0, %v1387_v19  ;;  %4865 = vmatmul.msk.f32.vlgmr.msra.gmra.mxu1 %vm1539_vm0, %v1384_v63 }
 0x38e   : > { %4854 = vmatmul.msk.f32.vlgmr.msrb.gmra.mxu3 %vm1539_vm0, %v1352_v45  ;;  %v1404_v45 = vld [vmem:[%s5286_s30] sm:$0xff] }
 0x395   : > { %4859 = vmatmul.msk.f32.gmra.mxu0 %vm1539_vm0, %v1388_v4  ;;  %4866 = vmatmul.msk.f32.gmra.mxu1 %vm1539_vm0, %v1385_v2 }
 0x39d   : > { %4860 = vmatmul.msk.f32.gmra.mxu0 %vm1539_vm0, %v1389_v6  ;;  %4867 = vmatmul.msk.f32.gmra.mxu1 %vm1539_vm0, %v1386_v5 }
 0x3a5   : > { %4861 = vmatmul.msk.f32.gmra.mxu0 %vm1539_vm0, %v1390_v21  ;;  %4868 = vmatmul.msk.f32.gmra.mxu1 %vm1539_vm0, %v1387_v19  ;;  %v2257_v19 = vpop.permute.xlu0 %2256 }
 0x3ad   : > { %4862 = vmatmul.msk.f32.gmra.mxu0 %vm1539_vm0, %v1391_v24  ;;  %4869 = vmatmul.msk.f32.gmra.mxu1 %vm1539_vm0, %v1388_v4 }
 0x3b5   : > { %4863 = vmatmul.msk.f32.gmra.mxu0 %vm1539_vm0, %v1392_v25  ;;  %4870 = vmatmul.msk.f32.gmra.mxu1 %vm1539_vm0, %v1389_v6 }
 0x3bd   : > { %4864 = vmatmul.msk.f32.gmra.mxu0 %vm1539_vm0, %v1393_v35  ;;  %4871 = vmatmul.msk.f32.gmra.mxu1 %vm1539_vm0, %v1390_v21 }
 0x3c5   : > { %4872 = vmatmul.msk.f32.gmra.mxu1 %vm1539_vm0, %v1391_v24  ;;  %v2252_v24 = vpop.permute.xlu1 %2251 }
 0x3cd   : > { %4873 = vmatmul.msk.f32.gmra.mxu1 %vm1539_vm0, %v1392_v25 }
 0x3d5   : > { %4874 = vmatmul.msk.f32.gmra.mxu1 %vm1539_vm0, %v1393_v35 }
 0x3f1   : > { %v5854_v36 = vpop.f32.mrf.mxu0 }
 0x3f2   : > { %v2347_v25 = vadd.f32 %v5854_v36, %v2252_v24 }
 0x3f9   : > { %v2349_v37 = vpop.f32.mrf.mxu0 }
 0x3fa   : > { %v2350_v4 = vadd.f32 %v2349_v37, %v2257_v19 }
 0x401   : > { %v2352_v23 = vpop.f32.mrf.mxu0 }
 0x402   : > { %v2353_v14 = vadd.f32 %v2352_v23, %v2262_v12  ;;  %v2445_v23 = vmul.f32 0.05, %v2350_v4 }
 0x404   : > { %v2447_v35 = vmul.f32 0.05, %v2353_v14 }
 0x40a   : > { %v2355_v38 = vpop.f32.mrf.mxu0  ;;  %v5856_v33 = vpop.f32.mrf.mxu1 }
 0x40b   : > { %v2356_v3 = vadd.f32 %v2355_v38, %v5889_v54 }
 0x40d   : > { %v2449_v6 = vmul.f32 0.05, %v2356_v3 }
 0x412   : > { %v2358_v39 = vpop.f32.mrf.mxu0  ;;  %v5858_v40 = vpop.f32.mrf.mxu1 }
 0x413   : > { %v2359_v63 = vadd.f32 %v2358_v39, %v5886_v27 }
 0x415   : > { %v2451_v15 = vmul.f32 0.05, %v2359_v63  ;;  %vm2431_vm5 = vcmp.ge.f32.partialorder %v2359_v63, 0.0 }
 0x417   : > { %v2471_v38 = vsel %vm2431_vm5, %v2359_v63, %v2451_v15 }
 0x41a   : > { %v2361_v13 = vpop.f32.mrf.mxu0  ;;  %v5860_v16 = vpop.f32.mrf.mxu1 }
 0x41b   : > { %v2362_v55 = vadd.f32 %v2361_v13, %v5879_v11 }
 0x41d   : > { %v2453_v5 = vmul.f32 0.05, %v2362_v55  ;;  %vm2433_vm4 = vcmp.ge.f32.partialorder %v2362_v55, 0.0 }
 0x41f   : > { %v2473_v21 = vsel %vm2433_vm4, %v2362_v55, %v2453_v5 }
 0x422   : > { %v2364_v41 = vpop.f32.mrf.mxu0  ;;  %v5862_v42 = vpop.f32.mrf.mxu1 }
 0x423   : > { %v2365_v53 = vadd.f32 %v2364_v41, %v5877_v10 }
 0x425   : > { %v2455_v1 = vmul.f32 0.05, %v2365_v53  ;;  %vm2435_vm3 = vcmp.ge.f32.partialorder %v2365_v53, 0.0 }
 0x427   : > { %v2475_v8 = vsel %vm2435_vm3, %v2365_v53, %v2455_v1  ;;  %vm2423_vm3 = vcmp.ge.f32.partialorder %v2347_v25, 0.0 }
 0x42a   : > { %v2367_v43 = vpop.f32.mrf.mxu0  ;;  %v5866_v44 = vpop.f32.mrf.mxu1 }
 0x42b   : > { %v2368_v51 = vadd.f32 %v2367_v43, %v5873_v46  ;;  %v2443_v43 = vmul.f32 0.05, %v2347_v25 }
 0x42d   : > { %v2457_v56 = vmul.f32 0.05, %v2368_v51  ;;  %vm2437_vm2 = vcmp.ge.f32.partialorder %v2368_v51, 0.0  ;;  %v2463_v36 = vsel %vm2423_vm3, %v2347_v25, %v2443_v43 }
 0x42f   : > { %v2477_v9 = vsel %vm2437_vm2, %v2368_v51, %v2457_v56  ;;  %vm2425_vm2 = vcmp.ge.f32.partialorder %v2350_v4, 0.0  ;;  %v1405_v56 = vld [vmem:[%s5286_s30 + $0x8] sm:$0xff] }
 0x430   : > { %v2465_v37 = vsel %vm2425_vm2, %v2350_v4, %v2445_v23 }
 0x432   : > { %v2370_v29 = vpop.f32.mrf.mxu0  ;;  %v5875_v48 = vpop.f32.mrf.mxu1 }
 0x433   : > { %v2371_v47 = vadd.f32 %v2370_v29, %v5871_v32 }
 0x435   : > { %v2459_v22 = vmul.f32 0.05, %v2371_v47  ;;  %vm2439_vm1 = vcmp.ge.f32.partialorder %v2371_v47, 0.0 }
 0x437   : > { %v2479_v2 = vsel %vm2439_vm1, %v2371_v47, %v2459_v22  ;;  %vm2427_vm1 = vcmp.ge.f32.partialorder %v2353_v14, 0.0 }
 0x438   : > { %v2467_v41 = vsel %vm2427_vm1, %v2353_v14, %v2447_v35  ;;  %v2486_v14 = vpop.permute.xlu0 %2485 }
 0x43a   : > { %v2373_v49 = vpop.f32.mrf.mxu0  ;;  %v5882_v50 = vpop.f32.mrf.mxu1 }
 0x43b   : > { %v2374_v26 = vadd.f32 %v2373_v49, %v5864_v31 }
 0x43d   : > { %vm2441_vm15 = vcmp.ge.f32.partialorder %v2374_v26, 0.0  ;;  %v2461_v28 = vmul.f32 0.05, %v2374_v26 }
 0x43f   : > { %v2481_v57 = vsel %vm2441_vm15, %v2374_v26, %v2461_v28  ;;  %vm2429_vm15 = vcmp.ge.f32.partialorder %v2356_v3, 0.0  ;;  %v2412_v26 = vadd.f32 %v5882_v50, %v5877_v10  ;;  %v2403_v10 = vadd.f32 %v5862_v42, %v5889_v54 }
 0x440   : > { %2505 = vmatpush.msra.mxu2 %v2481_v57  ;;  %v2469_v13 = vsel %vm2429_vm15, %v2356_v3, %v2449_v6  ;;  %v2394_v42 = vadd.f32 %v5856_v33, %v2252_v24  ;;  %v5915_v33 = vpop.f32.mrf.mxu2 }
 0x441   : > { %vm2436_vm1 = vcmp.ge.f32.partialorder %v2412_v26, 0.0 }
 0x442   : > { %2506 = vmatpush.msra.mxu2 %v2479_v2  ;;  %v2414_v7 = vpop.f32.mrf.mxu1 }
 0x443   : > { %v2415_v49 = vadd.f32 %v2414_v7, %v5873_v46  ;;  %v2456_v46 = vmul.f32 0.05, %v2412_v26 }
 0x444   : > { %2507 = vmatpush.msra.mxu2 %v2477_v9  ;;  %v2444_v9 = vmul.f32 0.05, %v2394_v42 }
 0x445   : > { %v2458_v28 = vmul.f32 0.05, %v2415_v49  ;;  %vm2438_vm15 = vcmp.ge.f32.partialorder %v2415_v49, 0.0  ;;  %v2476_v1 = vsel %vm2436_vm1, %v2412_v26, %v2456_v46  ;;  %vm2424_vm1 = vcmp.ge.f32.partialorder %v2394_v42, 0.0  ;;  %v1412_v46 = vld [vmem:[%s5301_s20] sm:$0xff] }
 0x446   : > { %2508 = vmatpush.msra.mxu2 %v2475_v8 }
 0x447   : > { %v2478_v63 = vsel %vm2438_vm15, %v2415_v49, %v2458_v28 }
 0x448   : > { %2509 = vmatpush.msra.mxu2 %v2473_v21  ;;  %v5927_v21 = vpop.f32.mrf.mxu3 }
 0x44a   : > { %2510 = vmatpush.msra.mxu2 %v2471_v38  ;;  %v2417_v39 = vpop.f32.mrf.mxu1 }
 0x44b   : > { %v2418_v29 = vadd.f32 %v2417_v39, %v5871_v32  ;;  %v2409_v32 = vadd.f32 %v5875_v48, %v5879_v11  ;;  %v2400_v48 = vadd.f32 %v5860_v16, %v2262_v12 }
 0x44c   : > { %2511 = vmatpush.msra.mxu2 %v2469_v13 }
 0x44d   : > { %v2460_v53 = vmul.f32 0.05, %v2418_v29  ;;  %vm2440_vm5 = vcmp.ge.f32.partialorder %v2418_v29, 0.0  ;;  %v2454_v50 = vmul.f32 0.05, %v2409_v32  ;;  %vm2434_vm2 = vcmp.ge.f32.partialorder %v2409_v32, 0.0 }
 0x44e   : > { %2512 = vmatpush.msra.mxu2 %v2467_v41  ;;  %v2448_v7 = vmul.f32 0.05, %v2400_v48 }
 0x44f   : > { %v2480_v57 = vsel %vm2440_vm5, %v2418_v29, %v2460_v53  ;;  %v2474_v2 = vsel %vm2434_vm2, %v2409_v32, %v2454_v50  ;;  %vm2428_vm5 = vcmp.ge.f32.partialorder %v2400_v48, 0.0  ;;  %v1431_v50 = vld [vmem:[%s7091_s23 + $0x38] sm:$0xff] }
 0x450   : > { %2513 = vmatpush.msra.mxu2 %v2465_v37  ;;  %v2468_v16 = vsel %vm2428_vm5, %v2400_v48, %v2448_v7  ;;  %v1426_v48 = vld [vmem:[%s7091_s23 + $0x10] sm:$0xff] }
 0x452   : > { %2514 = vmatpush.msra.mxu2 %v2463_v36  ;;  %v2420_v47 = vpop.f32.mrf.mxu1 }
 0x453   : > { %v2421_v51 = vadd.f32 %v2420_v47, %v5864_v31  ;;  %4875 = vmatmul.msk.f32.vlgmr.msra.gmra.mxu2 %vm1833_vm6, %v1404_v45  ;;  %v2406_v31 = vadd.f32 %v5866_v44, %v5886_v27  ;;  %v2397_v44 = vadd.f32 %v5858_v40, %v2257_v19  ;;  %v2450_v27 = vmul.f32 0.05, %v2403_v10  ;;  %v2491_v19 = vpop.permute.xlu2 %2490 }
 0x454   : > { %v2464_v40 = vsel %vm2424_vm1, %v2394_v42, %v2444_v9 }
 0x455   : > { %vm2442_vm4 = vcmp.ge.f32.partialorder %v2421_v51, 0.0  ;;  %v2462_v22 = vmul.f32 0.05, %v2421_v51  ;;  %v2452_v11 = vmul.f32 0.05, %v2406_v31  ;;  %vm2432_vm3 = vcmp.ge.f32.partialorder %v2406_v31, 0.0 }
 0x456   : > { %v2446_v5 = vmul.f32 0.05, %v2397_v44  ;;  %vm2426_vm15 = vcmp.ge.f32.partialorder %v2397_v44, 0.0 }
 0x457   : > { %v2482_v55 = vsel %vm2442_vm4, %v2421_v51, %v2462_v22  ;;  %vm2430_vm4 = vcmp.ge.f32.partialorder %v2403_v10, 0.0  ;;  %v2472_v54 = vsel %vm2432_vm3, %v2406_v31, %v2452_v11  ;;  %v1432_v31 = vld [vmem:[%s7091_s23 + $0x40] sm:$0xff] }
 0x458   : > { %2528 = vmatpush.msra.mxu3 %v2482_v55  ;;  %v2470_v3 = vsel %vm2430_vm4, %v2403_v10, %v2450_v27  ;;  %v2466_v12 = vsel %vm2426_vm15, %v2397_v44, %v2446_v5  ;;  %v1413_v55 = vld [vmem:[%s5301_s20 + $0x8] sm:$0xff]  ;;  %v1428_v11 = vld [vmem:[%s7091_s23 + $0x20] sm:$0xff] }
 0x459   : > { %v1429_v10 = vld [vmem:[%s7091_s23 + $0x28] sm:$0xff] }
 0x45a   : > { %2529 = vmatpush.msra.mxu3 %v2480_v57  ;;  %v1430_v57 = vld [vmem:[%s7091_s23 + $0x30] sm:$0xff]  ;;  %v1437_v44 = vld [vmem:[%s7092_s26 + $0x8] sm:$0xff] }
 0x45b   : > { %4876 = vmatmul.msk.f32.gmra.mxu2 %vm1833_vm6, %v1405_v56  ;;  %v1425_v27 = vld [vmem:[%s7091_s23 + $0x8] sm:$0xff] }
 0x45c   : > { %2530 = vmatpush.msra.mxu3 %v2478_v63  ;;  %v1427_v63 = vld [vmem:[%s7091_s23 + $0x18] sm:$0xff] }
 0x45e   : > { %2531 = vmatpush.msra.mxu3 %v2476_v1  ;;  %v1424_v1 = vld [vmem:[%s7091_s23] sm:$0xff] }
 0x460   : > { %2532 = vmatpush.msra.mxu3 %v2474_v2  ;;  %v1436_v2 = vld [vmem:[%s7092_s26] sm:$0xff] }
 0x462   : > { %2533 = vmatpush.msra.mxu3 %v2472_v54 }
 0x464   : > { %2534 = vmatpush.msra.mxu3 %v2470_v3 }
 0x466   : > { %2535 = vmatpush.msra.mxu3 %v2468_v16 }
 0x468   : > { %2536 = vmatpush.msra.mxu3 %v2466_v12 }
 0x46a   : > { %2537 = vmatpush.msra.mxu3 %v2464_v40 }
 0x46b   : > { %4877 = vmatmul.msk.f32.vlgmr.msra.gmra.mxu3 %vm1833_vm6, %v1404_v45 }
 0x473   : > { %4878 = vmatmul.msk.f32.gmra.mxu3 %vm1833_vm6, %v1405_v56  ;;  %v1433_v56 = vld [vmem:[%s7091_s23 + $0x48] sm:$0xff] }
 0x4d6   : > { %v2516_v15 = vpop.f32.mrf.mxu2 }
 0x4d7   : > { %v5917_v8 = vadd.f32 %v2516_v15, %v2486_v14 }
 0x4d9   : > { %2647 = vrot.lane.b32.xlu0 %v5917_v8, %s7029_s15 }
 0x4de   : > { %v2519_v4 = vpop.f32.mrf.mxu2 }
 0x4df   : > { %v5921_v6 = vadd.f32 %v2519_v4, %v2491_v19 }
 0x4e1   : > { %2611 = vrot.lane.b32.xlu0 %v5921_v6, %s7030_s22  ;;  %2651 = vrot.lane.b32.xlu1 %v5921_v6, %s7029_s15 }
 0x4ee   : > { %v2539_v24 = vpop.f32.mrf.mxu3 }
 0x4ef   : > { %v5929_v25 = vadd.f32 %v2539_v24, %v2486_v14 }
 0x4f1   : > { %2649 = vrot.lane.b32.xlu1 %v5929_v25, %s7029_s15 }
 0x4f6   : > { %v2542_v35 = vpop.f32.mrf.mxu3 }
 0x4f7   : > { %v5933_v38 = vadd.f32 %v2542_v35, %v2491_v19 }
 0x4f9   : > { %2653 = vrot.lane.b32.xlu2 %v5933_v38, %s7029_s15  ;;  %2555 = vrot.lane.b32.xlu0 %v5933_v38, %s5209_s16 }
 0x4fa   : > { %2549 = vrot.lane.b32.xlu1 %v5917_v8, %s5209_s16 }
 0x501   : > { %2633 = vrot.lane.b32.xlu0 %v5933_v38, %s7033_s18  ;;  %2553 = vrot.lane.b32.xlu2 %v5921_v6, %s5209_s16 }
 0x502   : > { %2627 = vrot.lane.b32.xlu1 %v5917_v8, %s7033_s18 }
 0x509   : > { %2551 = vrot.lane.b32.xlu2 %v5929_v25, %s5209_s16 }
 0x50a   : > { %2607 = vrot.lane.b32.xlu1 %v5917_v8, %s7030_s22 }
 0x511   : > { %2631 = vrot.lane.b32.xlu2 %v5921_v6, %s7033_s18 }
 0x519   : > { %2629 = vrot.lane.b32.xlu2 %v5929_v25, %s7033_s18 }
 0x54b   : > { %v2648_v37 = vpop.permute.xlu0 %2647 }
 0x553   : > { %v2652_v39 = vpop.permute.xlu1 %2651  ;;  %v5955_v23 = vpop.permute.xlu2 %2653 }
 0x554   : > { %v2656_v13 = vsel %vm2037_vm7, %v2652_v39, %v5955_v23  ;;  %v5973_v47 = vpop.permute.xlu0 %2611  ;;  %v2662_v26 = vsel %vm2037_vm7, %v5955_v23, 0.0 }
 0x555   : > { %2721 = vmatpush.msrb.mxu2 %v2656_v13 }
 0x55b   : > { %v5959_v41 = vpop.permute.xlu2 %2553 }
 0x55c   : > { %v2564_v43 = vsel %vm1539_vm0, 0.0, %v5959_v41 }
 0x55d   : > { %2591 = vrot.lane.b32.xlu0 %v2564_v43, %s7033_s18 }
 0x563   : > { %v5964_v45 = vpop.permute.xlu1 %2649  ;;  %v2552_v49 = vpop.permute.xlu2 %2551 }
 0x564   : > { %v2661_v29 = vsel %vm2037_vm7, %v5964_v45, 0.0  ;;  %v2655_v36 = vsel %vm2037_vm7, %v2648_v37, %v5964_v45 }
 0x565   : > { %2667 = vrot.lane.b32.xlu2 %v2661_v29, %s7030_s22  ;;  %2665 = vrot.lane.b32.xlu1 %v2655_v36, %s7030_s22 }
 0x566   : > { %2669 = vrot.lane.b32.xlu0 %v2656_v13, %s7030_s22  ;;  %2722 = vmatpush.msrb.mxu2 %v2655_v36 }
 0x56b   : > { %v2556_v32 = vpop.permute.xlu0 %2555  ;;  %v2632_v42 = vpop.permute.xlu2 %2631 }
 0x56c   : > { %v5975_v51 = vpop.permute.xlu1 %2549  ;;  %v5992_v28 = vsel %vm1539_vm0, %v5959_v41, %v2556_v32 }
 0x56d   : > { %2671 = vrot.lane.b32.xlu2 %v2662_v26, %s7030_s22  ;;  %v2563_v53 = vsel %vm1539_vm0, 0.0, %v5975_v51  ;;  %v5984_v22 = vsel %vm1539_vm0, %v5975_v51, %v2552_v49 }
 0x56e   : > { %2587 = vrot.lane.b32.xlu0 %v2563_v53, %s7033_s18  ;;  %2589 = vrot.lane.b32.xlu1 %v5984_v22, %s7033_s18 }
 0x573   : > { %v2634_v7 = vpop.permute.xlu0 %2633  ;;  %v2630_v3 = vpop.permute.xlu2 %2629 }
 0x574   : > { %v2628_v54 = vpop.permute.xlu1 %2627  ;;  %v2636_v4 = vsel %vm1972_vm11, %v2632_v42, %v2634_v7 }
 0x575   : > { %2685 = vrot.lane.b32.xlu2 %v2655_v36, %s7033_s18  ;;  %v2635_v24 = vsel %vm1972_vm11, %v2628_v54, %v2630_v3 }
 0x576   : > { %2687 = vrot.lane.b32.xlu0 %v2661_v29, %s7033_s18  ;;  %2593 = vrot.lane.b32.xlu1 %v5992_v28, %s7033_s18 }
 0x57c   : > { %v6023_v5 = vpop.permute.xlu1 %2607 }
 0x57d   : > { %2689 = vrot.lane.b32.xlu2 %v2656_v13, %s7033_s18  ;;  %v2622_v13 = vsel %vm1945_vm9, 0.0, %v5973_v47  ;;  %v2621_v37 = vsel %vm1945_vm9, 0.0, %v6023_v5 }
 0x57e   : > { %2691 = vrot.lane.b32.xlu0 %v2662_v26, %s7033_s18  ;;  %2571 = vrot.lane.b32.xlu1 %v2564_v43, %s7030_s22 }
 0x585   : > { %2613 = vrot.lane.b32.xlu2 %v5933_v38, %s7030_s22 }
 0x586   : > { %2609 = vrot.lane.b32.xlu0 %v5929_v25, %s7030_s22  ;;  %2567 = vrot.lane.b32.xlu1 %v2563_v53, %s7030_s22 }
 0x58d   : > { %2569 = vrot.lane.b32.xlu2 %v5984_v22, %s7030_s22 }
 0x58e   : > { %2712 = vperm.xlu0 %5110, %v1413_v55   ;;  %2573 = vrot.lane.b32.xlu1 %v5992_v28, %s7030_s22 }
 0x595   : > { %2913 = vperm.xlu2 %5112, %v1433_v56   ;;  %v1409_v56 = vld [vmem:[%s7093_s28 + $0x8] sm:$0xff] }
 0x596   : > { %2908 = vperm.xlu0 %5110, %v1432_v31   ;;  %2707 = vperm.xlu1 %5111, %v1412_v46   ;;  %v1408_v46 = vld [vmem:[%s7093_s28] sm:$0xff] }
 0x59d   : > { %2898 = vperm.xlu2 %5112, %v1430_v57  }
 0x59e   : > { %2893 = vperm.xlu0 %5110, %v1429_v10   ;;  %2903 = vperm.xlu1 %5111, %v1431_v50   ;;  %v2642_v50 = vsel %vm1972_vm11, %v2634_v7, 0.0 }
 0x5a5   : > { %2883 = vperm.xlu2 %5112, %v1427_v63  }
 0x5a6   : > { %2878 = vperm.xlu0 %5110, %v1426_v48   ;;  %2888 = vperm.xlu1 %5111, %v1428_v11   ;;  %v2641_v48 = vsel %vm1972_vm11, %v2630_v3, 0.0  ;;  %v1410_v11 = vld [vmem:[%s7093_s28 + $0x10] sm:$0xff] }
 0x5ad   : > { %2868 = vperm.xlu2 %5112, %v1424_v1  }
 0x5ae   : > { %3107 = vperm.xlu0 %5110, %v1437_v44   ;;  %2873 = vperm.xlu1 %5111, %v1425_v27  }
 0x5b6   : > { %3102 = vperm.xlu1 %5111, %v1436_v2  }
 0x5bf   : > { %v2668_v9 = vpop.permute.xlu2 %2667 }
 0x5c7   : > { %v2672_v15 = vpop.permute.xlu2 %2671 }
 0x5cf   : > { %v2592_v16 = vpop.permute.xlu0 %2591  ;;  %v2686_v43 = vpop.permute.xlu2 %2685 }
 0x5d7   : > { %v2666_v12 = vpop.permute.xlu1 %2665  ;;  %v2690_v49 = vpop.permute.xlu2 %2689 }
 0x5d8   : > { %v2670_v40 = vpop.permute.xlu0 %2669  ;;  %v2679_v19 = vsel %vm1945_vm9, 0.0, %v2666_v12  ;;  %v2673_v10 = vsel %vm1945_vm9, %v2666_v12, %v2668_v9 }
 0x5d9   : > { %v2680_v14 = vsel %vm1945_vm9, 0.0, %v2670_v40 }
 0x5da   : > { %4879 = vmatpush.msk.msrb.mxu2 %vm5674_vm8, %v2680_v14 }
 0x5dc   : > { %4880 = vmatpush.msk.msrb.mxu2 %vm5674_vm8, %v2679_v19 }
 0x5de   : > { %4881 = vmatpush.msk.msrb.mxu2 %vm5682_vm10, %v2636_v4 }
 0x5df   : > { %v2614_v1 = vpop.permute.xlu2 %2613 }
 0x5e0   : > { %v2588_v35 = vpop.permute.xlu0 %2587  ;;  %4882 = vmatpush.msk.msrb.mxu2 %vm5682_vm10, %v2635_v24  ;;  %v2590_v39 = vpop.permute.xlu1 %2589  ;;  %v2616_v27 = vsel %vm1945_vm9, %v5973_v47, %v2614_v1  ;;  %v1414_v24 = vld [vmem:[%s7094_s1] sm:$0xff] }
 0x5e2   : > { %2727 = vmatpush.msrb.mxu2 %v5921_v6 }
 0x5e4   : > { %2728 = vmatpush.msrb.mxu2 %v5917_v8  ;;  %v2595_v8 = vsel %vm1972_vm11, %v2588_v35, %v2590_v39  ;;  %v1415_v35 = vld [vmem:[%s7094_s1 + $0x8] sm:$0xff] }
 0x5e6   : > { %4883 = vmatpush.msk.msrb.mxu2 %vm5674_vm8, %v2622_v13 }
 0x5e7   : > { %v2570_v54 = vpop.permute.xlu2 %2569 }
 0x5e8   : > { %v2688_v29 = vpop.permute.xlu0 %2687  ;;  %4884 = vmatpush.msk.msrb.mxu2 %vm5674_vm8, %v2621_v37  ;;  %v2594_v36 = vpop.permute.xlu1 %2593 }
 0x5e9   : > { %v2596_v6 = vsel %vm1972_vm11, %v2592_v16, %v2594_v36  ;;  %v2699_v63 = vsel %vm1972_vm11, %v2688_v29, 0.0  ;;  %v2602_v42 = vsel %vm1972_vm11, %v2594_v36, 0.0 }
 0x5ea   : > { %4885 = vmatpush.msk.msrb.mxu2 %vm5682_vm10, %v2596_v6 }
 0x5ec   : > { %4886 = vmatpush.msk.msrb.mxu2 %vm5682_vm10, %v2595_v8 }
 0x5ee   : > { %4888 = vmatpush.msk.msrb.mxu2 %vm5714_vm12, %v5959_v41  ;;  %v2693_v41 = vsel %vm1972_vm11, %v2686_v43, %v2688_v29 }
 0x5f0   : > { %v2692_v26 = vpop.permute.xlu0 %2691  ;;  %4890 = vmatpush.msk.msrb.mxu2 %vm5714_vm12, %v5975_v51  ;;  %v2572_v53 = vpop.permute.xlu1 %2571  ;;  %v2674_v51 = vsel %vm1945_vm9, %v2670_v40, %v2672_v15 }
 0x5f1   : > { %v2694_v32 = vsel %vm1972_vm11, %v2690_v49, %v2692_v26  ;;  %v2582_v55 = vsel %vm1945_vm9, 0.0, %v2572_v53  ;;  %v1417_v49 = vld [vmem:[%s7094_s1 + $0x18] sm:$0xff] }
 0x5f2   : > { %4891 = vmatpush.msk.msrb.mxu2 %vm5674_vm8, %v2582_v55  ;;  %4893 = vmatpush.msk.msrb.mxu3 %vm5682_vm10, %v2694_v32  ;;  %v1421_v32 = vld [vmem:[%s7094_s1 + $0x38] sm:$0xff]  ;;  %v1422_v55 = vld [vmem:[%s7094_s1 + $0x40] sm:$0xff] }
 0x5f4   : > { %4894 = vmatpush.msk.msrb.mxu3 %vm5682_vm10, %v2693_v41  ;;  %v1423_v41 = vld [vmem:[%s7094_s1 + $0x48] sm:$0xff] }
 0x5f5   : > { %4895 = vmatmul.msk.f32.vlgmr.msrb.gmra.mxu3 %vm1539_vm0, %v1409_v56 }
 0x5f6   : > { %4897 = vmatpush.msk.msra.mxu3 %vm2037_vm7, %v5955_v23  ;;  %v2700_v23 = vsel %vm1972_vm11, %v2692_v26, 0.0 }
 0x5f8   : > { %4898 = vmatpush.msk.msra.mxu3 %vm2037_vm7, %v5964_v45  ;;  %v2568_v31 = vpop.permute.xlu1 %2567  ;;  %v1411_v45 = vld [vmem:[%s7093_s28 + $0x18] sm:$0xff]  ;;  %v2610_v44 = vpop.permute.xlu0 %2609 }
 0x5f9   : > { %v2581_v57 = vsel %vm1945_vm9, 0.0, %v2568_v31  ;;  %v2615_v2 = vsel %vm1945_vm9, %v6023_v5, %v2610_v44  ;;  %v2575_v7 = vsel %vm1945_vm9, %v2568_v31, %v2570_v54  ;;  %v1353_v44 = vld [vmem:[%s7095_s2] sm:$0xff]  ;;  %s7097_s2 = sld [smem:[#allocation14_spill]] }
 0x5fa   : > { %4899 = vmatpush.msk.msra.mxu3 %vm5739_vm13, %v2674_v51  ;;  %4892 = vmatpush.msk.msrb.mxu2 %vm5674_vm8, %v2581_v57 }
 0x5fb   : > { %2737 = vmatmul.f32.vlgmr.msrb.gmra.mxu2 %v1408_v46 }
 0x5fc   : > { %4900 = vmatpush.msk.msra.mxu3 %vm5739_vm13, %v2673_v10  ;;  %4909 = vmatpush.msk.msra.mxu2 %vm5752_vm14, %v2700_v23 }
 0x5fd   : > { %4896 = vmatmul.msk.f32.gmra.mxu3 %vm1539_vm0, %v1411_v45 }
 0x5fe   : > { %4901 = vmatpush.msk.msra.mxu3 %vm5752_vm14, %v2642_v50  ;;  %4910 = vmatpush.msk.msra.mxu2 %vm5752_vm14, %v2699_v63 }
 0x600   : > { %4902 = vmatpush.msk.msra.mxu3 %vm5752_vm14, %v2641_v48 }
 0x602   : > { %2773 = vmatpush.msra.mxu3 %v5933_v38  ;;  %v2601_v38 = vsel %vm1972_vm11, %v2590_v39, 0.0 }
 0x603   : > { %2740 = vmatmul.f32.gmra.mxu2 %v1410_v11 }
 0x604   : > { %2774 = vmatpush.msra.mxu3 %v5929_v25  ;;  %v2574_v25 = vpop.permute.xlu1 %2573 }
 0x605   : > { %v2576_v47 = vsel %vm1945_vm9, %v2572_v53, %v2574_v25  ;;  %v1420_v53 = vld [vmem:[%s7094_s1 + $0x30] sm:$0xff] }
 0x606   : > { %4903 = vmatpush.msk.msra.mxu3 %vm5739_vm13, %v2616_v27 }
 0x608   : > { %4904 = vmatpush.msk.msra.mxu3 %vm5739_vm13, %v2615_v2 }
 0x60a   : > { %4905 = vmatpush.msk.msra.mxu3 %vm5752_vm14, %v2602_v42 }
 0x60b   : > { %4911 = vmatmul.msk.f32.vlgmr.msra.gmra.mxu2 %vm1539_vm0, %v1409_v56 }
 0x60c   : > { %4906 = vmatpush.msk.msra.mxu3 %vm5752_vm14, %v2601_v38  ;;  %v2708_v5 = vpop.permute.xlu1 %2707 }
 0x60e   : > { %2779 = vmatpush.msra.mxu3 %v5992_v28 }
 0x610   : > { %2780 = vmatpush.msra.mxu3 %v5984_v22  ;;  %v2713_v22 = vpop.permute.xlu0 %2712 }
 0x612   : > { %4907 = vmatpush.msk.msra.mxu3 %vm5739_vm13, %v2576_v47 }
 0x613   : > { %4912 = vmatmul.msk.f32.gmra.mxu2 %vm1539_vm0, %v1411_v45 }
 0x614   : > { %4908 = vmatpush.msk.msra.mxu3 %vm5739_vm13, %v2575_v7  ;;  %v6194_v42 = vpop.permute.xlu1 %2903 }
 0x615   : > { %2783 = vmatmul.f32.vlgmr.msra.gmra.mxu3 %v1408_v46 }
 0x618   : > { %v6192_v2 = vpop.permute.xlu0 %2908 }
 0x61d   : > { %2786 = vmatmul.f32.gmra.mxu3 %v1410_v11  ;;  %v6185_v11 = vpop.permute.xlu2 %2913 }
 0x620   : > { %v6201_v7 = vpop.permute.xlu0 %2893 }
 0x625   : > { %v6196_v25 = vpop.permute.xlu2 %2898 }
 0x678   : > { %v2761_v3 = vpop.f32.mrf.mxu3 }
 0x67e   : > { %v2738_v28 = vpop.f32.mrf.mxu2 }
 0x67f   : > { %v2739_v16 = vadd.f32 %v2738_v28, %v2708_v5 }
 0x680   : > { %v2764_v12 = vpop.f32.mrf.mxu3 }
 0x681   : > { %v2762_v14 = vadd.f32 %v2761_v3, %v2739_v16 }
 0x683   : > { %v6129_v4 = vadd.f32 %v2762_v14, %v5808_v62  ;;  %v6208_v14 = vpop.permute.xlu2 %2883 }
 0x686   : > { %v2741_v9 = vpop.f32.mrf.mxu2 }
 0x687   : > { %v2742_v40 = vadd.f32 %v2741_v9, %v2713_v22 }
 0x689   : > { %v2765_v15 = vadd.f32 %v2764_v12, %v2742_v40 }
 0x68b   : > { %v6126_v19 = vadd.f32 %v2765_v15, %v5805_v59  ;;  %v1416_v59 = vld [vmem:[%s7094_s1 + $0x10] sm:$0xff] }
 0x68d   : > { %2834 = vmatpush.msrb.mxu0 %v6126_v19  ;;  %2960 = vmatpush.msrb.mxu2 %v6126_v19 }
 0x68e   : > { %v2807_v39 = vpop.f32.mrf.mxu2 }
 0x68f   : > { %2835 = vmatpush.msrb.mxu0 %v6129_v4  ;;  %2961 = vmatpush.msrb.mxu2 %v6129_v4 }
 0x690   : > { %4915 = vmatmul.msk.f32.vlgmr.msrb.gmra.mxu2 %vm1539_vm0, %v1414_v24  ;;  %4913 = vmatmul.msk.f32.vlgmr.msrb.gmra.mxu0 %vm1539_vm0, %v1353_v44 }
 0x696   : > { %v2810_v37 = vpop.f32.mrf.mxu2 }
 0x698   : > { %v2784_v13 = vpop.f32.mrf.mxu3  ;;  %4916 = vmatmul.msk.f32.gmra.mxu2 %vm1539_vm0, %v1415_v35 }
 0x699   : > { %v2785_v62 = vadd.f32 %v2784_v13, %v2708_v5 }
 0x69b   : > { %v2808_v36 = vadd.f32 %v2807_v39, %v2785_v62 }
 0x69d   : > { %v6146_v26 = vadd.f32 %v2808_v36, %v5824_v18  ;;  %v1419_v18 = vld [vmem:[%s7094_s1 + $0x28] sm:$0xff] }
 0x6a0   : > { %v2787_v43 = vpop.f32.mrf.mxu3  ;;  %4917 = vmatmul.msk.f32.gmra.mxu2 %vm1539_vm0, %v1416_v59 }
 0x6a1   : > { %v2788_v29 = vadd.f32 %v2787_v43, %v2713_v22  ;;  %v6205_v22 = vpop.permute.xlu1 %2888 }
 0x6a3   : > { %v2811_v6 = vadd.f32 %v2810_v37, %v2788_v29  ;;  %v2879_v29 = vpop.permute.xlu0 %2878 }
 0x6a5   : > { %v6142_v8 = vadd.f32 %v2811_v6, %v5821_v0  ;;  %v1418_v0 = vld [vmem:[%s7094_s1 + $0x20] sm:$0xff]  ;;  %s7105_s1 = sld [smem:[#allocation19_spill]] }
 0x6a7   : > { %2854 = vmatpush.msrb.mxu1 %v6142_v8  ;;  %3007 = vmatpush.msrb.mxu3 %v6142_v8 }
 0x6a8   : > { %4918 = vmatmul.msk.f32.gmra.mxu2 %vm1539_vm0, %v1417_v49 }
 0x6a9   : > { %2855 = vmatpush.msrb.mxu1 %v6146_v26  ;;  %3008 = vmatpush.msrb.mxu3 %v6146_v26 }
 0x6aa   : > { %4925 = vmatmul.msk.f32.vlgmr.msrb.gmra.mxu3 %vm1539_vm0, %v1414_v24  ;;  %4914 = vmatmul.msk.f32.vlgmr.msrb.gmra.mxu1 %vm1539_vm0, %v1353_v44 }
 0x6b0   : > { %4919 = vmatmul.msk.f32.gmra.mxu2 %vm1539_vm0, %v1418_v0 }
 0x6b2   : > { %4926 = vmatmul.msk.f32.gmra.mxu3 %vm1539_vm0, %v1415_v35 }
 0x6b8   : > { %4920 = vmatmul.msk.f32.gmra.mxu2 %vm1539_vm0, %v1419_v18 }
 0x6ba   : > { %4927 = vmatmul.msk.f32.gmra.mxu3 %vm1539_vm0, %v1416_v59 }
 0x6c0   : > { %4921 = vmatmul.msk.f32.gmra.mxu2 %vm1539_vm0, %v1420_v53 }
 0x6c2   : > { %4928 = vmatmul.msk.f32.gmra.mxu3 %vm1539_vm0, %v1417_v49 }
 0x6c8   : > { %4922 = vmatmul.msk.f32.gmra.mxu2 %vm1539_vm0, %v1421_v32 }
 0x6ca   : > { %4929 = vmatmul.msk.f32.gmra.mxu3 %vm1539_vm0, %v1418_v0 }
 0x6d0   : > { %4923 = vmatmul.msk.f32.gmra.mxu2 %vm1539_vm0, %v1422_v55 }
 0x6d2   : > { %4930 = vmatmul.msk.f32.gmra.mxu3 %vm1539_vm0, %v1419_v18  ;;  %v2874_v18 = vpop.permute.xlu1 %2873 }
 0x6d8   : > { %4924 = vmatmul.msk.f32.gmra.mxu2 %vm1539_vm0, %v1423_v41 }
 0x6da   : > { %4931 = vmatmul.msk.f32.gmra.mxu3 %vm1539_vm0, %v1420_v53 }
 0x6e2   : > { %4932 = vmatmul.msk.f32.gmra.mxu3 %vm1539_vm0, %v1421_v32 }
 0x6ea   : > { %4933 = vmatmul.msk.f32.gmra.mxu3 %vm1539_vm0, %v1422_v55 }
 0x6f2   : > { %4934 = vmatmul.msk.f32.gmra.mxu3 %vm1539_vm0, %v1423_v41  ;;  %v2869_v41 = vpop.permute.xlu2 %2868 }
 0x713   : > { %v6175_v56 = vpop.f32.mrf.mxu2 }
 0x71b   : > { %v2966_v51 = vpop.f32.mrf.mxu2 }
 0x71c   : > { %v2967_v53 = vadd.f32 %v2966_v51, %v2874_v18 }
 0x723   : > { %v2969_v31 = vpop.f32.mrf.mxu2 }
 0x724   : > { %v2970_v6 = vadd.f32 %v2969_v31, %v2879_v29 }
 0x72b   : > { %v2972_v46 = vpop.f32.mrf.mxu2 }
 0x72c   : > { %v2973_v62 = vadd.f32 %v2972_v46, %v6208_v14  ;;  %v2964_v46 = vadd.f32 %v6175_v56, %v2869_v41 }
 0x72d   : > { %v6177_v57 = vpop.f32.mrf.mxu3 }
 0x72e   : > { %v3066_v32 = vmul.f32 0.05, %v2973_v62  ;;  %v3060_v44 = vmul.f32 0.05, %v2964_v46 }
 0x733   : > { %v2975_v10 = vpop.f32.mrf.mxu2 }
 0x734   : > { %v2976_v39 = vadd.f32 %v2975_v10, %v6205_v22  ;;  %v3064_v10 = vmul.f32 0.05, %v2970_v6 }
 0x735   : > { %v6179_v23 = vpop.f32.mrf.mxu3 }
 0x736   : > { %v3068_v49 = vmul.f32 0.05, %v2976_v39  ;;  %vm3048_vm1 = vcmp.ge.f32.partialorder %v2976_v39, 0.0 }
 0x73b   : > { %v2978_v45 = vpop.f32.mrf.mxu2 }
 0x73c   : > { %v2979_v15 = vadd.f32 %v2978_v45, %v6201_v7  ;;  %v3088_v45 = vsel %vm3048_vm1, %v2976_v39, %v3068_v49 }
 0x73d   : > { %v6181_v50 = vpop.f32.mrf.mxu3 }
 0x73e   : > { %v3070_v43 = vmul.f32 0.05, %v2979_v15  ;;  %vm3050_vm15 = vcmp.ge.f32.partialorder %v2979_v15, 0.0 }
 0x740   : > { %v3090_v55 = vsel %vm3050_vm15, %v2979_v15, %v3070_v43 }
 0x743   : > { %v2981_v63 = vpop.f32.mrf.mxu2 }
 0x744   : > { %v2982_v9 = vadd.f32 %v2981_v63, %v6196_v25  ;;  %v3062_v63 = vmul.f32 0.05, %v2967_v53 }
 0x745   : > { %v6183_v48 = vpop.f32.mrf.mxu3 }
 0x746   : > { %v3072_v13 = vmul.f32 0.05, %v2982_v9  ;;  %vm3052_vm5 = vcmp.ge.f32.partialorder %v2982_v9, 0.0 }
 0x748   : > { %v3092_v0 = vsel %vm3052_vm5, %v2982_v9, %v3072_v13  ;;  %vm3040_vm5 = vcmp.ge.f32.partialorder %v2964_v46, 0.0 }
 0x74b   : > { %v2984_v1 = vpop.f32.mrf.mxu2 }
 0x74c   : > { %v2985_v28 = vadd.f32 %v2984_v1, %v6194_v42 }
 0x74d   : > { %v6190_v27 = vpop.f32.mrf.mxu3 }
 0x74e   : > { %v3074_v24 = vmul.f32 0.05, %v2985_v28  ;;  %vm3054_vm4 = vcmp.ge.f32.partialorder %v2985_v28, 0.0 }
 0x750   : > { %v3094_v37 = vsel %vm3054_vm4, %v2985_v28, %v3074_v24  ;;  %vm3042_vm4 = vcmp.ge.f32.partialorder %v2967_v53, 0.0  ;;  %v1435_v24 = vld [vmem:[%s7096_s11 + $0x8] sm:$0xff] }
 0x751   : > { %v3082_v51 = vsel %vm3042_vm4, %v2967_v53, %v3062_v63 }
 0x753   : > { %v2987_v38 = vpop.f32.mrf.mxu2 }
 0x754   : > { %v2988_v54 = vadd.f32 %v2987_v38, %v6192_v2 }
 0x755   : > { %v6198_v47 = vpop.f32.mrf.mxu3 }
 0x756   : > { %v3076_v12 = vmul.f32 0.05, %v2988_v54  ;;  %vm3056_vm3 = vcmp.ge.f32.partialorder %v2988_v54, 0.0 }
 0x758   : > { %v3096_v59 = vsel %vm3056_vm3, %v2988_v54, %v3076_v12  ;;  %vm3044_vm3 = vcmp.ge.f32.partialorder %v2970_v6, 0.0  ;;  %v1434_v54 = vld [vmem:[%s7096_s11] sm:$0xff] }
 0x759   : > { %v3084_v38 = vsel %vm3044_vm3, %v2970_v6, %v3064_v10 }
 0x75b   : > { %v2990_v3 = vpop.f32.mrf.mxu2 }
 0x75c   : > { %v2991_v5 = vadd.f32 %v2990_v3, %v6185_v11  ;;  %v3080_v3 = vsel %vm3040_vm5, %v2964_v46, %v3060_v44  ;;  %v6245_v46 = vpop.f32.mrf.mxu1 }
 0x75d   : > { %v3028_v16 = vpop.f32.mrf.mxu3 }
 0x75e   : > { %vm3058_vm2 = vcmp.ge.f32.partialorder %v2991_v5, 0.0  ;;  %v3078_v40 = vmul.f32 0.05, %v2991_v5  ;;  %v3029_v12 = vadd.f32 %v3028_v16, %v6196_v25  ;;  %v3020_v25 = vadd.f32 %v6183_v48, %v6208_v14 }
 0x760   : > { %v3098_v35 = vsel %vm3058_vm2, %v2991_v5, %v3078_v40  ;;  %vm3046_vm2 = vcmp.ge.f32.partialorder %v2973_v62, 0.0  ;;  %vm3053_vm3 = vcmp.ge.f32.partialorder %v3029_v12, 0.0 }
 0x761   : > { %3122 = vmatpush.msra.mxu0 %v3098_v35  ;;  %v3086_v31 = vsel %vm3046_vm2, %v2973_v62, %v3066_v32  ;;  %v3026_v35 = vadd.f32 %v6198_v47, %v6201_v7  ;;  %v3017_v47 = vadd.f32 %v6181_v50, %v2879_v29  ;;  %v3108_v32 = vpop.permute.xlu0 %3107 }
 0x763   : > { %3123 = vmatpush.msra.mxu0 %v3096_v59  ;;  %v3071_v16 = vmul.f32 0.05, %v3026_v35  ;;  %vm3051_vm4 = vcmp.ge.f32.partialorder %v3026_v35, 0.0 }
 0x765   : > { %v3031_v36 = vpop.f32.mrf.mxu3  ;;  %3124 = vmatpush.msra.mxu0 %v3094_v37  ;;  %v3091_v43 = vsel %vm3051_vm4, %v3026_v35, %v3071_v16  ;;  %v3011_v37 = vadd.f32 %v6177_v57, %v2869_v41  ;;  %v6233_v57 = vpop.f32.mrf.mxu0  ;;  %vm1584_vm4 = vcmp.ge.f32.partialorder %v5557_v60, 0.0 }
 0x766   : > { %v3032_v5 = vadd.f32 %v3031_v36, %v6194_v42  ;;  %v3073_v42 = vmul.f32 0.05, %v3029_v12  ;;  %v3065_v36 = vmul.f32 0.05, %v3017_v47 }
 0x767   : > { %3125 = vmatpush.msra.mxu0 %v3092_v0  ;;  %v3061_v50 = vmul.f32 0.05, %v3011_v37  ;;  %v3103_v0 = vpop.permute.xlu1 %3102 }
 0x768   : > { %v3075_v39 = vmul.f32 0.05, %v3032_v5  ;;  %vm3055_vm2 = vcmp.ge.f32.partialorder %v3032_v5, 0.0  ;;  %v3093_v62 = vsel %vm3053_vm3, %v3029_v12, %v3073_v42  ;;  %vm3041_vm3 = vcmp.ge.f32.partialorder %v3011_v37, 0.0  ;;  %v1442_v42 = vld [vmem:[%s7097_s2] sm:$0xff] }
 0x769   : > { %3126 = vmatpush.msra.mxu0 %v3090_v55 }
 0x76a   : > { %v3095_v59 = vsel %vm3055_vm2, %v3032_v5, %v3075_v39 }
 0x76b   : > { %3127 = vmatpush.msra.mxu0 %v3088_v45 }
 0x76d   : > { %v3034_v1 = vpop.f32.mrf.mxu3  ;;  %3128 = vmatpush.msra.mxu0 %v3086_v31 }
 0x76e   : > { %v3035_v56 = vadd.f32 %v3034_v1, %v6192_v2  ;;  %v3023_v2 = vadd.f32 %v6190_v27, %v6205_v22  ;;  %v3014_v27 = vadd.f32 %v6179_v23, %v2874_v18  ;;  %v3067_v22 = vmul.f32 0.05, %v3020_v25 }
 0x76f   : > { %3129 = vmatpush.msra.mxu0 %v3084_v38  ;;  %v3081_v23 = vsel %vm3041_vm3, %v3011_v37, %v3061_v50  ;;  %vm3961_vm3 = vcmask 293888  }
 0x770   : > { %v3077_v40 = vmul.f32 0.05, %v3035_v56  ;;  %vm3057_vm1 = vcmp.ge.f32.partialorder %v3035_v56, 0.0  ;;  %v3069_v7 = vmul.f32 0.05, %v3023_v2  ;;  %vm3049_vm5 = vcmp.ge.f32.partialorder %v3023_v2, 0.0 }
 0x771   : > { %3130 = vmatpush.msra.mxu0 %v3082_v51  ;;  %v3063_v14 = vmul.f32 0.05, %v3014_v27  ;;  %vm3043_vm2 = vcmp.ge.f32.partialorder %v3014_v27, 0.0 }
 0x772   : > { %v3089_v48 = vsel %vm3049_vm5, %v3023_v2, %v3069_v7  ;;  %v1443_v2 = vld [vmem:[%s7097_s2 + $0x8] sm:$0xff]  ;;  %s7107_s2 = smov 112   ;;  %vm3928_vm5 = vcmask 457728  }
 0x773   : > { %3131 = vmatpush.msra.mxu0 %v3080_v3  ;;  %v3083_v49 = vsel %vm3043_vm2, %v3014_v27, %v3063_v14 }
 0x774   : > { %4935 = vmatmul.msk.f32.vlgmr.msra.gmra.mxu0 %vm1833_vm6, %v1434_v54 }
 0x775   : > { %v3037_v28 = vpop.f32.mrf.mxu3 }
 0x776   : > { %v3038_v9 = vadd.f32 %v3037_v28, %v6185_v11  ;;  %v3097_v11 = vsel %vm3057_vm1, %v3035_v56, %v3077_v40  ;;  %vm3045_vm1 = vcmp.ge.f32.partialorder %v3017_v47, 0.0 }
 0x777   : > { %v3085_v29 = vsel %vm3045_vm1, %v3017_v47, %v3065_v36  ;;  %vm3951_vm1 = vcmask 1043456  }
 0x778   : > { %vm3059_vm15 = vcmp.ge.f32.partialorder %v3038_v9, 0.0  ;;  %v3079_v15 = vmul.f32 0.05, %v3038_v9 }
 0x77a   : > { %v3099_v13 = vsel %vm3059_vm15, %v3038_v9, %v3079_v15  ;;  %vm3047_vm15 = vcmp.ge.f32.partialorder %v3020_v25, 0.0 }
 0x77b   : > { %3145 = vmatpush.msra.mxu1 %v3099_v13  ;;  %v3087_v6 = vsel %vm3047_vm15, %v3020_v25, %v3067_v22 }
 0x77c   : > { %4936 = vmatmul.msk.f32.gmra.mxu0 %vm1833_vm6, %v1435_v24 }
 0x77d   : > { %3146 = vmatpush.msra.mxu1 %v3097_v11 }
 0x77f   : > { %3147 = vmatpush.msra.mxu1 %v3095_v59 }
 0x781   : > { %3148 = vmatpush.msra.mxu1 %v3093_v62 }
 0x783   : > { %3149 = vmatpush.msra.mxu1 %v3091_v43 }
 0x785   : > { %3150 = vmatpush.msra.mxu1 %v3089_v48 }
 0x787   : > { %3151 = vmatpush.msra.mxu1 %v3087_v6 }
 0x789   : > { %3152 = vmatpush.msra.mxu1 %v3085_v29 }
 0x78b   : > { %3153 = vmatpush.msra.mxu1 %v3083_v49 }
 0x78d   : > { %3154 = vmatpush.msra.mxu1 %v3081_v23 }
 0x78e   : > { %4937 = vmatmul.msk.f32.vlgmr.msra.gmra.mxu1 %vm1833_vm6, %v1434_v54 }
 0x796   : > { %4938 = vmatmul.msk.f32.gmra.mxu1 %vm1833_vm6, %v1435_v24  ;;  %vm2860_vm6 = vcmp.ge.f32.partialorder %v6233_v57, 0.0 }
 0x7f1   : > { %v3133_v18 = vpop.f32.mrf.mxu0 }
 0x7f2   : > { %v6235_v53 = vadd.f32 %v3133_v18, %v3103_v0 }
 0x7f4   : > { %3264 = vrot.lane.b32.xlu1 %v6235_v53, %s7029_s15 }
 0x7f9   : > { %v3136_v55 = vpop.f32.mrf.mxu0 }
 0x7fa   : > { %v6239_v41 = vadd.f32 %v3136_v55, %v3108_v32 }
 0x7fc   : > { %3268 = vrot.lane.b32.xlu2 %v6239_v41, %s7029_s15  ;;  %3228 = vrot.lane.b32.xlu1 %v6239_v41, %s7030_s22 }
 0x80b   : > { %v3156_v10 = vpop.f32.mrf.mxu1 }
 0x80c   : > { %v6247_v45 = vadd.f32 %v3156_v10, %v3103_v0 }
 0x80e   : > { %3266 = vrot.lane.b32.xlu2 %v6247_v45, %s7029_s15 }
 0x813   : > { %v3159_v63 = vpop.f32.mrf.mxu1 }
 0x814   : > { %v6251_v31 = vadd.f32 %v3159_v63, %v3108_v32 }
 0x816   : > { %3270 = vrot.lane.b32.xlu0 %v6251_v31, %s7029_s15  ;;  %3166 = vrot.lane.b32.xlu2 %v6235_v53, %s5209_s16 }
 0x817   : > { %3172 = vrot.lane.b32.xlu1 %v6251_v31, %s5209_s16 }
 0x81e   : > { %3170 = vrot.lane.b32.xlu0 %v6239_v41, %s5209_s16  ;;  %3244 = vrot.lane.b32.xlu2 %v6235_v53, %s7033_s18 }
 0x81f   : > { %3250 = vrot.lane.b32.xlu1 %v6251_v31, %s7033_s18 }
 0x826   : > { %3168 = vrot.lane.b32.xlu0 %v6247_v45, %s5209_s16  ;;  %3224 = vrot.lane.b32.xlu2 %v6235_v53, %s7030_s22 }
 0x82e   : > { %3248 = vrot.lane.b32.xlu0 %v6239_v41, %s7033_s18 }
 0x836   : > { %3246 = vrot.lane.b32.xlu0 %v6247_v45, %s7033_s18 }
 0x856   : > { %v3269_v1 = vpop.permute.xlu2 %3268 }
 0x866   : > { %v3265_v44 = vpop.permute.xlu1 %3264 }
 0x868   : > { %v6273_v38 = vpop.permute.xlu2 %3266 }
 0x869   : > { %v3278_v51 = vsel %vm2037_vm7, %v6273_v38, 0.0  ;;  %v3272_v54 = vsel %vm2037_vm7, %v3265_v44, %v6273_v38 }
 0x86a   : > { %3284 = vrot.lane.b32.xlu0 %v3278_v51, %s7030_s22  ;;  %3282 = vrot.lane.b32.xlu2 %v3272_v54, %s7030_s22 }
 0x86e   : > { %v6291_v15 = vpop.permute.xlu1 %3228 }
 0x86f   : > { %v3239_v49 = vsel %vm1945_vm9, 0.0, %v6291_v15 }
 0x870   : > { %v3167_v12 = vpop.permute.xlu2 %3166 }
 0x871   : > { %v3180_v39 = vsel %vm1539_vm0, 0.0, %v3167_v12 }
 0x878   : > { %v3245_v11 = vpop.permute.xlu2 %3244 }
 0x880   : > { %v6321_v16 = vpop.permute.xlu2 %3224 }
 0x881   : > { %v3238_v18 = vsel %vm1945_vm9, 0.0, %v6321_v16 }
 0x888   : > { %v6281_v3 = vpop.permute.xlu0 %3270 }
 0x889   : > { %v3273_v56 = vsel %vm2037_vm7, %v3269_v1, %v6281_v3  ;;  %v3279_v28 = vsel %vm2037_vm7, %v6281_v3, 0.0  ;;  %v3173_v35 = vpop.permute.xlu1 %3172 }
 0x88a   : > { %3338 = vmatpush.msrb.mxu0 %v3273_v56  ;;  %3288 = vrot.lane.b32.xlu0 %v3279_v28, %s7030_s22 }
 0x88c   : > { %3339 = vmatpush.msrb.mxu0 %v3272_v54 }
 0x890   : > { %v3171_v5 = vpop.permute.xlu0 %3170 }
 0x891   : > { %v3181_v9 = vsel %vm1539_vm0, 0.0, %v3171_v5  ;;  %v6305_v13 = vsel %vm1539_vm0, %v3171_v5, %v3173_v35  ;;  %v3251_v59 = vpop.permute.xlu1 %3250  ;;  %v1441_v35 = vld [vmem:[%s7098_s0 + $0x18] sm:$0xff] }
 0x892   : > { %3208 = vrot.lane.b32.xlu1 %v3181_v9, %s7033_s18  ;;  %3302 = vrot.lane.b32.xlu0 %v3272_v54, %s7033_s18 }
 0x898   : > { %v3169_v40 = vpop.permute.xlu0 %3168 }
 0x899   : > { %v6294_v24 = vsel %vm1539_vm0, %v3167_v12, %v3169_v40  ;;  %v1440_v40 = vld [vmem:[%s7098_s0 + $0x10] sm:$0xff] }
 0x89a   : > { %3286 = vrot.lane.b32.xlu1 %v3273_v56, %s7030_s22  ;;  %3306 = vrot.lane.b32.xlu0 %v3273_v56, %s7033_s18 }
 0x89b   : > { %3206 = vrot.lane.b32.xlu2 %v6294_v24, %s7033_s18 }
 0x8a0   : > { %v3249_v25 = vpop.permute.xlu0 %3248 }
 0x8a1   : > { %v3253_v6 = vsel %vm1972_vm11, %v3249_v25, %v3251_v59 }
 0x8a2   : > { %3204 = vrot.lane.b32.xlu1 %v3180_v39, %s7033_s18  ;;  %3230 = vrot.lane.b32.xlu0 %v6251_v31, %s7030_s22 }
 0x8a3   : > { %3210 = vrot.lane.b32.xlu2 %v6305_v13, %s7033_s18 }
 0x8a8   : > { %v3247_v7 = vpop.permute.xlu0 %3246 }
 0x8a9   : > { %v3252_v50 = vsel %vm1972_vm11, %v3245_v11, %v3247_v7 }
 0x8aa   : > { %3304 = vrot.lane.b32.xlu1 %v3278_v51, %s7033_s18  ;;  %3186 = vrot.lane.b32.xlu0 %v6294_v24, %s7030_s22  ;;  %v1438_v51 = vld [vmem:[%s7098_s0] sm:$0xff] }
 0x8ab   : > { %3188 = vrot.lane.b32.xlu2 %v3181_v9, %s7030_s22 }
 0x8b2   : > { %3308 = vrot.lane.b32.xlu1 %v3279_v28, %s7033_s18  ;;  %v1439_v28 = vld [vmem:[%s7098_s0 + $0x8] sm:$0xff]  ;;  %s7102_s0 = smov 1  }
 0x8b3   : > { %3184 = vrot.lane.b32.xlu2 %v3180_v39, %s7030_s22  ;;  %v3259_v39 = vsel %vm1972_vm11, %v3251_v59, 0.0 }
 0x8ba   : > { %3226 = vrot.lane.b32.xlu1 %v6247_v45, %s7030_s22 }
 0x8bb   : > { %3190 = vrot.lane.b32.xlu2 %v6305_v13, %s7030_s22 }
 0x8c2   : > { %3329 = vperm.xlu1 %5111, %v1443_v2  }
 0x8c3   : > { %3324 = vperm.xlu2 %5112, %v1442_v42  }
 0x8c4   : > { %v3283_v47 = vpop.permute.xlu2 %3282 }
 0x8c5   : > { %v3296_v36 = vsel %vm1945_vm9, 0.0, %v3283_v47 }
 0x8dc   : > { %v3285_v22 = vpop.permute.xlu0 %3284 }
 0x8f5   : > { %v6323_v27 = vpop.permute.xlu2 %3206 }
 0x8fc   : > { %v3289_v48 = vpop.permute.xlu0 %3288 }
 0x8fd   : > { %v6329_v14 = vpop.permute.xlu2 %3210 }
 0x904   : > { %v3209_v62 = vpop.permute.xlu1 %3208  ;;  %v3303_v23 = vpop.permute.xlu0 %3302 }
 0x905   : > { %v6343_v0 = vpop.permute.xlu2 %3188 }
 0x906   : > { %v3199_v1 = vsel %vm1945_vm9, 0.0, %v6343_v0 }
 0x90c   : > { %v3287_v43 = vpop.permute.xlu1 %3286 }
 0x90d   : > { %v3297_v37 = vsel %vm1945_vm9, 0.0, %v3287_v43  ;;  %v3185_v10 = vpop.permute.xlu2 %3184 }
 0x90e   : > { %4939 = vmatpush.msk.msrb.mxu0 %vm5674_vm8, %v3297_v37  ;;  %v3198_v54 = vsel %vm1945_vm9, 0.0, %v3185_v10 }
 0x910   : > { %4940 = vmatpush.msk.msrb.mxu0 %vm5674_vm8, %v3296_v36 }
 0x912   : > { %4941 = vmatpush.msk.msrb.mxu0 %vm5682_vm10, %v3253_v6 }
 0x914   : > { %4942 = vmatpush.msk.msrb.mxu0 %vm5682_vm10, %v3252_v50  ;;  %v3205_v29 = vpop.permute.xlu1 %3204 }
 0x915   : > { %v3212_v55 = vsel %vm1972_vm11, %v3205_v29, %v6323_v27 }
 0x916   : > { %3344 = vmatpush.msrb.mxu0 %v6239_v41  ;;  %v3307_v41 = vpop.permute.xlu0 %3306 }
 0x918   : > { %3345 = vmatpush.msrb.mxu0 %v6235_v53  ;;  %v3213_v53 = vsel %vm1972_vm11, %v3209_v62, %v6329_v14 }
 0x91a   : > { %4943 = vmatpush.msk.msrb.mxu0 %vm5674_vm8, %v3239_v49 }
 0x91c   : > { %4944 = vmatpush.msk.msrb.mxu0 %vm5674_vm8, %v3238_v18  ;;  %v3305_v32 = vpop.permute.xlu1 %3304 }
 0x91d   : > { %v3310_v56 = vsel %vm1972_vm11, %v3303_v23, %v3305_v32  ;;  %v3316_v9 = vsel %vm1972_vm11, %v3305_v32, 0.0 }
 0x91e   : > { %4945 = vmatpush.msk.msrb.mxu0 %vm5682_vm10, %v3213_v53  ;;  %v3231_v2 = vpop.permute.xlu0 %3230 }
 0x91f   : > { %v3233_v11 = vsel %vm1945_vm9, %v6291_v15, %v3231_v2  ;;  %v3191_v15 = vpop.permute.xlu2 %3190 }
 0x920   : > { %4946 = vmatpush.msk.msrb.mxu0 %vm5682_vm10, %v3212_v55  ;;  %v3193_v59 = vsel %vm1945_vm9, %v6343_v0, %v3191_v15 }
 0x922   : > { %4948 = vmatpush.msk.msrb.mxu0 %vm5714_vm12, %v3171_v5 }
 0x924   : > { %4950 = vmatpush.msk.msrb.mxu0 %vm5714_vm12, %v3167_v12  ;;  %v3309_v63 = vpop.permute.xlu1 %3308  ;;  %v3291_v12 = vsel %vm1945_vm9, %v3287_v43, %v3289_v48 }
 0x925   : > { %v3311_v44 = vsel %vm1972_vm11, %v3307_v41, %v3309_v63  ;;  %v3317_v5 = vsel %vm1972_vm11, %v3309_v63, 0.0 }
 0x926   : > { %4951 = vmatpush.msk.msrb.mxu0 %vm5674_vm8, %v3199_v1  ;;  %4953 = vmatpush.msk.msrb.mxu1 %vm5682_vm10, %v3311_v44 }
 0x928   : > { %4952 = vmatpush.msk.msrb.mxu0 %vm5674_vm8, %v3198_v54  ;;  %4954 = vmatpush.msk.msrb.mxu1 %vm5682_vm10, %v3310_v56 }
 0x929   : > { %3354 = vmatmul.f32.vlgmr.msrb.gmra.mxu0 %v1438_v51  ;;  %4955 = vmatmul.msk.f32.vlgmr.msrb.gmra.mxu1 %vm1539_vm0, %v1439_v28 }
 0x92a   : > { %4957 = vmatpush.msk.msra.mxu1 %vm2037_vm7, %v6281_v3  ;;  %4969 = vmatpush.msk.msra.mxu0 %vm5752_vm14, %v3317_v5  ;;  %v3290_v3 = vsel %vm1945_vm9, %v3283_v47, %v3285_v22 }
 0x92c   : > { %4958 = vmatpush.msk.msra.mxu1 %vm2037_vm7, %v6273_v38  ;;  %4970 = vmatpush.msk.msra.mxu0 %vm5752_vm14, %v3316_v9  ;;  %v3258_v38 = vsel %vm1972_vm11, %v3247_v7, 0.0  ;;  %v3227_v42 = vpop.permute.xlu1 %3226  ;;  %v3325_v7 = vpop.permute.xlu2 %3324 }
 0x92d   : > { %v3232_v25 = vsel %vm1945_vm9, %v6321_v16, %v3227_v42  ;;  %v3187_v16 = vpop.permute.xlu0 %3186 }
 0x92e   : > { %4959 = vmatpush.msk.msra.mxu1 %vm5739_vm13, %v3291_v12  ;;  %v3192_v47 = vsel %vm1945_vm9, %v3185_v10, %v3187_v16 }
 0x930   : > { %4960 = vmatpush.msk.msra.mxu1 %vm5739_vm13, %v3290_v3 }
 0x931   : > { %3357 = vmatmul.f32.gmra.mxu0 %v1440_v40  ;;  %4956 = vmatmul.msk.f32.gmra.mxu1 %vm1539_vm0, %v1441_v35 }
 0x932   : > { %4961 = vmatpush.msk.msra.mxu1 %vm5752_vm14, %v3259_v39 }
 0x934   : > { %4962 = vmatpush.msk.msra.mxu1 %vm5752_vm14, %v3258_v38  ;;  %v3330_v43 = vpop.permute.xlu1 %3329 }
 0x936   : > { %3390 = vmatpush.msra.mxu1 %v6251_v31  ;;  %v3219_v31 = vsel %vm1972_vm11, %v6329_v14, 0.0 }
 0x938   : > { %3391 = vmatpush.msra.mxu1 %v6247_v45  ;;  %v3218_v45 = vsel %vm1972_vm11, %v6323_v27, 0.0 }
 0x939   : > { %4971 = vmatmul.msk.f32.vlgmr.msra.gmra.mxu0 %vm1539_vm0, %v1439_v28 }
 0x93a   : > { %4963 = vmatpush.msk.msra.mxu1 %vm5739_vm13, %v3233_v11 }
 0x93c   : > { %4964 = vmatpush.msk.msra.mxu1 %vm5739_vm13, %v3232_v25 }
 0x93e   : > { %4965 = vmatpush.msk.msra.mxu1 %vm5752_vm14, %v3219_v31 }
 0x940   : > { %4966 = vmatpush.msk.msra.mxu1 %vm5752_vm14, %v3218_v45 }
 0x941   : > { %4972 = vmatmul.msk.f32.gmra.mxu0 %vm1539_vm0, %v1441_v35 }
 0x942   : > { %3396 = vmatpush.msra.mxu1 %v6305_v13 }
 0x944   : > { %3397 = vmatpush.msra.mxu1 %v6294_v24 }
 0x946   : > { %4967 = vmatpush.msk.msra.mxu1 %vm5739_vm13, %v3193_v59 }
 0x948   : > { %4968 = vmatpush.msk.msra.mxu1 %vm5739_vm13, %v3192_v47 }
 0x949   : > { %3400 = vmatmul.f32.vlgmr.msra.gmra.mxu1 %v1438_v51 }
 0x951   : > { %3403 = vmatmul.f32.gmra.mxu1 %v1440_v40 }
 0x9a6   : > { %v3355_v13 = vpop.f32.mrf.mxu0  ;;  %v3378_v27 = vpop.f32.mrf.mxu1 }
 0x9a7   : > { %v3356_v62 = vadd.f32 %v3355_v13, %v3325_v7 }
 0x9a9   : > { %v3379_v22 = vadd.f32 %v3378_v27, %v3356_v62 }
 0x9ab   : > { %v6434_v24 = vadd.f32 %v3379_v22, %v6129_v4 }
 0x9ad   : > { %3536 = vrot.lane.b32.xlu2 %v6434_v24, %s7029_s15 }
 0x9ae   : > { %v3358_v37 = vpop.f32.mrf.mxu0  ;;  %v3381_v48 = vpop.f32.mrf.mxu1 }
 0x9af   : > { %v3359_v36 = vadd.f32 %v3358_v37, %v3330_v43 }
 0x9b1   : > { %v3382_v14 = vadd.f32 %v3381_v48, %v3359_v36 }
 0x9b3   : > { %v6439_v6 = vadd.f32 %v3382_v14, %v6126_v19 }
 0x9b5   : > { %3500 = vrot.lane.b32.xlu2 %v6439_v6, %s7030_s22  ;;  %3540 = vrot.lane.b32.xlu0 %v6439_v6, %s7029_s15 }
 0x9b6   : > { %v3424_v50 = vpop.f32.mrf.mxu0 }
 0x9be   : > { %v3427_v18 = vpop.f32.mrf.mxu0 }
 0x9c6   : > { %v3401_v4 = vpop.f32.mrf.mxu1 }
 0x9c7   : > { %v3402_v29 = vadd.f32 %v3401_v4, %v3325_v7 }
 0x9c9   : > { %v3425_v49 = vadd.f32 %v3424_v50, %v3402_v29 }
 0x9cb   : > { %v6446_v23 = vadd.f32 %v3425_v49, %v6146_v26 }
 0x9cd   : > { %3538 = vrot.lane.b32.xlu0 %v6446_v23, %s7029_s15 }
 0x9ce   : > { %v3404_v0 = vpop.f32.mrf.mxu1 }
 0x9cf   : > { %v3405_v19 = vadd.f32 %v3404_v0, %v3330_v43 }
 0x9d1   : > { %v3428_v32 = vadd.f32 %v3427_v18, %v3405_v19 }
 0x9d3   : > { %v6451_v53 = vadd.f32 %v3428_v32, %v6142_v8 }
 0x9d5   : > { %3542 = vrot.lane.b32.xlu1 %v6451_v53, %s7029_s15  ;;  %3444 = vrot.lane.b32.xlu2 %v6451_v53, %s5209_s16  ;;  %s7100_s15 = sld [smem:[#allocation16_spill]] }
 0x9d6   : > { %3438 = vrot.lane.b32.xlu0 %v6434_v24, %s5209_s16 }
 0x9db   : > { %v1449_v39 = vld [vmem:[%s7100_s15 + $0x8] sm:$0xff]  ;;  %v1448_v38 = vld [vmem:[%s7100_s15] sm:$0xff] }
 0x9dd   : > { %3522 = vrot.lane.b32.xlu2 %v6451_v53, %s7033_s18  ;;  %3442 = vrot.lane.b32.xlu1 %v6439_v6, %s5209_s16 }
 0x9de   : > { %3516 = vrot.lane.b32.xlu0 %v6434_v24, %s7033_s18 }
 0x9e5   : > { %3440 = vrot.lane.b32.xlu1 %v6446_v23, %s5209_s16  ;;  %s7099_s16 = sld [smem:[#allocation18_spill]] }
 0x9e6   : > { %3496 = vrot.lane.b32.xlu0 %v6434_v24, %s7030_s22 }
 0x9eb   : > { %v1453_v35 = vld [vmem:[%s7099_s16 + $0x8] sm:$0xff]  ;;  %v1452_v2 = vld [vmem:[%s7099_s16] sm:$0xff] }
 0x9ed   : > { %3520 = vrot.lane.b32.xlu1 %v6439_v6, %s7033_s18 }
 0x9f5   : > { %3518 = vrot.lane.b32.xlu1 %v6446_v23, %s7033_s18 }
 0xa07   : > { %v3537_v26 = vpop.permute.xlu2 %3536 }
 0xa0f   : > { %v6488_v28 = vpop.permute.xlu2 %3500 }
 0xa10   : > { %v3511_v37 = vsel %vm1945_vm9, 0.0, %v6488_v28 }
 0xa27   : > { %v3541_v8 = vpop.permute.xlu0 %3540 }
 0xa2f   : > { %v3445_v12 = vpop.permute.xlu2 %3444 }
 0xa37   : > { %v3523_v25 = vpop.permute.xlu2 %3522 }
 0xa38   : > { %v3531_v0 = vsel %vm1972_vm11, %v3523_v25, 0.0 }
 0xa3f   : > { %v3539_v55 = vpop.permute.xlu0 %3538 }
 0xa40   : > { %v3550_v41 = vsel %vm2037_vm7, %v3539_v55, 0.0  ;;  %v3544_v10 = vsel %vm2037_vm7, %v3537_v26, %v3539_v55 }
 0xa41   : > { %3556 = vrot.lane.b32.xlu1 %v3550_v41, %s7030_s22  ;;  %3554 = vrot.lane.b32.xlu0 %v3544_v10, %s7030_s22 }
 0xa47   : > { %v3543_v63 = vpop.permute.xlu1 %3542 }
 0xa48   : > { %4991 = vmatpush.msk.msrb.mxu0 %vm2037_vm7, %v3543_v63  ;;  %v3545_v1 = vsel %vm2037_vm7, %v3541_v8, %v3543_v63  ;;  %v6486_v54 = vpop.permute.xlu0 %3438  ;;  %v3551_v9 = vsel %vm2037_vm7, %v3543_v63, 0.0 }
 0xa49   : > { %3610 = vmatpush.msra.mxu2 %v3545_v1  ;;  %v3452_v3 = vsel %vm1539_vm0, 0.0, %v6486_v54 }
 0xa4a   : > { %4992 = vmatpush.msk.msrb.mxu0 %vm2037_vm7, %v3539_v55 }
 0xa4b   : > { %3611 = vmatpush.msra.mxu2 %v3544_v10 }
 0xa4f   : > { %v6480_v44 = vpop.permute.xlu1 %3442 }
 0xa50   : > { %v3453_v51 = vsel %vm1539_vm0, 0.0, %v6480_v44  ;;  %v6505_v40 = vsel %vm1539_vm0, %v6480_v44, %v3445_v12  ;;  %v3517_v11 = vpop.permute.xlu0 %3516 }
 0xa51   : > { %3480 = vrot.lane.b32.xlu2 %v3453_v51, %s7033_s18  ;;  %3460 = vrot.lane.b32.xlu1 %v3453_v51, %s7030_s22 }
 0xa57   : > { %v3441_v56 = vpop.permute.xlu1 %3440 }
 0xa58   : > { %v6492_v5 = vsel %vm1539_vm0, %v6486_v54, %v3441_v56  ;;  %v6526_v15 = vpop.permute.xlu0 %3496 }
 0xa59   : > { %3558 = vrot.lane.b32.xlu2 %v3545_v1, %s7030_s22  ;;  %3560 = vrot.lane.b32.xlu1 %v3551_v9, %s7030_s22  ;;  %s7101_s22 = sld [smem:[#allocation20_spill]]  ;;  %v3510_v36 = vsel %vm1945_vm9, 0.0, %v6526_v15 }
 0xa5a   : > { %3478 = vrot.lane.b32.xlu0 %v6492_v5, %s7033_s18 }
 0xa5f   : > { %v1455_v42 = vld [vmem:[%s7101_s22] sm:$0xf]  ;;  %v3521_v31 = vpop.permute.xlu1 %3520  ;;  %s7103_s22 = sld [smem:[#allocation15_spill]] }
 0xa60   : > { %v3525_v62 = vsel %vm1972_vm11, %v3521_v31, %v3523_v25 }
 0xa61   : > { %3578 = vrot.lane.b32.xlu1 %v3545_v1, %s7033_s18  ;;  %3476 = vrot.lane.b32.xlu2 %v3452_v3, %s7033_s18 }
 0xa62   : > { %3482 = vrot.lane.b32.xlu0 %v6505_v40, %s7033_s18 }
 0xa65   : > { %v1447_v17 = vld [vmem:[%s7103_s22 + $0x18] sm:$0xff] }
 0xa67   : > { %v3519_v16 = vpop.permute.xlu1 %3518 }
 0xa68   : > { %v3524_v27 = vsel %vm1972_vm11, %v3517_v11, %v3519_v16  ;;  %v3530_v18 = vsel %vm1972_vm11, %v3519_v16, 0.0  ;;  %v2862_v16 = vmul.f32 0.05, %v6233_v57 }
 0xa69   : > { %3574 = vrot.lane.b32.xlu1 %v3544_v10, %s7033_s18  ;;  %3456 = vrot.lane.b32.xlu2 %v3452_v3, %s7102_s0  ;;  %v1445_v10 = vld [vmem:[%s7103_s22 + $0x8] sm:$0xff] }
 0xa6a   : > { %3502 = vrot.lane.b32.xlu0 %v6451_v53, %s7102_s0 }
 0xa71   : > { %3580 = vrot.lane.b32.xlu2 %v3551_v9, %s7033_s18  ;;  %3458 = vrot.lane.b32.xlu1 %v6492_v5, %s7102_s0  ;;  %v1446_v9 = vld [vmem:[%s7103_s22 + $0x10] sm:$0xff] }
 0xa72   : > { %3498 = vrot.lane.b32.xlu0 %v6446_v23, %s7102_s0 }
 0xa79   : > { %3576 = vrot.lane.b32.xlu2 %v3550_v41, %s7033_s18  ;;  %3709 = vperm.xlu1 %5111, %v1453_v35   ;;  %s7104_s18 = sld [smem:[#allocation17_spill]] }
 0xa7a   : > { %3462 = vrot.lane.b32.xlu0 %v6505_v40, %s7102_s0 }
 0xa81   : > { %3601 = vperm.xlu2 %5112, %v1449_v39  }
 0xa82   : > { %3596 = vperm.xlu0 %5110, %v1448_v38  }
 0xa89   : > { %3704 = vperm.xlu2 %5112, %v1452_v2  }
 0xa8a   : > { %3767 = vperm.xlu0 %5110, %v1455_v42  }
 0xaab   : > { %v3481_v45 = vpop.permute.xlu2 %3480 }
 0xab3   : > { %v3559_v59 = vpop.permute.xlu2 %3558  ;;  %v3555_v7 = vpop.permute.xlu0 %3554 }
 0xab4   : > { %v3569_v47 = vsel %vm1945_vm9, 0.0, %v3559_v59  ;;  %v3568_v13 = vsel %vm1945_vm9, 0.0, %v3555_v7  ;;  %v3557_v22 = vpop.permute.xlu1 %3556 }
 0xab5   : > { %4973 = vmatpush.msk.msra.mxu2 %vm5674_vm8, %v3569_v47  ;;  %v3562_v49 = vsel %vm1945_vm9, %v3555_v7, %v3557_v22  ;;  %v2245_v47 = vmul.f32 0.05, %v5915_v33  ;;  %v1585_v7 = vmul.f32 0.05, %v5559_v61 }
 0xab7   : > { %4974 = vmatpush.msk.msra.mxu2 %vm5674_vm8, %v3568_v13  ;;  %v2864_v13 = vsel %vm2860_vm6, %v6233_v57, %v2862_v16  ;;  %v2863_v57 = vmul.f32 0.05, %v6245_v46  ;;  %v1497_v16 = vld [vmem:[%s5436_s17 + $0x20] sm:$0xff]  ;;  %vm3989_vm6 = vcmask 523264  }
 0xab9   : > { %4975 = vmatpush.msk.msra.mxu2 %vm5682_vm10, %v3525_v62 }
 0xabb   : > { %v3477_v43 = vpop.permute.xlu2 %3476  ;;  %4976 = vmatpush.msk.msra.mxu2 %vm5682_vm10, %v3524_v27  ;;  %v1450_v27 = vld [vmem:[%s7104_s18] sm:$0xff] }
 0xabd   : > { %3616 = vmatpush.msra.mxu2 %v6439_v6 }
 0xabf   : > { %3617 = vmatpush.msra.mxu2 %v6434_v24 }
 0xac1   : > { %4977 = vmatpush.msk.msra.mxu2 %vm5674_vm8, %v3511_v37 }
 0xac3   : > { %v6548_v48 = vpop.permute.xlu1 %3460  ;;  %v6550_v14 = vpop.permute.xlu2 %3456  ;;  %4978 = vmatpush.msk.msra.mxu2 %vm5674_vm8, %v3510_v36 }
 0xacb   : > { %v3561_v50 = vpop.permute.xlu1 %3560  ;;  %v3581_v6 = vpop.permute.xlu2 %3580 }
 0xacc   : > { %v3563_v24 = vsel %vm1945_vm9, %v3559_v59, %v3561_v50  ;;  %v3589_v4 = vsel %vm1972_vm11, %v3581_v6, 0.0  ;;  %v3479_v29 = vpop.permute.xlu0 %3478 }
 0xacd   : > { %4993 = vmatpush.msk.msrb.mxu0 %vm5739_vm13, %v3563_v24  ;;  %5003 = vmatpush.msk.msrb.mxu1 %vm5752_vm14, %v3589_v4  ;;  %v3484_v63 = vsel %vm1972_vm11, %v3477_v43, %v3479_v29  ;;  %v3490_v3 = vsel %vm1972_vm11, %v3479_v29, 0.0 }
 0xacf   : > { %4994 = vmatpush.msk.msrb.mxu0 %vm5739_vm13, %v3562_v49 }
 0xad1   : > { %4995 = vmatpush.msk.msrb.mxu0 %vm5752_vm14, %v3531_v0 }
 0xad3   : > { %v3579_v19 = vpop.permute.xlu1 %3578  ;;  %v3577_v32 = vpop.permute.xlu2 %3576  ;;  %4996 = vmatpush.msk.msrb.mxu0 %vm5752_vm14, %v3530_v18 }
 0xad4   : > { %v3583_v8 = vsel %vm1972_vm11, %v3579_v19, %v3581_v6  ;;  %v3588_v26 = vsel %vm1972_vm11, %v3577_v32, 0.0  ;;  %v3483_v55 = vpop.permute.xlu0 %3482  ;;  %v1451_v6 = vld [vmem:[%s7104_s18 + $0x8] sm:$0xff] }
 0xad5   : > { %v3485_v41 = vsel %vm1972_vm11, %v3481_v45, %v3483_v55  ;;  %4987 = vmatpush.msk.msra.mxu3 %vm5682_vm10, %v3583_v8  ;;  %3662 = vmatpush.msrb.mxu0 %v6451_v53  ;;  %v3491_v12 = vsel %vm1972_vm11, %v3483_v55, 0.0  ;;  %v1454_v8 = vld [vmem:[%s7105_s1] sm:$0xf]  ;;  %s7106_s1 = smov 127  }
 0xad6   : > { %4979 = vmatpush.msk.msra.mxu2 %vm5682_vm10, %v3485_v41  ;;  %5004 = vmatpush.msk.msrb.mxu1 %vm5752_vm14, %v3588_v26 }
 0xad7   : > { %3663 = vmatpush.msrb.mxu0 %v6446_v23  ;;  %5005 = vmatmul.msk.f32.vlgmr.msrb.gmra.mxu1 %vm1539_vm0, %v1445_v10  ;;  %v3471_v23 = vsel %vm1945_vm9, 0.0, %v6548_v48 }
 0xad8   : > { %4980 = vmatpush.msk.msra.mxu2 %vm5682_vm10, %v3484_v63 }
 0xada   : > { %4982 = vmatpush.msk.msra.mxu2 %vm5714_vm12, %v6480_v44  ;;  %v1444_v44 = vld [vmem:[%s7103_s22] sm:$0xff] }
 0xadb   : > { %v3575_v53 = vpop.permute.xlu1 %3574  ;;  %v3602_v2 = vpop.permute.xlu2 %3601 }
 0xadc   : > { %v3582_v1 = vsel %vm1972_vm11, %v3575_v53, %v3577_v32  ;;  %4984 = vmatpush.msk.msra.mxu2 %vm5714_vm12, %v6486_v54  ;;  %v3503_v51 = vpop.permute.xlu0 %3502  ;;  %v3470_v54 = vsel %vm1945_vm9, 0.0, %v6550_v14  ;;  %vm3712_vm12 = vcmask 326656  }
 0xadd   : > { %v3505_v56 = vsel %vm1945_vm9, %v6488_v28, %v3503_v51  ;;  %4988 = vmatpush.msk.msra.mxu3 %vm5682_vm10, %v3582_v1  ;;  %vm1583_vm10 = vcmp.ge.f32.partialorder %v5559_v61, 0.0 }
 0xade   : > { %4985 = vmatpush.msk.msra.mxu2 %vm5674_vm8, %v3471_v23  ;;  %4997 = vmatpush.msk.msrb.mxu0 %vm5739_vm13, %v3505_v56  ;;  %v1587_v43 = vsel %vm1583_vm10, %v5559_v61, %v1585_v7  ;;  %v1586_v61 = vmul.f32 0.05, %v5557_v60  ;;  %vm4118_vm10 = vcmask 97280  }
 0xadf   : > { %4989 = vmatmul.msk.f32.vlgmr.msra.gmra.mxu3 %vm1539_vm0, %v1445_v10  ;;  %5006 = vmatmul.msk.f32.gmra.mxu1 %vm1539_vm0, %v1447_v17 }
 0xae0   : > { %4986 = vmatpush.msk.msra.mxu2 %vm5674_vm8, %v3470_v54  ;;  %vm2243_vm8 = vcmp.ge.f32.partialorder %v5915_v33, 0.0  ;;  %v1588_v29 = vsel %vm1584_vm4, %v5557_v60, %v1586_v61  ;;  %v1507_v54 = vld [vmem:[%s5436_s17 + $0x70] sm:$0xff]  ;;  %vm4294_vm4 = vcmask 15360  }
 0xae1   : > { %3626 = vmatmul.f32.vlgmr.msra.gmra.mxu2 %v1444_v44  ;;  %v2247_v62 = vsel %vm2243_vm8, %v5915_v33, %v2245_v47  ;;  %v2246_v33 = vmul.f32 0.05, %v5927_v21  ;;  %v1512_v47 = vld [vmem:[%s5436_s17 + $0x98] sm:$0xff]  ;;  %vm4085_vm8 = vcmask 31744  }
 0xae3   : > { %v3459_v35 = vpop.permute.xlu1 %3458  ;;  %v3705_v19 = vpop.permute.xlu2 %3704 }
 0xae4   : > { %v3499_v58 = vpop.permute.xlu0 %3498  ;;  %v3464_v38 = vsel %vm1945_vm9, %v6550_v14, %v3459_v35  ;;  %v1520_v35 = vld [vmem:[%s5436_s17 + $0xd8] sm:$0xff] }
 0xae5   : > { %v3504_v28 = vsel %vm1945_vm9, %v6526_v15, %v3499_v58  ;;  %v1523_v58 = vld [vmem:[%s5436_s17 + $0xf0] sm:$0xff] }
 0xae6   : > { %4998 = vmatpush.msk.msrb.mxu0 %vm5739_vm13, %v3504_v28  ;;  %v1506_v28 = vld [vmem:[%s5436_s17 + $0x68] sm:$0xff] }
 0xae7   : > { %4990 = vmatmul.msk.f32.gmra.mxu3 %vm1539_vm0, %v1447_v17  ;;  %v1524_v17 = vld [vmem:[%s5436_s17 + $0xf8] sm:$0xff] }
 0xae8   : > { %4999 = vmatpush.msk.msrb.mxu0 %vm5752_vm14, %v3491_v12  ;;  %v1505_v12 = vld [vmem:[%s5436_s17 + $0x60] sm:$0xff] }
 0xae9   : > { %3629 = vmatmul.f32.gmra.mxu2 %v1446_v9 }
 0xaea   : > { %5000 = vmatpush.msk.msrb.mxu0 %vm5752_vm14, %v3490_v3  ;;  %vm2244_vm14 = vcmp.ge.f32.partialorder %v5927_v21, 0.0  ;;  %v1521_v3 = vld [vmem:[%s5436_s17 + $0xe0] sm:$0xff] }
 0xaeb   : > { %v2248_v4 = vsel %vm2244_vm14, %v5927_v21, %v2246_v33  ;;  %v3710_v0 = vpop.permute.xlu1 %3709  ;;  %v1493_v33 = vld [vmem:[%s5436_s17] sm:$0xff] }
 0xaec   : > { %3668 = vmatpush.msrb.mxu0 %v6505_v40  ;;  %v3463_v52 = vpop.permute.xlu0 %3462 }
 0xaed   : > { %v3465_v39 = vsel %vm1945_vm9, %v6548_v48, %v3463_v52  ;;  %v1504_v52 = vld [vmem:[%s5436_s17 + $0x58] sm:$0xff] }
 0xaee   : > { %3669 = vmatpush.msrb.mxu0 %v6492_v5 }
 0xaf0   : > { %5001 = vmatpush.msk.msrb.mxu0 %vm5739_vm13, %v3465_v39  ;;  %v1503_v39 = vld [vmem:[%s5436_s17 + $0x50] sm:$0xff] }
 0xaf2   : > { %5002 = vmatpush.msk.msrb.mxu0 %vm5739_vm13, %v3464_v38  ;;  %vm2861_vm13 = vcmp.ge.f32.partialorder %v6245_v46, 0.0  ;;  %v1519_v38 = vld [vmem:[%s5436_s17 + $0xd0] sm:$0xff] }
 0xaf3   : > { %3672 = vmatmul.f32.vlgmr.msrb.gmra.mxu0 %v1444_v44  ;;  %v2865_v24 = vsel %vm2861_vm13, %v6245_v46, %v2863_v57  ;;  %v1508_v44 = vld [vmem:[%s5436_s17 + $0x78] sm:$0xff]  ;;  %v1494_v57 = vld [vmem:[%s5436_s17 + $0x8] sm:$0xff] }
 0xaf4   : > { %v3597_v42 = vpop.permute.xlu0 %3596 }
 0xafb   : > { %3675 = vmatmul.f32.gmra.mxu0 %v1446_v9  ;;  %v1522_v9 = vld [vmem:[%s5436_s17 + $0xe8] sm:$0xff] }
 0xafc   : > { %v3768_v10 = vpop.permute.xlu0 %3767 }
 0xb54   : > { %v3696_v45 = vpop.f32.mrf.mxu1 }
 0xb5c   : > { %v3699_v37 = vpop.f32.mrf.mxu1 }
 0xb62   : > { %v3650_v34 = vpop.f32.mrf.mxu3 }
 0xb64   : > { %v3627_v40 = vpop.f32.mrf.mxu2 }
 0xb65   : > { %v3628_v25 = vadd.f32 %v3627_v40, %v3597_v42  ;;  %v1518_v40 = vld [vmem:[%s5436_s17 + $0xc8] sm:$0xff] }
 0xb67   : > { %v3651_v20 = vadd.f32 %v3650_v34, %v3628_v25  ;;  %v1502_v34 = vld [vmem:[%s5436_s17 + $0x48] sm:$0xff]  ;;  %v1499_v25 = vld [vmem:[%s5436_s17 + $0x30] sm:$0xff] }
 0xb6a   : > { %v3653_v5 = vpop.f32.mrf.mxu3 }
 0xb6c   : > { %v3630_v11 = vpop.f32.mrf.mxu2 }
 0xb6d   : > { %v3631_v31 = vadd.f32 %v3630_v11, %v3602_v2  ;;  %v1500_v11 = vld [vmem:[%s5436_s17 + $0x38] sm:$0xff] }
 0xb6f   : > { %v3654_v15 = vadd.f32 %v3653_v5, %v3631_v31  ;;  %v1516_v5 = vld [vmem:[%s5436_s17 + $0xb8] sm:$0xff]  ;;  %v1515_v31 = vld [vmem:[%s5436_s17 + $0xb0] sm:$0xff] }
 0xb70   : > { %v3673_v59 = vpop.f32.mrf.mxu0 }
 0xb71   : > { %3730 = vmatpush.msrb.mxu2 %v3654_v15  ;;  %v3674_v36 = vadd.f32 %v3673_v59, %v3597_v42  ;;  %v1517_v42 = vld [vmem:[%s5436_s17 + $0xc0] sm:$0xff]  ;;  %v1514_v15 = vld [vmem:[%s5436_s17 + $0xa8] sm:$0xff] }
 0xb72   : > { %v1513_v59 = vld [vmem:[%s5436_s17 + $0xa0] sm:$0xff] }
 0xb73   : > { %3731 = vmatpush.msrb.mxu2 %v3651_v20  ;;  %v3697_v50 = vadd.f32 %v3696_v45, %v3674_v36  ;;  %v1498_v45 = vld [vmem:[%s5436_s17 + $0x28] sm:$0xff]  ;;  %v1496_v20 = vld [vmem:[%s5436_s17 + $0x18] sm:$0xff] }
 0xb75   : > { %3732 = vmatpush.msrb.mxu2 %v2864_v13 }
 0xb77   : > { %3733 = vmatpush.msrb.mxu2 %v2247_v62 }
 0xb78   : > { %v3676_v22 = vpop.f32.mrf.mxu0 }
 0xb79   : > { %v3677_v48 = vadd.f32 %v3676_v22, %v3602_v2  ;;  %3734 = vmatpush.msrb.mxu2 %v1587_v43  ;;  %v1501_v2 = vld [vmem:[%s5436_s17 + $0x40] sm:$0xff] }
 0xb7a   : > { %5007 = vmatmul.msk.f32.vlgmr.msrb.gmra.mxu2 %vm3712_vm12, %v1450_v27 }
 0xb7b   : > { %v3700_v14 = vadd.f32 %v3699_v37, %v3677_v48  ;;  %3839 = vmatpush.msra.mxu2 %v1508_v44  ;;  %v1495_v48 = vld [vmem:[%s5436_s17 + $0x10] sm:$0xff] }
 0xb7d   : > { %3753 = vmatpush.msrb.mxu3 %v3700_v14  ;;  %3840 = vmatpush.msra.mxu2 %v1507_v54  ;;  %v1511_v14 = vld [vmem:[%s5436_s17 + $0x90] sm:$0xff] }
 0xb7f   : > { %3754 = vmatpush.msrb.mxu3 %v3697_v50  ;;  %3841 = vmatpush.msra.mxu2 %v1506_v28  ;;  %v1510_v50 = vld [vmem:[%s5436_s17 + $0x88] sm:$0xff]  ;;  %v6735_v28 = vld [vmem:[%s7109_s6 + $0x70] sm:$0xff] }
 0xb81   : > { %3755 = vmatpush.msrb.mxu3 %v2865_v24  ;;  %3842 = vmatpush.msra.mxu2 %v1505_v12  ;;  %v1480_v12 = vld [vmem:[%s7109_s6 + $0x50] sm:$0xff] }
 0xb82   : > { %5008 = vmatmul.msk.f32.gmra.mxu2 %vm3712_vm12, %v1451_v6 }
 0xb83   : > { %3756 = vmatpush.msrb.mxu3 %v2248_v4  ;;  %3843 = vmatpush.msra.mxu2 %v1504_v52  ;;  %v1476_v52 = vld [vmem:[%s7109_s6 + $0x30] sm:$0xff] }
 0xb85   : > { %3757 = vmatpush.msrb.mxu3 %v1588_v29  ;;  %3844 = vmatpush.msra.mxu2 %v1503_v39 }
 0xb86   : > { %5009 = vmatmul.msk.f32.vlgmr.msrb.gmra.mxu3 %vm3712_vm12, %v1450_v27 }
 0xb87   : > { %3859 = vmatpush.msra.mxu3 %v1524_v17  ;;  %3845 = vmatpush.msra.mxu2 %v1502_v34  ;;  %v1527_v17 = vld [vmem:[%s5441_s12 + $0x10] sm:$0xff] }
 0xb89   : > { %3860 = vmatpush.msra.mxu3 %v1523_v58  ;;  %3846 = vmatpush.msra.mxu2 %v1501_v2 }
 0xb8b   : > { %3861 = vmatpush.msra.mxu3 %v1522_v9  ;;  %3847 = vmatpush.msra.mxu2 %v1500_v11  ;;  %v1482_v9 = vld [vmem:[%s7109_s6 + $0x60] sm:$0xff] }
 0xb8d   : > { %3862 = vmatpush.msra.mxu3 %v1521_v3  ;;  %3848 = vmatpush.msra.mxu2 %v1499_v25  ;;  %v1478_v3 = vld [vmem:[%s7109_s6 + $0x40] sm:$0xff] }
 0xb8e   : > { %5010 = vmatmul.msk.f32.gmra.mxu3 %vm3712_vm12, %v1451_v6  ;;  %v1509_v6 = vld [vmem:[%s5436_s17 + $0x80] sm:$0xff]  ;;  %vm4100_vm12 = vcmask 121856  }
 0xb8f   : > { %3863 = vmatpush.msra.mxu3 %v1520_v35  ;;  %3849 = vmatpush.msra.mxu2 %v1498_v45 }
 0xb91   : > { %3864 = vmatpush.msra.mxu3 %v1519_v38  ;;  %3850 = vmatpush.msra.mxu2 %v1497_v16 }
 0xb93   : > { %3865 = vmatpush.msra.mxu3 %v1518_v40  ;;  %3851 = vmatpush.msra.mxu2 %v1496_v20 }
 0xb95   : > { %3866 = vmatpush.msra.mxu3 %v1517_v42  ;;  %3852 = vmatpush.msra.mxu2 %v1495_v48 }
 0xb97   : > { %3867 = vmatpush.msra.mxu3 %v1516_v5  ;;  %3853 = vmatpush.msra.mxu2 %v1494_v57  ;;  %v6771_v57 = vld [vmem:[%s7109_s6 + $0x68] sm:$0xff] }
 0xb99   : > { %3868 = vmatpush.msra.mxu3 %v1515_v31  ;;  %3854 = vmatpush.msra.mxu2 %v1493_v33  ;;  %v6779_v33 = vld [vmem:[%s7109_s6 + $0x48] sm:$0xff] }
 0xb9b   : > { %3869 = vmatpush.msra.mxu3 %v1514_v15 }
 0xb9d   : > { %3870 = vmatpush.msra.mxu3 %v1513_v59 }
 0xb9f   : > { %3871 = vmatpush.msra.mxu3 %v1512_v47 }
 0xba1   : > { %3872 = vmatpush.msra.mxu3 %v1511_v14  ;;  %v6767_v14 = vld [vmem:[%s7109_s6 + $0x78] sm:$0xff] }
 0xba3   : > { %3873 = vmatpush.msra.mxu3 %v1510_v50  ;;  %v6775_v50 = vld [vmem:[%s7109_s6 + $0x58] sm:$0xff] }
 0xba5   : > { %3874 = vmatpush.msra.mxu3 %v1509_v6  ;;  %v6783_v6 = vld [vmem:[%s7109_s6 + $0x38] sm:$0xff] }
 0xbfd   : > { %v3736_v49 = vpop.f32.mrf.mxu2 }
 0xbfe   : > { %v6658_v32 = vadd.f32 %v3736_v49, %v3705_v19 }
 0xc05   : > { %v3739_v18 = vpop.f32.mrf.mxu2 }
 0xc06   : > { %v6656_v46 = vadd.f32 %v3739_v18, %v3710_v0 }
 0xc08   : > { %3787 = vmatpush.msra.mxu1 %v6656_v46 }
 0xc09   : > { %v3759_v21 = vpop.f32.mrf.mxu3 }
 0xc0a   : > { %3788 = vmatpush.msra.mxu1 %v6658_v32  ;;  %v6666_v55 = vadd.f32 %v3759_v21, %v3705_v19 }
 0xc0b   : > { %5011 = vmatmul.msk.f32.vlgmr.msra.gmra.mxu1 %vm1539_vm0, %v1454_v8 }
 0xc11   : > { %v3762_v60 = vpop.f32.mrf.mxu3 }
 0xc12   : > { %v6664_v26 = vadd.f32 %v3762_v60, %v3710_v0 }
 0xc14   : > { %3807 = vmatpush.msrb.mxu1 %v6664_v26 }
 0xc16   : > { %3808 = vmatpush.msrb.mxu1 %v6666_v55 }
 0xc17   : > { %5012 = vmatmul.msk.f32.vlgmr.msrb.gmra.mxu1 %vm1539_vm0, %v1454_v8 }
 0xc18   : > { %4001 = vmatpush.msra.mxu1 %v6735_v28 }
 0xc1a   : > { %4002 = vmatpush.msra.mxu1 %v1482_v9 }
 0xc1c   : > { %4003 = vmatpush.msra.mxu1 %v1480_v12 }
 0xc1e   : > { %4004 = vmatpush.msra.mxu1 %v1478_v3 }
 0xc20   : > { %4005 = vmatpush.msra.mxu1 %v1476_v52 }
 0xc88   : > { %v3790_v41 = vpop.f32.mrf.mxu1 }
 0xc89   : > { %v3791_v63 = vadd.f32 %v3790_v41, %v3768_v10 }
 0xc8b   : > { %v6671_v51 = vmax.f32 %v3791_v63, 0.0 }
 0xc94   : > { %v3810_v53 = vpop.f32.mrf.mxu1 }
 0xc95   : > { %v3811_v1 = vadd.f32 %v3810_v53, %v3768_v10 }
 0xc97   : > { %v6673_v23 = vmax.f32 %v3811_v1, 0.0 }
 0xc99   : > { %v5113_v56 = vpack.i.bf16 %v6673_v23, %v6671_v51 }
 0xc9b   : > { %5114 = vrot.lane.b32.xlu1 %v5113_v56, %s7106_s1  ;;  %v3883_v56 = vand.u32 7, %v5669_v30 }
 0xc9d   : > { %vm6726_vm15 = vcmp.ne.s32.totalorder %v3883_v56, 7  ;;  %vm6745_vm2 = vcmp.ne.s32.totalorder %v3883_v56, 0  ;;  %v1529_v56 = vld [vmem:[%s5441_s12 + $0x20] sm:$0xff] }
 0xd0d   : > { %v5115_v7 = vpop.permute.xlu1 %5114 }
 0xd0e   : > { %v5117_v13 = vunpack.i.h.bf16 %v5115_v7  ;;  %v5116_v62 = vunpack.i.l.bf16 %v5115_v7 }
 0xd10   : > { %v3824_v27 = vsel %vm1972_vm11, %v5117_v13, 0.0  ;;  %v3821_v22 = vsel %vm1972_vm11, %v5116_v62, %v5117_v13  ;;  %vm3895_vm11 = vcmask 64512  }
 0xd11   : > { %v3826_v43 = vmax.f32 %v6673_v23, %v3824_v27  ;;  %v3825_v37 = vmax.f32 %v6671_v51, %v3821_v22 }
 0xd13   : > { %v5118_v36 = vpack.i.bf16 %v3826_v43, %v3825_v37 }
 0xd15   : > { %5119 = vrot.lane.b32.xlu2 %v5118_v36, %s7107_s2  ;;  %s7108_s2 = sld [smem:[#allocation22_spill]] }
 0xd1b   : > { %v1457_v1 = vld [vmem:[%s7108_s2] sm:$0xf]  ;;  %s5214_s2 = smov 4  }
 0xd6f   : > { %v5120_v61 = vpop.permute.xlu2 %5119 }
 0xd70   : > { %v5122_v24 = vunpack.i.h.bf16 %v5120_v61  ;;  %v5121_v4 = vunpack.i.l.bf16 %v5120_v61  ;;  %v1474_v61 = vld [vmem:[%s7109_s6 + $0x20] sm:$0xff] }
 0xd71   : > { %4006 = vmatpush.msra.mxu1 %v1474_v61 }
 0xd72   : > { %v3836_v29 = vsel %vm2037_vm7, %v5122_v24, 0.0  ;;  %v3833_v49 = vsel %vm2037_vm7, %v5121_v4, %v5122_v24  ;;  %vm3910_vm7 = vcmask 515072   ;;  %v6789_v24 = vld [vmem:[%s7109_s6 + $0x28] sm:$0xff]  ;;  %v1472_v4 = vld [vmem:[%s7109_s6 + $0x10] sm:$0xff] }
 0xd73   : > { %v3838_v0 = vmax.f32 %v3826_v43, %v3836_v29  ;;  %v3837_v18 = vmax.f32 %v3825_v37, %v3833_v49  ;;  %v6794_v29 = vld [vmem:[%s7109_s6 + $0x18] sm:$0xff]  ;;  %4007 = vmatpush.msra.mxu1 %v1472_v4  ;;  %v1470_v49 = vld [vmem:[%s7109_s6] sm:$0xff] }
 0xd75   : > { %3855 = vmatmul.f32.vlgmr.msra.gmra.mxu2 %v3837_v18  ;;  %3875 = vmatmul.f32.vlgmr.msra.gmra.mxu3 %v3838_v0  ;;  %v6799_v0 = vld [vmem:[%s7109_s6 + $0x8] sm:$0xff]  ;;  %s5216_s6 = smov 2  }
 0xd76   : > { %4008 = vmatpush.msra.mxu1 %v1470_v49 }
 0xdf8   : > { %v3856_v19 = vpop.f32.mrf.mxu2  ;;  %v3876_v8 = vpop.f32.mrf.mxu3 }
 0xdf9   : > { %v3877_v21 = vadd.f32 %v3876_v8, %v3856_v19 }
 0xdfb   : > { %3892 = vrot.lane.b32.xlu1 %v3877_v21, %s5212_s3  ;;  %3925 = vrot.lane.b32.xlu0 %v3877_v21, %s5213_s5  ;;  %s7114_s3 = sld [smem:[#allocation21_spill]] }
 0xe01   : > { %v1456_v36 = vld [vmem:[%s7114_s3] sm:$0xf]  ;;  %s7039_s3 = smov 124  }
 0xe03   : > { %3920 = vrot.lane.b32.xlu0 %v3877_v21, %s7106_s1 }
 0xe6d   : > { %v3893_v60 = vpop.permute.xlu1 %3892  ;;  %v3926_v41 = vpop.permute.xlu0 %3925 }
 0xe6e   : > { %v3896_v10 = vsel %vm3895_vm11, 0.0, %v3893_v60  ;;  %v3929_v63 = vsel %vm3928_vm5, %v3926_v41, 0.0  ;;  %vm4309_vm11 = vcmask 23552  }
 0xe6f   : > { %v5123_v53 = vpack.i.bf16 %v3877_v21, %v3929_v63  ;;  %3899 = vrot.lane.b32.xlu0 %v3896_v10, %s7102_s0  ;;  %3936 = vrot.lane.b32.xlu2 %v3929_v63, %s7106_s1  ;;  %v3949_v42 = vrot.slane %v3929_v63, 4  ;;  %v3941_v43 = vrot.slane %v3896_v10, 4  ;;  %v1532_v63 = vld [vmem:[%s5441_s12 + $0x38] sm:$0xff] }
 0xe70   : > { %4057 = vmatpush.msrb.mxu1 %v1532_v63 }
 0xe71   : > { %5124 = vrot.lane.b32.xlu1 %v5123_v53, %s7102_s0  ;;  %v1531_v53 = vld [vmem:[%s5441_s12 + $0x30] sm:$0xff] }
 0xe72   : > { %4058 = vmatpush.msrb.mxu1 %v1531_v53 }
 0xe75   : > { %v3921_v35 = vpop.permute.xlu0 %3920 }
 0xe76   : > { %v3923_v39 = vsel %vm3910_vm7, %v3921_v35, 0.0 }
 0xe77   : > { %3907 = vrot.lane.b32.xlu2 %v3896_v10, %s7106_s1  ;;  %v3924_v38 = vsel %vm6726_vm15, %v3923_v39, 0.0 }
 0xe78   : > { %v3947_v25 = vrot.slane %v3924_v38, 4 }
 0xe79   : > { %3958 = vperm.xlu1 %5111, %v1457_v1   ;;  %v1530_v1 = vld [vmem:[%s5441_s12 + $0x28] sm:$0xff] }
 0xe7a   : > { %v3954_v62 = vsel %vm3951_vm1, %v3877_v21, %v3947_v25  ;;  %4059 = vmatpush.msrb.mxu1 %v1530_v1 }
 0xe7c   : > { %4060 = vmatpush.msrb.mxu1 %v1529_v56 }
 0xec9   : > { %v3937_v44 = vpop.permute.xlu2 %3936 }
 0xeca   : > { %v3939_v54 = vsel %vm3910_vm7, %v3937_v44, 0.0  ;;  %v1528_v44 = vld [vmem:[%s5441_s12 + $0x18] sm:$0xff] }
 0xecb   : > { %v3940_v58 = vsel %vm6726_vm15, %v3939_v54, 0.0  ;;  %4061 = vmatpush.msrb.mxu1 %v1528_v44  ;;  %v1526_v54 = vld [vmem:[%s5441_s12 + $0x8] sm:$0xff] }
 0xecc   : > { %5013 = vmatpush.msk.msra.mxu0 %vm3951_vm1, %v3940_v58  ;;  %v1525_v58 = vld [vmem:[%s5441_s12] sm:$0xff] }
 0xecd   : > { %4062 = vmatpush.msrb.mxu1 %v1527_v17 }
 0xecf   : > { %4063 = vmatpush.msrb.mxu1 %v1526_v54 }
 0xed1   : > { %v3908_v11 = vpop.permute.xlu2 %3907  ;;  %4064 = vmatpush.msrb.mxu1 %v1525_v58 }
 0xed2   : > { %v3911_v20 = vsel %vm3910_vm7, %v3908_v11, 0.0  ;;  %v4073_v11 = vand.u32 3, %v5669_v30 }
 0xed3   : > { %v3914_v27 = vsel %vm6726_vm15, %v3911_v20, 0.0 }
 0xed4   : > { %vm6836_vm13 = vcmp.ne.s32.totalorder %v4073_v11, 3  ;;  %vm6844_vm14 = vcmp.ne.s32.totalorder %v4073_v11, 0  ;;  %v1465_v11 = vld [vmem:[%s7126_s9 + $0x8] sm:$0xff] }
 0xee1   : > { %v3900_v5 = vpop.permute.xlu0 %3899 }
 0xee2   : > { %v3902_v47 = vsel %vm1945_vm9, 0.0, %v3900_v5 }
 0xee3   : > { %v5125_v34 = vpop.permute.xlu1 %5124  ;;  %v3905_v22 = vsel %vm6745_vm2, %v3902_v47, 0.0 }
 0xee4   : > { %v5127_v40 = vunpack.i.h.bf16 %v5125_v34  ;;  %v5126_v2 = vunpack.i.l.bf16 %v5125_v34  ;;  %v3952_v48 = vsel %vm3951_vm1, %v3905_v22, %v3941_v43 }
 0xee6   : > { %v3918_v45 = vsel %vm1945_vm9, 0.0, %v5127_v40  ;;  %v3934_v15 = vsel %vm1945_vm9, 0.0, %v5126_v2 }
 0xee7   : > { %v3919_v16 = vsel %vm6745_vm2, %v3918_v45, 0.0  ;;  %v3935_v59 = vsel %vm6745_vm2, %v3934_v15, 0.0 }
 0xee8   : > { %v3944_v7 = vrot.slane %v3919_v16, 4  ;;  %v3955_v13 = vsel %vm3951_vm1, %v3935_v59, %v3949_v42 }
 0xee9   : > { %3980 = vmatpush.msra.mxu0 %v3955_v13 }
 0xeea   : > { %v3953_v37 = vsel %vm3951_vm1, %v3914_v27, %v3944_v7 }
 0xeeb   : > { %3981 = vmatpush.msra.mxu0 %v3954_v62  ;;  %v3959_v18 = vpop.permute.xlu1 %3958 }
 0xeed   : > { %3982 = vmatpush.msra.mxu0 %v3953_v37 }
 0xeef   : > { %3983 = vmatpush.msra.mxu0 %v3952_v48 }
 0xef0   : > { %5014 = vmatmul.msk.f32.vlgmr.msra.gmra.mxu0 %vm3961_vm3, %v1456_v36 }
 0xef1   : > { %4021 = vmatpush.msrb.mxu0 %v6767_v14 }
 0xef3   : > { %4022 = vmatpush.msrb.mxu0 %v6771_v57 }
 0xef5   : > { %4023 = vmatpush.msrb.mxu0 %v6775_v50 }
 0xef7   : > { %4024 = vmatpush.msrb.mxu0 %v6779_v33 }
 0xef9   : > { %4025 = vmatpush.msrb.mxu0 %v6783_v6 }
 0xefb   : > { %4026 = vmatpush.msrb.mxu0 %v6789_v24 }
 0xefd   : > { %4027 = vmatpush.msrb.mxu0 %v6794_v29 }
 0xeff   : > { %4028 = vmatpush.msrb.mxu0 %v6799_v0 }
 0xf01   : > { %4212 = vmatpush.msra.mxu0 %v6735_v28 }
 0xf03   : > { %4213 = vmatpush.msra.mxu0 %v1482_v9 }
 0xf05   : > { %4214 = vmatpush.msra.mxu0 %v1480_v12 }
 0xf07   : > { %4215 = vmatpush.msra.mxu0 %v1478_v3 }
 0xf09   : > { %4216 = vmatpush.msra.mxu0 %v1476_v52 }
 0xf0b   : > { %4217 = vmatpush.msra.mxu0 %v1474_v61 }
 0xf0d   : > { %4218 = vmatpush.msra.mxu0 %v1472_v4 }
 0xf0f   : > { %4219 = vmatpush.msra.mxu0 %v1470_v49 }
 0xf6d   : > { %v3985_v19 = vpop.f32.mrf.mxu0 }
 0xf6e   : > { %v3986_v8 = vadd.f32 %v3985_v19, %v3959_v18 }
 0xf70   : > { %v6803_v21 = vmax.f32 %v3986_v8, 0.0 }
 0xf72   : > { %4035 = vrot.lane.b32.xlu2 %v6803_v21, %s7106_s1  ;;  %5015 = vmatmul.msk.f32.vlgmr.msra.gmra.mxu1 %vm3989_vm6, %v6803_v21 }
 0xf73   : > { %5016 = vmatmul.msk.f32.vlgmr.msrb.gmra.mxu0 %vm3989_vm6, %v6803_v21 }
 0xfcc   : > { %v4036_v60 = vpop.permute.xlu2 %4035 }
 0xfcd   : > { %v4038_v41 = vsel %vm3910_vm7, %v4036_v60, 0.0 }
 0xfce   : > { %v4039_v10 = vmax.f32 %v6803_v21, %v4038_v41 }
 0xfd0   : > { %4041 = vrot.lane.b32.xlu0 %v4039_v10, %s5213_s5  ;;  %s7115_s5 = sld [smem:[#allocation24_spill]] }
 0xfd6   : > { %v1459_v2 = vld [vmem:[%s7115_s5] sm:$0xf]  ;;  %s7120_s5 = sld [smem:[#allocation23_spill]] }
 0xfdc   : > { %v1458_v63 = vld [vmem:[%s7120_s5] sm:$0xf]  ;;  %s7123_s5 = smov 124  }
 0xfef   : > { %v6824_v3 = vpop.f32.mrf.mxu1 }
0x1042   : > { %v4042_v28 = vpop.permute.xlu0 %4041 }
0x1043   : > { %v4044_v9 = vsel %vm3928_vm5, %v4042_v28, 0.0  ;;  %v1534_v28 = vld [vmem:[%s5446_s27 + $0x8] sm:$0xff] }
0x1044   : > { %v4045_v12 = vmax.f32 %v4039_v10, %v4044_v9  ;;  %v1533_v9 = vld [vmem:[%s5446_s27] sm:$0xff] }
0x1046   : > { %5017 = vmatmul.msk.f32.vlgmr.msrb.gmra.mxu1 %vm3989_vm6, %v4045_v12 }
0x10c3   : > { %v4066_v52 = vpop.f32.mrf.mxu1 }
0x10c4   : > { %4082 = vrot.lane.b32.xlu2 %v4066_v52, %s5214_s2  ;;  %4115 = vrot.lane.b32.xlu1 %v4066_v52, %s7039_s3  ;;  %s7121_s2 = sld [smem:[#allocation32_spill]] }
0x10c5   : > { %s7122_s3 = sld [smem:[#allocation34_spill]] }
0x10ca   : > { %v1487_v1 = vld [vmem:[%s7121_s2 + $0x8] sm:$0xff]  ;;  %v1486_v56 = vld [vmem:[%s7121_s2] sm:$0xff]  ;;  %s7125_s2 = sld [smem:[#allocation30_spill]] }
0x10cb   : > { %4194 = vmatpush.msrb.mxu3 %v1487_v1 }
0x10cc   : > { %4110 = vrot.lane.b32.xlu1 %v4066_v52, %s7106_s1 }
0x10cd   : > { %4195 = vmatpush.msrb.mxu3 %v1486_v56 }
0x10cf   : > { %4232 = vmatpush.msra.mxu3 %v6767_v14  ;;  %v1491_v14 = vld [vmem:[%s7122_s3 + $0x10] sm:$0xff] }
0x10d0   : > { %4429 = vmatpush.msrb.mxu0 %v1491_v14 }
0x10d1   : > { %4233 = vmatpush.msra.mxu3 %v6771_v57  ;;  %v1489_v57 = vld [vmem:[%s7122_s3] sm:$0xff] }
0x10d2   : > { %4430 = vmatpush.msrb.mxu0 %v1489_v57 }
0x10d3   : > { %4234 = vmatpush.msra.mxu3 %v6775_v50 }
0x10d5   : > { %4235 = vmatpush.msra.mxu3 %v6779_v33 }
0x10d7   : > { %4236 = vmatpush.msra.mxu3 %v6783_v6 }
0x10d9   : > { %4237 = vmatpush.msra.mxu3 %v6789_v24 }
0x10db   : > { %4238 = vmatpush.msra.mxu3 %v6794_v29 }
0x10dd   : > { %4239 = vmatpush.msra.mxu3 %v6799_v0  ;;  %v6893_v0 = vsub.f32 %v6671_v51, %v6824_v3 }
0x111e   : > { %v4083_v35 = vpop.permute.xlu2 %4082 }
0x111f   : > { %v4086_v39 = vsel %vm4085_vm8, 0.0, %v4083_v35 }
0x1120   : > { %4089 = vrot.lane.b32.xlu1 %v4086_v39, %s7102_s0  ;;  %v4131_v41 = vrot.slane %v4086_v39, 4 }
0x1136   : > { %v4116_v38 = vpop.permute.xlu1 %4115 }
0x1137   : > { %v4119_v34 = vsel %vm4118_vm10, %v4116_v38, 0.0 }
0x1138   : > { %v5128_v40 = vpack.i.bf16 %v4066_v52, %v4119_v34  ;;  %4126 = vrot.lane.b32.xlu0 %v4119_v34, %s7106_s1  ;;  %v4139_v62 = vrot.slane %v4119_v34, 4  ;;  %v1468_v34 = vld [vmem:[%s7125_s2] sm:$0xff] }
0x113a   : > { %5129 = vrot.lane.b32.xlu2 %v5128_v40, %s7102_s0 }
0x113e   : > { %v4111_v5 = vpop.permute.xlu1 %4110 }
0x113f   : > { %v4113_v45 = vsel %vm4100_vm12, %v4111_v5, 0.0  ;;  %v1469_v5 = vld [vmem:[%s7125_s2 + $0x8] sm:$0xff] }
0x1140   : > { %4097 = vrot.lane.b32.xlu0 %v4086_v39, %s7106_s1  ;;  %v4114_v16 = vsel %vm6836_vm13, %v4113_v45, 0.0 }
0x1141   : > { %v4137_v27 = vrot.slane %v4114_v16, 4 }
0x1142   : > { %4147 = vperm.xlu2 %5112, %v1459_v2  }
0x1143   : > { %v4143_v61 = vsel %vm3951_vm1, %v4066_v52, %v4137_v27 }
0x1192   : > { %v4090_v37 = vpop.permute.xlu1 %4089 }
0x1193   : > { %v4092_v4 = vsel %vm1945_vm9, 0.0, %v4090_v37 }
0x1194   : > { %v5130_v42 = vpop.permute.xlu2 %5129  ;;  %v4095_v8 = vsel %vm6844_vm14, %v4092_v4, 0.0 }
0x1195   : > { %v5131_v25 = vunpack.i.l.bf16 %v5130_v42  ;;  %v5132_v59 = vunpack.i.h.bf16 %v5130_v42  ;;  %v4141_v53 = vsel %vm3951_vm1, %v4095_v8, %v4131_v41  ;;  %v1464_v42 = vld [vmem:[%s7126_s9] sm:$0xff] }
0x1197   : > { %v4124_v15 = vsel %vm1945_vm9, 0.0, %v5131_v25  ;;  %v4108_v43 = vsel %vm1945_vm9, 0.0, %v5132_v59  ;;  %v4282_v25 = vand.u32 1, %v5669_v30 }
0x1198   : > { %v4125_v13 = vsel %vm6844_vm14, %v4124_v15, 0.0  ;;  %v4109_v48 = vsel %vm6844_vm14, %v4108_v43, 0.0 }
0x1199   : > { %v4144_v36 = vsel %vm3951_vm1, %v4125_v13, %v4139_v62  ;;  %v4134_v18 = vrot.slane %v4109_v48, 4  ;;  %vm6914_vm5 = vcmp.ne.s32.totalorder %v4282_v25, 1  ;;  %vm6925_vm7 = vcmp.ne.s32.totalorder %v4282_v25, 0 }
0x119c   : > { %v4148_v44 = vpop.permute.xlu2 %4147 }
0x11aa   : > { %v4127_v47 = vpop.permute.xlu0 %4126 }
0x11ab   : > { %v4129_v7 = vsel %vm4100_vm12, %v4127_v47, 0.0 }
0x11ac   : > { %v4130_v22 = vsel %vm6836_vm13, %v4129_v7, 0.0 }
0x11ad   : > { %5018 = vmatpush.msk.msrb.mxu2 %vm3951_vm1, %v4130_v22 }
0x11af   : > { %4168 = vmatpush.msrb.mxu2 %v4144_v36 }
0x11b1   : > { %4169 = vmatpush.msrb.mxu2 %v4143_v61 }
0x11b2   : > { %v4098_v49 = vpop.permute.xlu0 %4097 }
0x11b3   : > { %v4101_v19 = vsel %vm4100_vm12, %v4098_v49, 0.0 }
0x11b4   : > { %v4104_v60 = vsel %vm6836_vm13, %v4101_v19, 0.0 }
0x11b5   : > { %v4142_v10 = vsel %vm3951_vm1, %v4104_v60, %v4134_v18 }
0x11b6   : > { %4170 = vmatpush.msrb.mxu2 %v4142_v10 }
0x11b8   : > { %4171 = vmatpush.msrb.mxu2 %v4141_v53 }
0x11b9   : > { %5019 = vmatmul.msk.f32.vlgmr.msrb.gmra.mxu2 %vm3961_vm3, %v1458_v63 }
0x11ba   : > { %4272 = vmatpush.msra.mxu2 %v1534_v28 }
0x11bc   : > { %4273 = vmatpush.msra.mxu2 %v1533_v9 }
0x123c   : > { %v4173_v17 = vpop.f32.mrf.mxu2 }
0x123d   : > { %v4174_v54 = vadd.f32 %v4173_v17, %v4148_v44  ;;  %v1492_v44 = vld [vmem:[%s7122_s3 + $0x18] sm:$0xff]  ;;  %v4030_v17 = vpop.f32.mrf.mxu0 }
0x123e   : > { %v4034_v14 = vsub.f32 %v6673_v23, %v4030_v17 }
0x123f   : > { %v6879_v58 = vmax.f32 %v4174_v54, 0.0  ;;  %v1490_v54 = vld [vmem:[%s7122_s3 + $0x8] sm:$0xff] }
0x1241   : > { %4244 = vrot.lane.b32.xlu0 %v6879_v58, %s7106_s1  ;;  %5020 = vmatmul.msk.f32.vlgmr.msrb.gmra.mxu3 %vm1539_vm0, %v6879_v58 }
0x12b3   : > { %v4245_v50 = vpop.permute.xlu0 %4244 }
0x12b4   : > { %v4247_v33 = vsel %vm4100_vm12, %v4245_v50, 0.0 }
0x12b5   : > { %v4248_v6 = vmax.f32 %v6879_v58, %v4247_v33 }
0x12b7   : > { %4250 = vrot.lane.b32.xlu1 %v4248_v6, %s7123_s5  ;;  %s7124_s5 = sld [smem:[#allocation26_spill]] }
0x12bd   : > { %v1461_v38 = vld [vmem:[%s7124_s5] sm:$0xf]  ;;  %s7139_s5 = sshll.u32 %s7141_s10, 5 }
0x12c4   : > { %v4197_v24 = vpop.f32.mrf.mxu3 }
0x12c5   : > { %v4200_v29 = vsub.f32 %v6803_v21, %v4197_v24 }
0x12c7   : > { %5021 = vmatmul.msk.f32.vlgmr.msra.gmra.mxu0 %vm3989_vm6, %v4200_v29  ;;  %5022 = vmatmul.msk.f32.vlgmr.msra.gmra.mxu3 %vm3989_vm6, %v4200_v29 }
0x12c8   : > { %5036 = vmatpush.msk.msra.mxu0 %vm3951_vm1, %v6893_v0 }
0x1329   : > { %v4251_v12 = vpop.permute.xlu1 %4250 }
0x132a   : > { %v4253_v52 = vsel %vm4118_vm10, %v4251_v12, 0.0 }
0x132b   : > { %v4254_v21 = vmax.f32 %v4248_v6, %v4253_v52 }
0x132d   : > { %5023 = vmatmul.msk.f32.vlgmr.msra.gmra.mxu2 %vm1539_vm0, %v4254_v21 }
0x1344   : > { %v4221_v23 = vpop.f32.mrf.mxu0 }
0x1345   : > { %v4457_v12 = vrot.slane %v4221_v23, 4 }
0x134a   : > { %v4241_v9 = vpop.f32.mrf.mxu3 }
0x134b   : > { %v4458_v52 = vrot.slane %v4241_v9, 4 }
0x13b0   : > { %v4275_v51 = vpop.f32.mrf.mxu2 }
0x13b1   : > { %4291 = vrot.lane.b32.xlu0 %v4275_v51, %s5216_s6  ;;  %4324 = vrot.lane.b32.xlu2 %v4275_v51, %s5217_s8  ;;  %s7131_s8 = sld [smem:[#allocation25_spill]] }
0x13b2   : > { %s7132_s6 = sld [smem:[#allocation33_spill]] }
0x13b7   : > { %v1460_v1 = vld [vmem:[%s7131_s8] sm:$0xf]  ;;  %s1350_s8 = scalar_lea.vmem %s5451_s4, %s7139_s5 }
0x13b8   : > { %v1488_v57 = vld [vmem:[%s7132_s6] sm:$0xf] }
0x13b9   : > { %4319 = vrot.lane.b32.xlu2 %v4275_v51, %s7106_s1  ;;  %5026 = vmatpush.msk.msrb.mxu2 %vm3951_vm1, %v1488_v57 }
0x140b   : > { %v4325_v3 = vpop.permute.xlu2 %4324 }
0x140c   : > { %v4327_v35 = vsel %vm4294_vm4, %v4325_v3, 0.0 }
0x140d   : > { %v5133_v39 = vpack.i.bf16 %v4275_v51, %v4327_v35  ;;  %4334 = vrot.lane.b32.xlu1 %v4327_v35, %s7106_s1  ;;  %v4347_v30 = vrot.slane %v4327_v35, 4  ;;  %v4461_v35 = vsel %vm3951_vm1, %v6893_v0, %v4457_v12 }
0x140f   : > { %5134 = vrot.lane.b32.xlu0 %v5133_v39, %s7102_s0 }
0x1413   : > { %v4320_v31 = vpop.permute.xlu2 %4319 }
0x1414   : > { %v4322_v15 = vsel %vm4309_vm11, %v4320_v31, 0.0 }
0x1415   : > { %v4323_v20 = vsel %vm6914_vm5, %v4322_v15, 0.0 }
0x1416   : > { %v4345_v62 = vrot.slane %v4323_v20, 4 }
0x1417   : > { %4355 = vperm.xlu0 %5110, %v1461_v38  }
0x1418   : > { %v4351_v36 = vsel %vm3951_vm1, %v4275_v51, %v4345_v62 }
0x141f   : > { %4613 = vperm.xlu0 %5110, %v1468_v34  }
0x1423   : > { %v4292_v40 = vpop.permute.xlu0 %4291 }
0x1424   : > { %v4295_v2 = vsel %vm4294_vm4, 0.0, %v4292_v40 }
0x1425   : > { %4298 = vrot.lane.b32.xlu2 %v4295_v2, %s7102_s0  ;;  %4306 = vrot.lane.b32.xlu1 %v4295_v2, %s7106_s1  ;;  %v4339_v63 = vrot.slane %v4295_v2, 4  ;;  %s7133_s0 = sld [smem:[#allocation27_spill]] }
0x1426   : > { %s7138_s1 = sld [smem:[#allocation29_spill]] }
0x142b   : > { %v1462_v3 = vld [vmem:[%s7133_s0] sm:$0xff]  ;;  %v1463_v39 = vld [vmem:[%s7133_s0 + $0x8] sm:$0xff] }
0x142d   : > { %4465 = vperm.xlu2 %5112, %v1464_v42   ;;  %4470 = vperm.xlu1 %5111, %v1465_v11  }
0x1435   : > { %4618 = vperm.xlu1 %5111, %v1469_v5  }
0x147f   : > { %v4335_v16 = vpop.permute.xlu1 %4334  ;;  %v4299_v4 = vpop.permute.xlu2 %4298 }
0x1480   : > { %v4337_v59 = vsel %vm4309_vm11, %v4335_v16, 0.0  ;;  %v4301_v18 = vsel %vm1945_vm9, 0.0, %v4299_v4 }
0x1481   : > { %v4338_v47 = vsel %vm6914_vm5, %v4337_v59, 0.0  ;;  %v5135_v7 = vpop.permute.xlu0 %5134  ;;  %v4304_v41 = vsel %vm6925_vm7, %v4301_v18, 0.0 }
0x1482   : > { %v5136_v13 = vunpack.i.l.bf16 %v5135_v7  ;;  %5024 = vmatpush.msk.msra.mxu1 %vm3951_vm1, %v4338_v47  ;;  %v5137_v48 = vunpack.i.h.bf16 %v5135_v7  ;;  %v4349_v56 = vsel %vm3951_vm1, %v4304_v41, %v4339_v63 }
0x1484   : > { %v4332_v22 = vsel %vm1945_vm9, 0.0, %v5136_v13  ;;  %v4317_v61 = vsel %vm1945_vm9, 0.0, %v5137_v48 }
0x1485   : > { %v4333_v43 = vsel %vm6925_vm7, %v4332_v22, 0.0  ;;  %v4318_v49 = vsel %vm6925_vm7, %v4317_v61, 0.0 }
0x1486   : > { %v4352_v37 = vsel %vm3951_vm1, %v4333_v43, %v4347_v30  ;;  %v4342_v8 = vrot.slane %v4318_v49, 4 }
0x1487   : > { %4376 = vmatpush.msra.mxu1 %v4352_v37  ;;  %v4466_v38 = vpop.permute.xlu2 %4465 }
0x1489   : > { %4377 = vmatpush.msra.mxu1 %v4351_v36  ;;  %v4356_v50 = vpop.permute.xlu0 %4355 }
0x1497   : > { %v4307_v19 = vpop.permute.xlu1 %4306 }
0x1498   : > { %v4310_v60 = vsel %vm4309_vm11, %v4307_v19, 0.0 }
0x1499   : > { %v4313_v10 = vsel %vm6914_vm5, %v4310_v60, 0.0 }
0x149a   : > { %v4350_v53 = vsel %vm3951_vm1, %v4313_v10, %v4342_v8 }
0x149b   : > { %4378 = vmatpush.msra.mxu1 %v4350_v53 }
0x149d   : > { %4379 = vmatpush.msra.mxu1 %v4349_v56 }
0x149e   : > { %5025 = vmatmul.msk.f32.vlgmr.msra.gmra.mxu1 %vm3961_vm3, %v1460_v1 }
0x149f   : > { %4449 = vmatpush.msrb.mxu1 %v1492_v44  ;;  %v4471_v31 = vpop.permute.xlu1 %4470 }
0x14a1   : > { %4450 = vmatpush.msrb.mxu1 %v1490_v54 }
0x14a3   : > { %5039 = vmatpush.msk.msra.mxu1 %vm3951_vm1, %v4034_v14 }
0x151b   : > { %v4381_v33 = vpop.f32.mrf.mxu1 }
0x151c   : > { %v4382_v6 = vadd.f32 %v4381_v33, %v4356_v50 }
0x151e   : > { %v4384_v24 = vmax.f32 %v4382_v6, 0.0 }
0x1520   : > { %5027 = vmatmul.msk.f32.vlgmr.msrb.gmra.mxu2 %vm4085_vm8, %v4384_v24 }
0x15a3   : > { %v4408_v29 = vpop.f32.mrf.mxu2 }
0x15a4   : > { %v4411_v28 = vsub.f32 %v6879_v58, %v4408_v29  ;;  %v4462_v58 = vsel %vm3951_vm1, %v4034_v14, %v4458_v52 }
0x15a6   : > { %5028 = vmatmul.msk.f32.vlgmr.msrb.gmra.mxu0 %vm1539_vm0, %v4411_v28  ;;  %5029 = vmatmul.msk.f32.vlgmr.msrb.gmra.mxu1 %vm1539_vm0, %v4411_v28 }
0x1623   : > { %v4432_v21 = vpop.f32.mrf.mxu0  ;;  %v4452_v51 = vpop.f32.mrf.mxu1 }
0x1624   : > { %5030 = vmatpush.msk.msrb.mxu3 %vm3951_vm1, %v4432_v21  ;;  %5033 = vmatpush.msk.msra.mxu2 %vm3951_vm1, %v4452_v51 }
0x1626   : > { %4500 = vmatpush.msrb.mxu3 %v4461_v35  ;;  %4523 = vmatpush.msra.mxu2 %v4462_v58 }
0x1627   : > { %5031 = vmatmul.msk.f32.vlgmr.msrb.gmra.mxu3 %vm4118_vm10, %v1462_v3  ;;  %5034 = vmatmul.msk.f32.vlgmr.msra.gmra.mxu2 %vm4118_vm10, %v1462_v3 }
0x162f   : > { %5032 = vmatmul.msk.f32.gmra.mxu3 %vm4118_vm10, %v1463_v39  ;;  %5035 = vmatmul.msk.f32.gmra.mxu2 %vm4118_vm10, %v1463_v39 }
0x16aa   : > { %v4502_v34 = vpop.f32.mrf.mxu3  ;;  %v4525_v40 = vpop.f32.mrf.mxu2 }
0x16ab   : > { %v4503_v2 = vadd.f32 %v4502_v34, %v4466_v38  ;;  %v4526_v42 = vadd.f32 %v4525_v40, %v4466_v38 }
0x16ad   : > { %v4531_v11 = vsub.f32 0.0, %v4503_v2  ;;  %v4532_v0 = vsub.f32 0.0, %v4526_v42 }
0x16af   : > { %v4535_v5 = vmul.f32 1.442695, %v4531_v11  ;;  %v4537_v25 = vmul.f32 1.442695, %v4532_v0 }
0x16b1   : > { %5138 = vpow2.f32 %v4535_v5 }
0x16b2   : > { %5140 = vpow2.f32 %v4537_v25  ;;  %v4505_v45 = vpop.f32.mrf.mxu3  ;;  %v4528_v15 = vpop.f32.mrf.mxu2 }
0x16b3   : > { %v4506_v16 = vadd.f32 %v4505_v45, %v4471_v31  ;;  %v4529_v59 = vadd.f32 %v4528_v15, %v4471_v31  ;;  %v1466_v45 = vld [vmem:[%s7138_s1] sm:$0xff] }
0x16b5   : > { %v4533_v20 = vsub.f32 0.0, %v4506_v16  ;;  %v4534_v47 = vsub.f32 0.0, %v4529_v59  ;;  %v1467_v16 = vld [vmem:[%s7138_s1 + $0x8] sm:$0xff]  ;;  %v4614_v59 = vpop.permute.xlu0 %4613 }
0x16b7   : > { %v5139_v7 = vpop.eup %5138  ;;  %v4539_v13 = vmul.f32 1.442695, %v4533_v20  ;;  %v4541_v27 = vmul.f32 1.442695, %v4534_v47 }
0x16b8   : > { %v5141_v30 = vpop.eup %5140  ;;  %v4543_v62 = vadd.f32 1.0, %v5139_v7 }
0x16b9   : > { %v6968_v22 = vadd.f32 1.0, %v5141_v30  ;;  %5142 = vpow2.f32 %v4539_v13 }
0x16ba   : > { %5144 = vrcp.f32 %v4543_v62  ;;  %vm4552_vm0 = vweird.f32 %v4543_v62  ;;  %v4558_v63 = vand.u32 2147483648, %v4543_v62  ;;  %v4556_v17 = vand.u32 2147483647, %v4543_v62 }
0x16bb   : > { %5146 = vrcp.f32 %v6968_v22  ;;  %vm4567_vm15 = vweird.f32 %v6968_v22  ;;  %v4571_v57 = vand.u32 2147483647, %v6968_v22  ;;  %v4573_v6 = vand.u32 2147483648, %v6968_v22 }
0x16bc   : > { %5148 = vpow2.f32 %v4541_v27  ;;  %v4559_v28 = vor.u32 1.1754944e-38, %v4558_v63  ;;  %vm4557_vm14 = vcmp.eq.f32.partialorder %v4556_v17, 8.507059e+37 }
0x16bd   : > { %v4574_v11 = vor.u32 1.1754944e-38, %v4573_v6  ;;  %vm4572_vm7 = vcmp.eq.f32.partialorder %v4571_v57, 8.507059e+37 }
0x16bf   : > { %v5143_v43 = vpop.eup %5142 }
0x16c0   : > { %v5145_v37 = vpop.eup %5144  ;;  %v4545_v36 = vadd.f32 1.0, %v5143_v43 }
0x16c1   : > { %v6971_v48 = vpop.eup %5146  ;;  %v4548_v61 = vmul.f32 %v5145_v37, %v4543_v62  ;;  %vm4553_vm9 = vweird.f32 %v5145_v37 }
0x16c2   : > { %v5149_v4 = vpop.eup %5148  ;;  %5150 = vrcp.f32 %v4545_v36  ;;  %v4563_v19 = vmul.f32 %v6971_v48, %v6968_v22  ;;  %v4588_v54 = vand.u32 2147483648, %v4545_v36  ;;  %v4586_v33 = vand.u32 2147483647, %v4545_v36  ;;  %vm6980_vm2 = vmor %vm4552_vm0, %vm4553_vm9 }
0x16c3   : > { %v4546_v49 = vadd.f32 1.0, %v5149_v4  ;;  %v4549_v18 = vsub.f32 1.0, %v4548_v61  ;;  %vm4568_vm3 = vweird.f32 %v6971_v48  ;;  %vm4582_vm6 = vweird.f32 %v4545_v36 }
0x16c4   : > { %v4564_v8 = vsub.f32 1.0, %v4563_v19  ;;  %v4589_v21 = vor.u32 1.1754944e-38, %v4588_v54  ;;  %vm4587_vm12 = vcmp.eq.f32.partialorder %v4586_v33, 8.507059e+37  ;;  %vm6990_vm4 = vmor %vm4567_vm15, %vm4568_vm3  ;;  %vm4621_vm0 = vcmask 162816  }
0x16c5   : > { %5152 = vrcp.f32 %v4546_v49  ;;  %v4550_v60 = vmul.f32 %v5145_v37, %v4549_v18  ;;  %v4603_v12 = vand.u32 2147483648, %v4546_v49  ;;  %v4601_v3 = vand.u32 2147483647, %v4546_v49 }
0x16c6   : > { %v4565_v53 = vmul.f32 %v6971_v48, %v4564_v8  ;;  %vm4597_vm13 = vweird.f32 %v4546_v49 }
0x16c7   : > { %v4551_v44 = vadd.f32 %v5145_v37, %v4550_v60  ;;  %v4604_v42 = vor.u32 1.1754944e-38, %v4603_v12  ;;  %vm4602_vm5 = vcmp.eq.f32.partialorder %v4601_v3, 8.507059e+37 }
0x16c8   : > { %v5151_v41 = vpop.eup %5150  ;;  %v4566_v23 = vadd.f32 %v6971_v48, %v4565_v53 }
0x16c9   : > { %v4578_v10 = vmul.f32 %v5151_v41, %v4545_v36  ;;  %vm4583_vm1 = vweird.f32 %v5151_v41  ;;  %v4555_v52 = vsel %vm6980_vm2, %v5145_v37, %v4551_v44 }
0x16ca   : > { %vm4584_vm8 = vmor %vm4582_vm6, %vm4583_vm1  ;;  %v4560_v34 = vsel %vm4557_vm14, %v4559_v28, %v4555_v52  ;;  %v4570_v40 = vsel %vm6990_vm4, %v6971_v48, %v4566_v23 }
0x16cb   : > { %v5153_v1 = vpop.eup %5152  ;;  %v4579_v56 = vsub.f32 1.0, %v4578_v10  ;;  %v4607_v25 = vmul.f32 %v4560_v34, %v6658_v32  ;;  %v4575_v31 = vsel %vm4572_vm7, %v4574_v11, %v4570_v40 }
0x16cc   : > { %v4593_v14 = vmul.f32 %v5153_v1, %v4546_v49  ;;  %vm4598_vm10 = vweird.f32 %v5153_v1 }
0x16cd   : > { %v4580_v50 = vmul.f32 %v5151_v41, %v4579_v56  ;;  %vm4599_vm11 = vmor %vm4597_vm13, %vm4598_vm10 }
0x16ce   : > { %v4594_v24 = vsub.f32 1.0, %v4593_v14 }
0x16cf   : > { %v4581_v9 = vadd.f32 %v5151_v41, %v4580_v50 }
0x16d0   : > { %v4595_v51 = vmul.f32 %v5153_v1, %v4594_v24 }
0x16d1   : > { %v4585_v35 = vsel %vm4584_vm8, %v5151_v41, %v4581_v9 }
0x16d2   : > { %v4590_v39 = vsel %vm4587_vm12, %v4589_v21, %v4585_v35  ;;  %v4596_v38 = vadd.f32 %v5153_v1, %v4595_v51 }
0x16d3   : > { %v4609_v2 = vmul.f32 %v4590_v39, %v6656_v46  ;;  %v4608_v46 = vmul.f32 %v4575_v31, %v6666_v55 }
0x16d4   : > { %v4600_v0 = vsel %vm4599_vm11, %v5153_v1, %v4596_v38 }
0x16d5   : > { %4648 = vmatpush.msra.mxu0 %v4609_v2  ;;  %v4605_v5 = vsel %vm4602_vm5, %v4604_v42, %v4600_v0 }
0x16d6   : > { %v4610_v15 = vmul.f32 %v4605_v5, %v6664_v26  ;;  %v4619_v26 = vpop.permute.xlu1 %4618 }
0x16d7   : > { %4649 = vmatpush.msra.mxu0 %v4607_v25 }
0x16d8   : > { %4671 = vmatpush.msra.mxu1 %v4610_v15  ;;  %5037 = vmatmul.msk.f32.vlgmr.msra.gmra.mxu0 %vm4621_vm0, %v1466_v45 }
0x16da   : > { %4672 = vmatpush.msra.mxu1 %v4608_v46 }
0x16db   : > { %5040 = vmatmul.msk.f32.vlgmr.msra.gmra.mxu1 %vm4621_vm0, %v1466_v45 }
0x16e0   : > { %5038 = vmatmul.msk.f32.gmra.mxu0 %vm4621_vm0, %v1467_v16 }
0x16e3   : > { %5041 = vmatmul.msk.f32.gmra.mxu1 %vm4621_vm0, %v1467_v16 }
0x1755   : > { %v4651_v20 = vpop.f32.mrf.mxu0 }
0x1756   : > { %v4652_v32 = vadd.f32 %v4651_v20, %v4614_v59 }
0x1758   : > { %4680 = vst [vmem:[%s1350_s8] sm:$0xff] %v4652_v32  ;;  %v4674_v47 = vpop.f32.mrf.mxu1 }
0x1759   : > { %v4675_v7 = vadd.f32 %v4674_v47, %v4614_v59 }
0x175b   : > { %4681 = vst [vmem:[%s1350_s8 + $0x8] sm:$0xff] %v4675_v7 }
0x175d   : > { %v4654_v13 = vpop.f32.mrf.mxu0 }
0x175e   : > { %v4655_v30 = vadd.f32 %v4654_v13, %v4619_v26 }
0x1760   : > { %4682 = vst [vmem:[%s1350_s8 + $0x10] sm:$0xff] %v4655_v30  ;;  %v4677_v55 = vpop.f32.mrf.mxu1 }
0x1761   : > { %v4678_v62 = vadd.f32 %v4677_v55, %v4619_v26 }
0x1763   : > { %4683 = vst [vmem:[%s1350_s8 + $0x18] sm:$0xff] %v4678_v62 }
0x1764 PF: > { %s101_s7 = sadd.s32 1, %s5160_s7  }
0x1765   : > { %p98_p4 = scmp.ge.s32.totalorder %s101_s7, 4  }
0x1767   :  { %100 = sbr.rel (!%p98_p4) target bundleno = 85 (0x55), region = 275 }

</bundles_post_ra>
